<compile_context>
chip_gen: v6e
topology: v6e:2x2x1
jax: 0.10.0
libtpu: 0.0.40
codegen_flags: <defaults>
</compile_context>

<pallas_src>
import jax
import jax.numpy as jnp
from jax import lax
from jax.experimental import pallas as pl
from jax.experimental.pallas import tpu as pltpu

INPUT_DIM = 16       # in_feats  (<= out_feats; DGL zero-pads)
OUTPUT_DIM = 32      # out_feats
MAX_EDGE_TYPES = 3   # n_etypes
NUM_STEPS = 8        # n_steps
BATCH = 2
NUM_NODES = 16


def ggnn_sum_kernel(h0_ref, adj_ref, m_ref, gib_ref, whh_ref, bhh_ref,
                    wc_ref, bc_ref, sel_ref, out_ref):
    B, N, E, D = BATCH, NUM_NODES, MAX_EDGE_TYPES, OUTPUT_DIM
    BN = B * N

    # Loop-invariant operands, loaded once (hoisted out of the unrolled step loop).
    adj_tall = adj_ref[...]      # (E*BN, BN) bf16  per-batch block-diag A_e, e stacked on sublanes
    m_stack = m_ref[...]         # (E*D, 3D)  bf16  M_e^T = (W_ih @ W_e)^T stacked on sublanes
    gi_bias = gib_ref[...]       # (BN, 3D)   f32   (sum_e deg_e (x) b_e) @ W_ih^T + b_ih
    whh_t = whh_ref[...]         # (D, 3D)    bf16
    bhh = bhh_ref[...]           # (1, 3D)    f32

    def step(_, h):              # h: (BN, D) f32 node state
        h_b = h.astype(jnp.bfloat16)
        # Serial push #1: [A_0 h; A_1 h; A_2 h] in one MXU push (sublane-stacked).
        ah = jnp.dot(adj_tall, h_b, preferred_element_type=jnp.float32)       # (E*BN, D)
        ah_b = ah.astype(jnp.bfloat16)
        # gh depends only on h -> overlaps push #1.
        gh = jnp.dot(h_b, whh_t, preferred_element_type=jnp.float32) + bhh    # (BN, 3D)
        # Serial push #2: gi via an accumulate chain over edge types
        # (sublane slices at multiples of 32 are free; W_e is pre-folded into M_e).
        gi = gi_bias
        for e in range(E):
            gi = gi + jnp.dot(ah_b[e * BN:(e + 1) * BN, :],
                              m_stack[e * D:(e + 1) * D, :],
                              preferred_element_type=jnp.float32)             # (BN, 3D)

        # GRUCell(input=a, hidden=h) with `a` folded into gi; PyTorch gate order (r, z, n).
        rz = jax.nn.sigmoid(gi[:, 0:2 * D] + gh[:, 0:2 * D])                  # one 64-lane EUP push
        r = rz[:, 0:D]
        z = rz[:, D:2 * D]
        n = jnp.tanh(gi[:, 2 * D:3 * D] + r * gh[:, 2 * D:3 * D])
        return (1.0 - z) * n + z * h

    h = lax.fori_loop(0, NUM_STEPS, step, h0_ref[...], unroll=True)

    # Readout: per-graph node sums via an exact 0/1 selector matmul (f32), classifier as
    # VPU multiply + cross-lane reduce (no lane-width-1 MXU push).
    s = jnp.dot(sel_ref[...], h, preferred_element_type=jnp.float32)          # (B, D)
    logits = jnp.sum(s * wc_ref[...], axis=1, keepdims=True) + bc_ref[...]    # (B, 1)
    out_ref[...] = jax.nn.sigmoid(logits)


def ggnn_sum_forward(features, adj, params):
    B, N, Din = features.shape
    E = adj.shape[1]
    D = OUTPUT_DIM
    BN = B * N

    # ---- wrapper-side, step-invariant preprocessing (plain JAX glue, runs once) ----
    # DGL GatedGraphConv zero-pads input features up to out_feats; flatten batch.
    h0 = jnp.concatenate(
        [features, jnp.zeros((B, N, D - Din), features.dtype)], axis=-1)
    h0 = h0.reshape(BN, D).astype(jnp.float32)

    # adj_tall[e*BN + b*N + dst, b*N + src] = adj[b, e, dst, src]
    adj_bd = jnp.zeros((E, BN, BN), jnp.float32)
    for b in range(B):
        adj_bd = adj_bd.at[:, b * N:(b + 1) * N, b * N:(b + 1) * N].set(adj[b])
    adj_tall = adj_bd.reshape(E * BN, BN).astype(jnp.bfloat16)    # 0/1 -> exact in bf16

    # Fold per-edge-type Linear weights into the GRU input projection (f32 fold, one cast):
    #   M_e^T = (W_ih @ W_e)^T
    m_stack = jnp.concatenate(
        [(params["wih"] @ params["we"][e]).T for e in range(E)], axis=0)       # (E*D, 3D)
    m_stack = m_stack.astype(jnp.bfloat16)

    # Step-invariant bias folded the same way: gi_bias = (sum_e deg_e (x) b_e) @ W_ih^T + b_ih
    deg = adj.sum(axis=-1)                                                     # (B, E, N)
    a_bias = jnp.einsum("ben,ed->bnd", deg, params["be"]).reshape(BN, D)
    gi_bias = (a_bias @ params["wih"].T + params["bih"]).astype(jnp.float32)   # (BN, 3D)

    whh_t = params["whh"].T.astype(jnp.bfloat16)          # (D, 3D)
    bhh = params["bhh"][None, :].astype(jnp.float32)      # (1, 3D)
    wc_row = params["wc"].astype(jnp.float32)             # (1, D)
    bc = params["bc"][None, :].astype(jnp.float32)        # (1, 1)

    # 0/1 graph-membership selector for per-graph node sums.
    sel = jnp.repeat(jnp.eye(B, dtype=jnp.float32), N, axis=1)                 # (B, BN)

    # Whole problem (<100 KiB) lives in VMEM in a single un-gridded invocation.
    # TODO(synk): for large batches switch adjacency to a gridded (B, E, N, N) layout with a
    # "parallel" batch axis (block-diag adj_tall grows O(B^2) and would blow v7x's 64 MiB VMEM;
    # the parallel axis also engages v7x's second TensorCore).
    vmem = pl.BlockSpec(memory_space=pltpu.MemorySpace.VMEM)
    out = pl.pallas_call(
        ggnn_sum_kernel,
        out_shape=jax.ShapeDtypeStruct((B, 1), jnp.float32),
        in_specs=[vmem] * 9,
        out_specs=vmem,
    )(h0, adj_tall, m_stack, gi_bias, whh_t, bhh, wc_row, bc, sel)

    return out[:, 0]   # sigmoid(logit).squeeze(-1) -> (B,)


def ggnn_sum_reference_f32(features, adj, params):
    """Pure-f32 JAX reference of the module semantics (no Pallas, no bf16, no folding)."""
    B, N, Din = features.shape
    D = OUTPUT_DIM
    E = adj.shape[1]
    h = jnp.concatenate(
        [features, jnp.zeros((B, N, D - Din), features.dtype)], axis=-1)
    for _ in range(NUM_STEPS):
        a = jnp.zeros_like(h)
        for e in range(E):
            msg = h @ params["we"][e].T + params["be"][e]
            a = a + jnp.einsum("bij,bjd->bid", adj[:, e], msg)
        gi = a @ params["wih"].T + params["bih"]
        gh = h @ params["whh"].T + params["bhh"]
        r = jax.nn.sigmoid(gi[..., 0:D] + gh[..., 0:D])
        z = jax.nn.sigmoid(gi[..., D:2 * D] + gh[..., D:2 * D])
        n = jnp.tanh(gi[..., 2 * D:3 * D] + r * gh[..., 2 * D:3 * D])
        h = (1.0 - z) * n + z * h
    s = h.sum(axis=1)                               # (B, D)
    logit = s @ params["wc"].T + params["bc"]       # (B, 1)
    return jax.nn.sigmoid(logit)[..., 0]            # (B,)


def ggnn_sum_reference_matched(features, adj, params):
    """Same math with the kernel's operand precision / rounding points
    (reassociated message pass, W_e folded into W_ih in f32, bf16 MXU operands, f32 acc)."""
    B, N, Din = features.shape
    D = OUTPUT_DIM
    E = adj.shape[1]
    h = jnp.concatenate(
        [features, jnp.zeros((B, N, D - Din), features.dtype)], axis=-1).astype(jnp.float32)
    adj_b = adj.astype(jnp.bfloat16)
    m_stack = jnp.stack(
        [(params["wih"] @ params["we"][e]).T for e in range(E)], axis=0).astype(jnp.bfloat16)
    deg = adj.sum(axis=-1)
    a_bias = jnp.einsum("ben,ed->bnd", deg, params["be"])
    gi_bias = jnp.einsum("bnd,kd->bnk", a_bias, params["wih"]) + params["bih"]   # f32
    whh_t = params["whh"].T.astype(jnp.bfloat16)
    for _ in range(NUM_STEPS):
        h_b = h.astype(jnp.bfloat16)
        ah = jnp.einsum("beij,bjd->beid", adj_b, h_b,
                        preferred_element_type=jnp.float32)                      # (B,E,N,D)
        gi = jnp.einsum("beid,edk->bik", ah.astype(jnp.bfloat16), m_stack,
                        preferred_element_type=jnp.float32) + gi_bias            # (B,N,3D)
        gh = jnp.einsum("bnd,dk->bnk", h_b, whh_t,
                        preferred_element_type=jnp.float32) + params["bhh"]
        r = jax.nn.sigmoid(gi[..., 0:D] + gh[..., 0:D])
        z = jax.nn.sigmoid(gi[..., D:2 * D] + gh[..., D:2 * D])
        n = jnp.tanh(gi[..., 2 * D:3 * D] + r * gh[..., 2 * D:3 * D])
        h = (1.0 - z) * n + z * h
    s = h.sum(axis=1)                                                            # (B, D)
    logit = jnp.sum(s * params["wc"], axis=-1) + params["bc"]                    # (B,)
    return jax.nn.sigmoid(logit)


def init_params(key):
    D, E = OUTPUT_DIM, MAX_EDGE_TYPES
    ks = jax.random.split(key, 8)
    bound = 1.0 / (D ** 0.5)

    def uni(k, shape):
        return jax.random.uniform(k, shape, jnp.float32, -bound, bound)

    return {
        "we":  uni(ks[0], (E, D, D)),     # per-edge-type Linear(D, D) weight
        "be":  uni(ks[1], (E, D)),        # per-edge-type Linear bias
        "wih": uni(ks[2], (3 * D, D)),    # GRUCell weight_ih
        "whh": uni(ks[3], (3 * D, D)),    # GRUCell weight_hh
        "bih": uni(ks[4], (3 * D,)),      # GRUCell bias_ih
        "bhh": uni(ks[5], (3 * D,)),      # GRUCell bias_hh
        "wc":  uni(ks[6], (1, D)),        # classifier Linear(D, 1) weight
        "bc":  uni(ks[7], (1,)),          # classifier bias
    }


if __name__ == "__main__":
    key = jax.random.PRNGKey(0)
    kp, kf, ka = jax.random.split(key, 3)

    params = init_params(kp)
    features = jax.random.normal(kf, (BATCH, NUM_NODES, INPUT_DIM), jnp.float32)
    adj = jax.random.bernoulli(
        ka, 0.2, (BATCH, MAX_EDGE_TYPES, NUM_NODES, NUM_NODES)).astype(jnp.float32)

    out = jax.block_until_ready(ggnn_sum_forward(features, adj, params))
    assert out.shape == (BATCH,)

    # Tight check against a reference that uses the kernel's exact rounding points.
    ref_m = jax.block_until_ready(ggnn_sum_reference_matched(features, adj, params))
    assert jnp.allclose(out, ref_m, rtol=2e-3, atol=2e-3), (out, ref_m)

    # Loose sanity check against the pure-f32 module math (bf16 operand rounding only).
    ref_f32 = jax.block_until_ready(ggnn_sum_reference_f32(features, adj, params))
    assert jnp.allclose(out, ref_f32, rtol=5e-2, atol=5e-2), (out, ref_f32)

    print("KERNEL_OK")
</pallas_src>

<mosaic_0001>
module attributes {stable_mosaic.version = 11 : i64} {
  func.func @ggnn_sum_kernel(%arg0: memref<32x32xf32, #tpu.memory_space<vmem>>, %arg1: memref<96x32xbf16, #tpu.memory_space<vmem>>, %arg2: memref<96x96xbf16, #tpu.memory_space<vmem>>, %arg3: memref<32x96xf32, #tpu.memory_space<vmem>>, %arg4: memref<32x96xbf16, #tpu.memory_space<vmem>>, %arg5: memref<1x96xf32, #tpu.memory_space<vmem>>, %arg6: memref<1x32xf32, #tpu.memory_space<vmem>>, %arg7: memref<1x1xf32, #tpu.memory_space<vmem>>, %arg8: memref<2x32xf32, #tpu.memory_space<vmem>>, %arg9: memref<2x1xf32, #tpu.memory_space<vmem>>) attributes {dimension_semantics = [], scalar_prefetch = 0 : i64, scratch_operands = 0 : i64, tpu.core_type = #tpu.core_type<tc>} {
    %c0 = arith.constant 0 : index
    %c0_0 = arith.constant 0 : index
    %0 = vector.load %arg1[%c0, %c0_0] : memref<96x32xbf16, #tpu.memory_space<vmem>>, vector<96x32xbf16>
    %c0_1 = arith.constant 0 : index
    %c0_2 = arith.constant 0 : index
    %1 = vector.load %arg2[%c0_1, %c0_2] : memref<96x96xbf16, #tpu.memory_space<vmem>>, vector<96x96xbf16>
    %c0_3 = arith.constant 0 : index
    %c0_4 = arith.constant 0 : index
    %2 = vector.load %arg3[%c0_3, %c0_4] : memref<32x96xf32, #tpu.memory_space<vmem>>, vector<32x96xf32>
    %c0_5 = arith.constant 0 : index
    %c0_6 = arith.constant 0 : index
    %3 = vector.load %arg4[%c0_5, %c0_6] : memref<32x96xbf16, #tpu.memory_space<vmem>>, vector<32x96xbf16>
    %c0_7 = arith.constant 0 : index
    %c0_8 = arith.constant 0 : index
    %4 = vector.load %arg5[%c0_7, %c0_8] : memref<1x96xf32, #tpu.memory_space<vmem>>, vector<1x96xf32>
    %c0_9 = arith.constant 0 : index
    %c0_10 = arith.constant 0 : index
    %5 = vector.load %arg0[%c0_9, %c0_10] : memref<32x32xf32, #tpu.memory_space<vmem>>, vector<32x32xf32>
    %c0_i32 = arith.constant 0 : i32
    %6 = arith.truncf %5 : vector<32x32xf32> to vector<32x32xbf16>
    %cst = arith.constant dense<0.000000e+00> : vector<96x32xf32>
    %7 = tpu.matmul %0, %6, %cst {dimension_numbers = #tpu.dot_dimension_numbers<[1], [0], [0], [1], [0, 0, 1, 1], [], []>} : vector<96x32xbf16>, vector<32x32xbf16>, vector<96x32xf32> -> vector<96x32xf32>
    %8 = arith.truncf %7 : vector<96x32xf32> to vector<96x32xbf16>
    %cst_11 = arith.constant dense<0.000000e+00> : vector<32x96xf32>
    %9 = tpu.matmul %6, %3, %cst_11 {dimension_numbers = #tpu.dot_dimension_numbers<[1], [0], [0], [1], [0, 0, 1, 1], [], []>} : vector<32x32xbf16>, vector<32x96xbf16>, vector<32x96xf32> -> vector<32x96xf32>
    %10 = vector.broadcast %4 : vector<1x96xf32> to vector<32x96xf32>
    %11 = arith.addf %9, %10 : vector<32x96xf32>
    %12 = vector.extract_strided_slice %8 {offsets = [0, 0], sizes = [32, 32], strides = [1, 1]} : vector<96x32xbf16> to vector<32x32xbf16>
    %13 = vector.extract_strided_slice %1 {offsets = [0, 0], sizes = [32, 96], strides = [1, 1]} : vector<96x96xbf16> to vector<32x96xbf16>
    %cst_12 = arith.constant dense<0.000000e+00> : vector<32x96xf32>
    %14 = tpu.matmul %12, %13, %cst_12 {dimension_numbers = #tpu.dot_dimension_numbers<[1], [0], [0], [1], [0, 0, 1, 1], [], []>} : vector<32x32xbf16>, vector<32x96xbf16>, vector<32x96xf32> -> vector<32x96xf32>
    %15 = arith.addf %2, %14 : vector<32x96xf32>
    %16 = vector.extract_strided_slice %8 {offsets = [32, 0], sizes = [32, 32], strides = [1, 1]} : vector<96x32xbf16> to vector<32x32xbf16>
    %17 = vector.extract_strided_slice %1 {offsets = [32, 0], sizes = [32, 96], strides = [1, 1]} : vector<96x96xbf16> to vector<32x96xbf16>
    %cst_13 = arith.constant dense<0.000000e+00> : vector<32x96xf32>
    %18 = tpu.matmul %16, %17, %cst_13 {dimension_numbers = #tpu.dot_dimension_numbers<[1], [0], [0], [1], [0, 0, 1, 1], [], []>} : vector<32x32xbf16>, vector<32x96xbf16>, vector<32x96xf32> -> vector<32x96xf32>
    %19 = arith.addf %15, %18 : vector<32x96xf32>
    %20 = vector.extract_strided_slice %8 {offsets = [64, 0], sizes = [32, 32], strides = [1, 1]} : vector<96x32xbf16> to vector<32x32xbf16>
    %21 = vector.extract_strided_slice %1 {offsets = [64, 0], sizes = [32, 96], strides = [1, 1]} : vector<96x96xbf16> to vector<32x96xbf16>
    %cst_14 = arith.constant dense<0.000000e+00> : vector<32x96xf32>
    %22 = tpu.matmul %20, %21, %cst_14 {dimension_numbers = #tpu.dot_dimension_numbers<[1], [0], [0], [1], [0, 0, 1, 1], [], []>} : vector<32x32xbf16>, vector<32x96xbf16>, vector<32x96xf32> -> vector<32x96xf32>
    %23 = arith.addf %19, %22 : vector<32x96xf32>
    %24 = vector.extract_strided_slice %23 {offsets = [0, 0], sizes = [32, 64], strides = [1, 1]} : vector<32x96xf32> to vector<32x64xf32>
    %25 = vector.extract_strided_slice %11 {offsets = [0, 0], sizes = [32, 64], strides = [1, 1]} : vector<32x96xf32> to vector<32x64xf32>
    %26 = arith.addf %24, %25 : vector<32x64xf32>
    %27 = arith.negf %26 : vector<32x64xf32>
    %28 = math.exp %27 : vector<32x64xf32>
    %cst_15 = arith.constant 1.000000e+00 : f32
    %29 = vector.broadcast %cst_15 : f32 to vector<32x64xf32>
    %30 = arith.addf %29, %28 : vector<32x64xf32>
    %31 = arith.divf %29, %30 : vector<32x64xf32>
    %32 = vector.extract_strided_slice %31 {offsets = [0, 0], sizes = [32, 32], strides = [1, 1]} : vector<32x64xf32> to vector<32x32xf32>
    %33 = vector.extract_strided_slice %31 {offsets = [0, 32], sizes = [32, 32], strides = [1, 1]} : vector<32x64xf32> to vector<32x32xf32>
    %34 = vector.extract_strided_slice %23 {offsets = [0, 64], sizes = [32, 32], strides = [1, 1]} : vector<32x96xf32> to vector<32x32xf32>
    %35 = vector.extract_strided_slice %11 {offsets = [0, 64], sizes = [32, 32], strides = [1, 1]} : vector<32x96xf32> to vector<32x32xf32>
    %36 = arith.mulf %32, %35 : vector<32x32xf32>
    %37 = arith.addf %34, %36 : vector<32x32xf32>
    %38 = math.tanh %37 : vector<32x32xf32>
    %cst_16 = arith.constant 1.000000e+00 : f32
    %39 = vector.broadcast %cst_16 : f32 to vector<32x32xf32>
    %40 = arith.subf %39, %33 : vector<32x32xf32>
    %41 = arith.mulf %40, %38 : vector<32x32xf32>
    %42 = arith.mulf %33, %5 : vector<32x32xf32>
    %43 = arith.addf %41, %42 : vector<32x32xf32>
    %c1_i32 = arith.constant 1 : i32
    %44 = arith.truncf %43 : vector<32x32xf32> to vector<32x32xbf16>
    %cst_17 = arith.constant dense<0.000000e+00> : vector<96x32xf32>
    %45 = tpu.matmul %0, %44, %cst_17 {dimension_numbers = #tpu.dot_dimension_numbers<[1], [0], [0], [1], [0, 0, 1, 1], [], []>} : vector<96x32xbf16>, vector<32x32xbf16>, vector<96x32xf32> -> vector<96x32xf32>
    %46 = arith.truncf %45 : vector<96x32xf32> to vector<96x32xbf16>
    %cst_18 = arith.constant dense<0.000000e+00> : vector<32x96xf32>
    %47 = tpu.matmul %44, %3, %cst_18 {dimension_numbers = #tpu.dot_dimension_numbers<[1], [0], [0], [1], [0, 0, 1, 1], [], []>} : vector<32x32xbf16>, vector<32x96xbf16>, vector<32x96xf32> -> vector<32x96xf32>
    %48 = vector.broadcast %4 : vector<1x96xf32> to vector<32x96xf32>
    %49 = arith.addf %47, %48 : vector<32x96xf32>
    %50 = vector.extract_strided_slice %46 {offsets = [0, 0], sizes = [32, 32], strides = [1, 1]} : vector<96x32xbf16> to vector<32x32xbf16>
    %51 = vector.extract_strided_slice %1 {offsets = [0, 0], sizes = [32, 96], strides = [1, 1]} : vector<96x96xbf16> to vector<32x96xbf16>
    %cst_19 = arith.constant dense<0.000000e+00> : vector<32x96xf32>
    %52 = tpu.matmul %50, %51, %cst_19 {dimension_numbers = #tpu.dot_dimension_numbers<[1], [0], [0], [1], [0, 0, 1, 1], [], []>} : vector<32x32xbf16>, vector<32x96xbf16>, vector<32x96xf32> -> vector<32x96xf32>
    %53 = arith.addf %2, %52 : vector<32x96xf32>
    %54 = vector.extract_strided_slice %46 {offsets = [32, 0], sizes = [32, 32], strides = [1, 1]} : vector<96x32xbf16> to vector<32x32xbf16>
    %55 = vector.extract_strided_slice %1 {offsets = [32, 0], sizes = [32, 96], strides = [1, 1]} : vector<96x96xbf16> to vector<32x96xbf16>
    %cst_20 = arith.constant dense<0.000000e+00> : vector<32x96xf32>
    %56 = tpu.matmul %54, %55, %cst_20 {dimension_numbers = #tpu.dot_dimension_numbers<[1], [0], [0], [1], [0, 0, 1, 1], [], []>} : vector<32x32xbf16>, vector<32x96xbf16>, vector<32x96xf32> -> vector<32x96xf32>
    %57 = arith.addf %53, %56 : vector<32x96xf32>
    %58 = vector.extract_strided_slice %46 {offsets = [64, 0], sizes = [32, 32], strides = [1, 1]} : vector<96x32xbf16> to vector<32x32xbf16>
    %59 = vector.extract_strided_slice %1 {offsets = [64, 0], sizes = [32, 96], strides = [1, 1]} : vector<96x96xbf16> to vector<32x96xbf16>
    %cst_21 = arith.constant dense<0.000000e+00> : vector<32x96xf32>
    %60 = tpu.matmul %58, %59, %cst_21 {dimension_numbers = #tpu.dot_dimension_numbers<[1], [0], [0], [1], [0, 0, 1, 1], [], []>} : vector<32x32xbf16>, vector<32x96xbf16>, vector<32x96xf32> -> vector<32x96xf32>
    %61 = arith.addf %57, %60 : vector<32x96xf32>
    %62 = vector.extract_strided_slice %61 {offsets = [0, 0], sizes = [32, 64], strides = [1, 1]} : vector<32x96xf32> to vector<32x64xf32>
    %63 = vector.extract_strided_slice %49 {offsets = [0, 0], sizes = [32, 64], strides = [1, 1]} : vector<32x96xf32> to vector<32x64xf32>
    %64 = arith.addf %62, %63 : vector<32x64xf32>
    %65 = arith.negf %64 : vector<32x64xf32>
    %66 = math.exp %65 : vector<32x64xf32>
    %cst_22 = arith.constant 1.000000e+00 : f32
    %67 = vector.broadcast %cst_22 : f32 to vector<32x64xf32>
    %68 = arith.addf %67, %66 : vector<32x64xf32>
    %69 = arith.divf %67, %68 : vector<32x64xf32>
    %70 = vector.extract_strided_slice %69 {offsets = [0, 0], sizes = [32, 32], strides = [1, 1]} : vector<32x64xf32> to vector<32x32xf32>
    %71 = vector.extract_strided_slice %69 {offsets = [0, 32], sizes = [32, 32], strides = [1, 1]} : vector<32x64xf32> to vector<32x32xf32>
    %72 = vector.extract_strided_slice %61 {offsets = [0, 64], sizes = [32, 32], strides = [1, 1]} : vector<32x96xf32> to vector<32x32xf32>
    %73 = vector.extract_strided_slice %49 {offsets = [0, 64], sizes = [32, 32], strides = [1, 1]} : vector<32x96xf32> to vector<32x32xf32>
    %74 = arith.mulf %70, %73 : vector<32x32xf32>
    %75 = arith.addf %72, %74 : vector<32x32xf32>
    %76 = math.tanh %75 : vector<32x32xf32>
    %cst_23 = arith.constant 1.000000e+00 : f32
    %77 = vector.broadcast %cst_23 : f32 to vector<32x32xf32>
    %78 = arith.subf %77, %71 : vector<32x32xf32>
    %79 = arith.mulf %78, %76 : vector<32x32xf32>
    %80 = arith.mulf %71, %43 : vector<32x32xf32>
    %81 = arith.addf %79, %80 : vector<32x32xf32>
    %c2_i32 = arith.constant 2 : i32
    %82 = arith.truncf %81 : vector<32x32xf32> to vector<32x32xbf16>
    %cst_24 = arith.constant dense<0.000000e+00> : vector<96x32xf32>
    %83 = tpu.matmul %0, %82, %cst_24 {dimension_numbers = #tpu.dot_dimension_numbers<[1], [0], [0], [1], [0, 0, 1, 1], [], []>} : vector<96x32xbf16>, vector<32x32xbf16>, vector<96x32xf32> -> vector<96x32xf32>
    %84 = arith.truncf %83 : vector<96x32xf32> to vector<96x32xbf16>
    %cst_25 = arith.constant dense<0.000000e+00> : vector<32x96xf32>
    %85 = tpu.matmul %82, %3, %cst_25 {dimension_numbers = #tpu.dot_dimension_numbers<[1], [0], [0], [1], [0, 0, 1, 1], [], []>} : vector<32x32xbf16>, vector<32x96xbf16>, vector<32x96xf32> -> vector<32x96xf32>
    %86 = vector.broadcast %4 : vector<1x96xf32> to vector<32x96xf32>
    %87 = arith.addf %85, %86 : vector<32x96xf32>
    %88 = vector.extract_strided_slice %84 {offsets = [0, 0], sizes = [32, 32], strides = [1, 1]} : vector<96x32xbf16> to vector<32x32xbf16>
    %89 = vector.extract_strided_slice %1 {offsets = [0, 0], sizes = [32, 96], strides = [1, 1]} : vector<96x96xbf16> to vector<32x96xbf16>
    %cst_26 = arith.constant dense<0.000000e+00> : vector<32x96xf32>
    %90 = tpu.matmul %88, %89, %cst_26 {dimension_numbers = #tpu.dot_dimension_numbers<[1], [0], [0], [1], [0, 0, 1, 1], [], []>} : vector<32x32xbf16>, vector<32x96xbf16>, vector<32x96xf32> -> vector<32x96xf32>
    %91 = arith.addf %2, %90 : vector<32x96xf32>
    %92 = vector.extract_strided_slice %84 {offsets = [32, 0], sizes = [32, 32], strides = [1, 1]} : vector<96x32xbf16> to vector<32x32xbf16>
    %93 = vector.extract_strided_slice %1 {offsets = [32, 0], sizes = [32, 96], strides = [1, 1]} : vector<96x96xbf16> to vector<32x96xbf16>
    %cst_27 = arith.constant dense<0.000000e+00> : vector<32x96xf32>
    %94 = tpu.matmul %92, %93, %cst_27 {dimension_numbers = #tpu.dot_dimension_numbers<[1], [0], [0], [1], [0, 0, 1, 1], [], []>} : vector<32x32xbf16>, vector<32x96xbf16>, vector<32x96xf32> -> vector<32x96xf32>
    %95 = arith.addf %91, %94 : vector<32x96xf32>
    %96 = vector.extract_strided_slice %84 {offsets = [64, 0], sizes = [32, 32], strides = [1, 1]} : vector<96x32xbf16> to vector<32x32xbf16>
    %97 = vector.extract_strided_slice %1 {offsets = [64, 0], sizes = [32, 96], strides = [1, 1]} : vector<96x96xbf16> to vector<32x96xbf16>
    %cst_28 = arith.constant dense<0.000000e+00> : vector<32x96xf32>
    %98 = tpu.matmul %96, %97, %cst_28 {dimension_numbers = #tpu.dot_dimension_numbers<[1], [0], [0], [1], [0, 0, 1, 1], [], []>} : vector<32x32xbf16>, vector<32x96xbf16>, vector<32x96xf32> -> vector<32x96xf32>
    %99 = arith.addf %95, %98 : vector<32x96xf32>
    %100 = vector.extract_strided_slice %99 {offsets = [0, 0], sizes = [32, 64], strides = [1, 1]} : vector<32x96xf32> to vector<32x64xf32>
    %101 = vector.extract_strided_slice %87 {offsets = [0, 0], sizes = [32, 64], strides = [1, 1]} : vector<32x96xf32> to vector<32x64xf32>
    %102 = arith.addf %100, %101 : vector<32x64xf32>
    %103 = arith.negf %102 : vector<32x64xf32>
    %104 = math.exp %103 : vector<32x64xf32>
    %cst_29 = arith.constant 1.000000e+00 : f32
    %105 = vector.broadcast %cst_29 : f32 to vector<32x64xf32>
    %106 = arith.addf %105, %104 : vector<32x64xf32>
    %107 = arith.divf %105, %106 : vector<32x64xf32>
    %108 = vector.extract_strided_slice %107 {offsets = [0, 0], sizes = [32, 32], strides = [1, 1]} : vector<32x64xf32> to vector<32x32xf32>
    %109 = vector.extract_strided_slice %107 {offsets = [0, 32], sizes = [32, 32], strides = [1, 1]} : vector<32x64xf32> to vector<32x32xf32>
    %110 = vector.extract_strided_slice %99 {offsets = [0, 64], sizes = [32, 32], strides = [1, 1]} : vector<32x96xf32> to vector<32x32xf32>
    %111 = vector.extract_strided_slice %87 {offsets = [0, 64], sizes = [32, 32], strides = [1, 1]} : vector<32x96xf32> to vector<32x32xf32>
    %112 = arith.mulf %108, %111 : vector<32x32xf32>
    %113 = arith.addf %110, %112 : vector<32x32xf32>
    %114 = math.tanh %113 : vector<32x32xf32>
    %cst_30 = arith.constant 1.000000e+00 : f32
    %115 = vector.broadcast %cst_30 : f32 to vector<32x32xf32>
    %116 = arith.subf %115, %109 : vector<32x32xf32>
    %117 = arith.mulf %116, %114 : vector<32x32xf32>
    %118 = arith.mulf %109, %81 : vector<32x32xf32>
    %119 = arith.addf %117, %118 : vector<32x32xf32>
    %c3_i32 = arith.constant 3 : i32
    %120 = arith.truncf %119 : vector<32x32xf32> to vector<32x32xbf16>
    %cst_31 = arith.constant dense<0.000000e+00> : vector<96x32xf32>
    %121 = tpu.matmul %0, %120, %cst_31 {dimension_numbers = #tpu.dot_dimension_numbers<[1], [0], [0], [1], [0, 0, 1, 1], [], []>} : vector<96x32xbf16>, vector<32x32xbf16>, vector<96x32xf32> -> vector<96x32xf32>
    %122 = arith.truncf %121 : vector<96x32xf32> to vector<96x32xbf16>
    %cst_32 = arith.constant dense<0.000000e+00> : vector<32x96xf32>
    %123 = tpu.matmul %120, %3, %cst_32 {dimension_numbers = #tpu.dot_dimension_numbers<[1], [0], [0], [1], [0, 0, 1, 1], [], []>} : vector<32x32xbf16>, vector<32x96xbf16>, vector<32x96xf32> -> vector<32x96xf32>
    %124 = vector.broadcast %4 : vector<1x96xf32> to vector<32x96xf32>
    %125 = arith.addf %123, %124 : vector<32x96xf32>
    %126 = vector.extract_strided_slice %122 {offsets = [0, 0], sizes = [32, 32], strides = [1, 1]} : vector<96x32xbf16> to vector<32x32xbf16>
    %127 = vector.extract_strided_slice %1 {offsets = [0, 0], sizes = [32, 96], strides = [1, 1]} : vector<96x96xbf16> to vector<32x96xbf16>
    %cst_33 = arith.constant dense<0.000000e+00> : vector<32x96xf32>
    %128 = tpu.matmul %126, %127, %cst_33 {dimension_numbers = #tpu.dot_dimension_numbers<[1], [0], [0], [1], [0, 0, 1, 1], [], []>} : vector<32x32xbf16>, vector<32x96xbf16>, vector<32x96xf32> -> vector<32x96xf32>
    %129 = arith.addf %2, %128 : vector<32x96xf32>
    %130 = vector.extract_strided_slice %122 {offsets = [32, 0], sizes = [32, 32], strides = [1, 1]} : vector<96x32xbf16> to vector<32x32xbf16>
    %131 = vector.extract_strided_slice %1 {offsets = [32, 0], sizes = [32, 96], strides = [1, 1]} : vector<96x96xbf16> to vector<32x96xbf16>
    %cst_34 = arith.constant dense<0.000000e+00> : vector<32x96xf32>
    %132 = tpu.matmul %130, %131, %cst_34 {dimension_numbers = #tpu.dot_dimension_numbers<[1], [0], [0], [1], [0, 0, 1, 1], [], []>} : vector<32x32xbf16>, vector<32x96xbf16>, vector<32x96xf32> -> vector<32x96xf32>
    %133 = arith.addf %129, %132 : vector<32x96xf32>
    %134 = vector.extract_strided_slice %122 {offsets = [64, 0], sizes = [32, 32], strides = [1, 1]} : vector<96x32xbf16> to vector<32x32xbf16>
    %135 = vector.extract_strided_slice %1 {offsets = [64, 0], sizes = [32, 96], strides = [1, 1]} : vector<96x96xbf16> to vector<32x96xbf16>
    %cst_35 = arith.constant dense<0.000000e+00> : vector<32x96xf32>
    %136 = tpu.matmul %134, %135, %cst_35 {dimension_numbers = #tpu.dot_dimension_numbers<[1], [0], [0], [1], [0, 0, 1, 1], [], []>} : vector<32x32xbf16>, vector<32x96xbf16>, vector<32x96xf32> -> vector<32x96xf32>
    %137 = arith.addf %133, %136 : vector<32x96xf32>
    %138 = vector.extract_strided_slice %137 {offsets = [0, 0], sizes = [32, 64], strides = [1, 1]} : vector<32x96xf32> to vector<32x64xf32>
    %139 = vector.extract_strided_slice %125 {offsets = [0, 0], sizes = [32, 64], strides = [1, 1]} : vector<32x96xf32> to vector<32x64xf32>
    %140 = arith.addf %138, %139 : vector<32x64xf32>
    %141 = arith.negf %140 : vector<32x64xf32>
    %142 = math.exp %141 : vector<32x64xf32>
    %cst_36 = arith.constant 1.000000e+00 : f32
    %143 = vector.broadcast %cst_36 : f32 to vector<32x64xf32>
    %144 = arith.addf %143, %142 : vector<32x64xf32>
    %145 = arith.divf %143, %144 : vector<32x64xf32>
    %146 = vector.extract_strided_slice %145 {offsets = [0, 0], sizes = [32, 32], strides = [1, 1]} : vector<32x64xf32> to vector<32x32xf32>
    %147 = vector.extract_strided_slice %145 {offsets = [0, 32], sizes = [32, 32], strides = [1, 1]} : vector<32x64xf32> to vector<32x32xf32>
    %148 = vector.extract_strided_slice %137 {offsets = [0, 64], sizes = [32, 32], strides = [1, 1]} : vector<32x96xf32> to vector<32x32xf32>
    %149 = vector.extract_strided_slice %125 {offsets = [0, 64], sizes = [32, 32], strides = [1, 1]} : vector<32x96xf32> to vector<32x32xf32>
    %150 = arith.mulf %146, %149 : vector<32x32xf32>
    %151 = arith.addf %148, %150 : vector<32x32xf32>
    %152 = math.tanh %151 : vector<32x32xf32>
    %cst_37 = arith.constant 1.000000e+00 : f32
    %153 = vector.broadcast %cst_37 : f32 to vector<32x32xf32>
    %154 = arith.subf %153, %147 : vector<32x32xf32>
    %155 = arith.mulf %154, %152 : vector<32x32xf32>
    %156 = arith.mulf %147, %119 : vector<32x32xf32>
    %157 = arith.addf %155, %156 : vector<32x32xf32>
    %c4_i32 = arith.constant 4 : i32
    %158 = arith.truncf %157 : vector<32x32xf32> to vector<32x32xbf16>
    %cst_38 = arith.constant dense<0.000000e+00> : vector<96x32xf32>
    %159 = tpu.matmul %0, %158, %cst_38 {dimension_numbers = #tpu.dot_dimension_numbers<[1], [0], [0], [1], [0, 0, 1, 1], [], []>} : vector<96x32xbf16>, vector<32x32xbf16>, vector<96x32xf32> -> vector<96x32xf32>
    %160 = arith.truncf %159 : vector<96x32xf32> to vector<96x32xbf16>
    %cst_39 = arith.constant dense<0.000000e+00> : vector<32x96xf32>
    %161 = tpu.matmul %158, %3, %cst_39 {dimension_numbers = #tpu.dot_dimension_numbers<[1], [0], [0], [1], [0, 0, 1, 1], [], []>} : vector<32x32xbf16>, vector<32x96xbf16>, vector<32x96xf32> -> vector<32x96xf32>
    %162 = vector.broadcast %4 : vector<1x96xf32> to vector<32x96xf32>
    %163 = arith.addf %161, %162 : vector<32x96xf32>
    %164 = vector.extract_strided_slice %160 {offsets = [0, 0], sizes = [32, 32], strides = [1, 1]} : vector<96x32xbf16> to vector<32x32xbf16>
    %165 = vector.extract_strided_slice %1 {offsets = [0, 0], sizes = [32, 96], strides = [1, 1]} : vector<96x96xbf16> to vector<32x96xbf16>
    %cst_40 = arith.constant dense<0.000000e+00> : vector<32x96xf32>
    %166 = tpu.matmul %164, %165, %cst_40 {dimension_numbers = #tpu.dot_dimension_numbers<[1], [0], [0], [1], [0, 0, 1, 1], [], []>} : vector<32x32xbf16>, vector<32x96xbf16>, vector<32x96xf32> -> vector<32x96xf32>
    %167 = arith.addf %2, %166 : vector<32x96xf32>
    %168 = vector.extract_strided_slice %160 {offsets = [32, 0], sizes = [32, 32], strides = [1, 1]} : vector<96x32xbf16> to vector<32x32xbf16>
    %169 = vector.extract_strided_slice %1 {offsets = [32, 0], sizes = [32, 96], strides = [1, 1]} : vector<96x96xbf16> to vector<32x96xbf16>
    %cst_41 = arith.constant dense<0.000000e+00> : vector<32x96xf32>
    %170 = tpu.matmul %168, %169, %cst_41 {dimension_numbers = #tpu.dot_dimension_numbers<[1], [0], [0], [1], [0, 0, 1, 1], [], []>} : vector<32x32xbf16>, vector<32x96xbf16>, vector<32x96xf32> -> vector<32x96xf32>
    %171 = arith.addf %167, %170 : vector<32x96xf32>
    %172 = vector.extract_strided_slice %160 {offsets = [64, 0], sizes = [32, 32], strides = [1, 1]} : vector<96x32xbf16> to vector<32x32xbf16>
    %173 = vector.extract_strided_slice %1 {offsets = [64, 0], sizes = [32, 96], strides = [1, 1]} : vector<96x96xbf16> to vector<32x96xbf16>
    %cst_42 = arith.constant dense<0.000000e+00> : vector<32x96xf32>
    %174 = tpu.matmul %172, %173, %cst_42 {dimension_numbers = #tpu.dot_dimension_numbers<[1], [0], [0], [1], [0, 0, 1, 1], [], []>} : vector<32x32xbf16>, vector<32x96xbf16>, vector<32x96xf32> -> vector<32x96xf32>
    %175 = arith.addf %171, %174 : vector<32x96xf32>
    %176 = vector.extract_strided_slice %175 {offsets = [0, 0], sizes = [32, 64], strides = [1, 1]} : vector<32x96xf32> to vector<32x64xf32>
    %177 = vector.extract_strided_slice %163 {offsets = [0, 0], sizes = [32, 64], strides = [1, 1]} : vector<32x96xf32> to vector<32x64xf32>
    %178 = arith.addf %176, %177 : vector<32x64xf32>
    %179 = arith.negf %178 : vector<32x64xf32>
    %180 = math.exp %179 : vector<32x64xf32>
    %cst_43 = arith.constant 1.000000e+00 : f32
    %181 = vector.broadcast %cst_43 : f32 to vector<32x64xf32>
    %182 = arith.addf %181, %180 : vector<32x64xf32>
    %183 = arith.divf %181, %182 : vector<32x64xf32>
    %184 = vector.extract_strided_slice %183 {offsets = [0, 0], sizes = [32, 32], strides = [1, 1]} : vector<32x64xf32> to vector<32x32xf32>
    %185 = vector.extract_strided_slice %183 {offsets = [0, 32], sizes = [32, 32], strides = [1, 1]} : vector<32x64xf32> to vector<32x32xf32>
    %186 = vector.extract_strided_slice %175 {offsets = [0, 64], sizes = [32, 32], strides = [1, 1]} : vector<32x96xf32> to vector<32x32xf32>
    %187 = vector.extract_strided_slice %163 {offsets = [0, 64], sizes = [32, 32], strides = [1, 1]} : vector<32x96xf32> to vector<32x32xf32>
    %188 = arith.mulf %184, %187 : vector<32x32xf32>
    %189 = arith.addf %186, %188 : vector<32x32xf32>
    %190 = math.tanh %189 : vector<32x32xf32>
    %cst_44 = arith.constant 1.000000e+00 : f32
    %191 = vector.broadcast %cst_44 : f32 to vector<32x32xf32>
    %192 = arith.subf %191, %185 : vector<32x32xf32>
    %193 = arith.mulf %192, %190 : vector<32x32xf32>
    %194 = arith.mulf %185, %157 : vector<32x32xf32>
    %195 = arith.addf %193, %194 : vector<32x32xf32>
    %c5_i32 = arith.constant 5 : i32
    %196 = arith.truncf %195 : vector<32x32xf32> to vector<32x32xbf16>
    %cst_45 = arith.constant dense<0.000000e+00> : vector<96x32xf32>
    %197 = tpu.matmul %0, %196, %cst_45 {dimension_numbers = #tpu.dot_dimension_numbers<[1], [0], [0], [1], [0, 0, 1, 1], [], []>} : vector<96x32xbf16>, vector<32x32xbf16>, vector<96x32xf32> -> vector<96x32xf32>
    %198 = arith.truncf %197 : vector<96x32xf32> to vector<96x32xbf16>
    %cst_46 = arith.constant dense<0.000000e+00> : vector<32x96xf32>
    %199 = tpu.matmul %196, %3, %cst_46 {dimension_numbers = #tpu.dot_dimension_numbers<[1], [0], [0], [1], [0, 0, 1, 1], [], []>} : vector<32x32xbf16>, vector<32x96xbf16>, vector<32x96xf32> -> vector<32x96xf32>
    %200 = vector.broadcast %4 : vector<1x96xf32> to vector<32x96xf32>
    %201 = arith.addf %199, %200 : vector<32x96xf32>
    %202 = vector.extract_strided_slice %198 {offsets = [0, 0], sizes = [32, 32], strides = [1, 1]} : vector<96x32xbf16> to vector<32x32xbf16>
    %203 = vector.extract_strided_slice %1 {offsets = [0, 0], sizes = [32, 96], strides = [1, 1]} : vector<96x96xbf16> to vector<32x96xbf16>
    %cst_47 = arith.constant dense<0.000000e+00> : vector<32x96xf32>
    %204 = tpu.matmul %202, %203, %cst_47 {dimension_numbers = #tpu.dot_dimension_numbers<[1], [0], [0], [1], [0, 0, 1, 1], [], []>} : vector<32x32xbf16>, vector<32x96xbf16>, vector<32x96xf32> -> vector<32x96xf32>
    %205 = arith.addf %2, %204 : vector<32x96xf32>
    %206 = vector.extract_strided_slice %198 {offsets = [32, 0], sizes = [32, 32], strides = [1, 1]} : vector<96x32xbf16> to vector<32x32xbf16>
    %207 = vector.extract_strided_slice %1 {offsets = [32, 0], sizes = [32, 96], strides = [1, 1]} : vector<96x96xbf16> to vector<32x96xbf16>
    %cst_48 = arith.constant dense<0.000000e+00> : vector<32x96xf32>
    %208 = tpu.matmul %206, %207, %cst_48 {dimension_numbers = #tpu.dot_dimension_numbers<[1], [0], [0], [1], [0, 0, 1, 1], [], []>} : vector<32x32xbf16>, vector<32x96xbf16>, vector<32x96xf32> -> vector<32x96xf32>
    %209 = arith.addf %205, %208 : vector<32x96xf32>
    %210 = vector.extract_strided_slice %198 {offsets = [64, 0], sizes = [32, 32], strides = [1, 1]} : vector<96x32xbf16> to vector<32x32xbf16>
    %211 = vector.extract_strided_slice %1 {offsets = [64, 0], sizes = [32, 96], strides = [1, 1]} : vector<96x96xbf16> to vector<32x96xbf16>
    %cst_49 = arith.constant dense<0.000000e+00> : vector<32x96xf32>
    %212 = tpu.matmul %210, %211, %cst_49 {dimension_numbers = #tpu.dot_dimension_numbers<[1], [0], [0], [1], [0, 0, 1, 1], [], []>} : vector<32x32xbf16>, vector<32x96xbf16>, vector<32x96xf32> -> vector<32x96xf32>
    %213 = arith.addf %209, %212 : vector<32x96xf32>
    %214 = vector.extract_strided_slice %213 {offsets = [0, 0], sizes = [32, 64], strides = [1, 1]} : vector<32x96xf32> to vector<32x64xf32>
    %215 = vector.extract_strided_slice %201 {offsets = [0, 0], sizes = [32, 64], strides = [1, 1]} : vector<32x96xf32> to vector<32x64xf32>
    %216 = arith.addf %214, %215 : vector<32x64xf32>
    %217 = arith.negf %216 : vector<32x64xf32>
    %218 = math.exp %217 : vector<32x64xf32>
    %cst_50 = arith.constant 1.000000e+00 : f32
    %219 = vector.broadcast %cst_50 : f32 to vector<32x64xf32>
    %220 = arith.addf %219, %218 : vector<32x64xf32>
    %221 = arith.divf %219, %220 : vector<32x64xf32>
    %222 = vector.extract_strided_slice %221 {offsets = [0, 0], sizes = [32, 32], strides = [1, 1]} : vector<32x64xf32> to vector<32x32xf32>
    %223 = vector.extract_strided_slice %221 {offsets = [0, 32], sizes = [32, 32], strides = [1, 1]} : vector<32x64xf32> to vector<32x32xf32>
    %224 = vector.extract_strided_slice %213 {offsets = [0, 64], sizes = [32, 32], strides = [1, 1]} : vector<32x96xf32> to vector<32x32xf32>
    %225 = vector.extract_strided_slice %201 {offsets = [0, 64], sizes = [32, 32], strides = [1, 1]} : vector<32x96xf32> to vector<32x32xf32>
    %226 = arith.mulf %222, %225 : vector<32x32xf32>
    %227 = arith.addf %224, %226 : vector<32x32xf32>
    %228 = math.tanh %227 : vector<32x32xf32>
    %cst_51 = arith.constant 1.000000e+00 : f32
    %229 = vector.broadcast %cst_51 : f32 to vector<32x32xf32>
    %230 = arith.subf %229, %223 : vector<32x32xf32>
    %231 = arith.mulf %230, %228 : vector<32x32xf32>
    %232 = arith.mulf %223, %195 : vector<32x32xf32>
    %233 = arith.addf %231, %232 : vector<32x32xf32>
    %c6_i32 = arith.constant 6 : i32
    %234 = arith.truncf %233 : vector<32x32xf32> to vector<32x32xbf16>
    %cst_52 = arith.constant dense<0.000000e+00> : vector<96x32xf32>
    %235 = tpu.matmul %0, %234, %cst_52 {dimension_numbers = #tpu.dot_dimension_numbers<[1], [0], [0], [1], [0, 0, 1, 1], [], []>} : vector<96x32xbf16>, vector<32x32xbf16>, vector<96x32xf32> -> vector<96x32xf32>
    %236 = arith.truncf %235 : vector<96x32xf32> to vector<96x32xbf16>
    %cst_53 = arith.constant dense<0.000000e+00> : vector<32x96xf32>
    %237 = tpu.matmul %234, %3, %cst_53 {dimension_numbers = #tpu.dot_dimension_numbers<[1], [0], [0], [1], [0, 0, 1, 1], [], []>} : vector<32x32xbf16>, vector<32x96xbf16>, vector<32x96xf32> -> vector<32x96xf32>
    %238 = vector.broadcast %4 : vector<1x96xf32> to vector<32x96xf32>
    %239 = arith.addf %237, %238 : vector<32x96xf32>
    %240 = vector.extract_strided_slice %236 {offsets = [0, 0], sizes = [32, 32], strides = [1, 1]} : vector<96x32xbf16> to vector<32x32xbf16>
    %241 = vector.extract_strided_slice %1 {offsets = [0, 0], sizes = [32, 96], strides = [1, 1]} : vector<96x96xbf16> to vector<32x96xbf16>
    %cst_54 = arith.constant dense<0.000000e+00> : vector<32x96xf32>
    %242 = tpu.matmul %240, %241, %cst_54 {dimension_numbers = #tpu.dot_dimension_numbers<[1], [0], [0], [1], [0, 0, 1, 1], [], []>} : vector<32x32xbf16>, vector<32x96xbf16>, vector<32x96xf32> -> vector<32x96xf32>
    %243 = arith.addf %2, %242 : vector<32x96xf32>
    %244 = vector.extract_strided_slice %236 {offsets = [32, 0], sizes = [32, 32], strides = [1, 1]} : vector<96x32xbf16> to vector<32x32xbf16>
    %245 = vector.extract_strided_slice %1 {offsets = [32, 0], sizes = [32, 96], strides = [1, 1]} : vector<96x96xbf16> to vector<32x96xbf16>
    %cst_55 = arith.constant dense<0.000000e+00> : vector<32x96xf32>
    %246 = tpu.matmul %244, %245, %cst_55 {dimension_numbers = #tpu.dot_dimension_numbers<[1], [0], [0], [1], [0, 0, 1, 1], [], []>} : vector<32x32xbf16>, vector<32x96xbf16>, vector<32x96xf32> -> vector<32x96xf32>
    %247 = arith.addf %243, %246 : vector<32x96xf32>
    %248 = vector.extract_strided_slice %236 {offsets = [64, 0], sizes = [32, 32], strides = [1, 1]} : vector<96x32xbf16> to vector<32x32xbf16>
    %249 = vector.extract_strided_slice %1 {offsets = [64, 0], sizes = [32, 96], strides = [1, 1]} : vector<96x96xbf16> to vector<32x96xbf16>
    %cst_56 = arith.constant dense<0.000000e+00> : vector<32x96xf32>
    %250 = tpu.matmul %248, %249, %cst_56 {dimension_numbers = #tpu.dot_dimension_numbers<[1], [0], [0], [1], [0, 0, 1, 1], [], []>} : vector<32x32xbf16>, vector<32x96xbf16>, vector<32x96xf32> -> vector<32x96xf32>
    %251 = arith.addf %247, %250 : vector<32x96xf32>
    %252 = vector.extract_strided_slice %251 {offsets = [0, 0], sizes = [32, 64], strides = [1, 1]} : vector<32x96xf32> to vector<32x64xf32>
    %253 = vector.extract_strided_slice %239 {offsets = [0, 0], sizes = [32, 64], strides = [1, 1]} : vector<32x96xf32> to vector<32x64xf32>
    %254 = arith.addf %252, %253 : vector<32x64xf32>
    %255 = arith.negf %254 : vector<32x64xf32>
    %256 = math.exp %255 : vector<32x64xf32>
    %cst_57 = arith.constant 1.000000e+00 : f32
    %257 = vector.broadcast %cst_57 : f32 to vector<32x64xf32>
    %258 = arith.addf %257, %256 : vector<32x64xf32>
    %259 = arith.divf %257, %258 : vector<32x64xf32>
    %260 = vector.extract_strided_slice %259 {offsets = [0, 0], sizes = [32, 32], strides = [1, 1]} : vector<32x64xf32> to vector<32x32xf32>
    %261 = vector.extract_strided_slice %259 {offsets = [0, 32], sizes = [32, 32], strides = [1, 1]} : vector<32x64xf32> to vector<32x32xf32>
    %262 = vector.extract_strided_slice %251 {offsets = [0, 64], sizes = [32, 32], strides = [1, 1]} : vector<32x96xf32> to vector<32x32xf32>
    %263 = vector.extract_strided_slice %239 {offsets = [0, 64], sizes = [32, 32], strides = [1, 1]} : vector<32x96xf32> to vector<32x32xf32>
    %264 = arith.mulf %260, %263 : vector<32x32xf32>
    %265 = arith.addf %262, %264 : vector<32x32xf32>
    %266 = math.tanh %265 : vector<32x32xf32>
    %cst_58 = arith.constant 1.000000e+00 : f32
    %267 = vector.broadcast %cst_58 : f32 to vector<32x32xf32>
    %268 = arith.subf %267, %261 : vector<32x32xf32>
    %269 = arith.mulf %268, %266 : vector<32x32xf32>
    %270 = arith.mulf %261, %233 : vector<32x32xf32>
    %271 = arith.addf %269, %270 : vector<32x32xf32>
    %c7_i32 = arith.constant 7 : i32
    %272 = arith.truncf %271 : vector<32x32xf32> to vector<32x32xbf16>
    %cst_59 = arith.constant dense<0.000000e+00> : vector<96x32xf32>
    %273 = tpu.matmul %0, %272, %cst_59 {dimension_numbers = #tpu.dot_dimension_numbers<[1], [0], [0], [1], [0, 0, 1, 1], [], []>} : vector<96x32xbf16>, vector<32x32xbf16>, vector<96x32xf32> -> vector<96x32xf32>
    %274 = arith.truncf %273 : vector<96x32xf32> to vector<96x32xbf16>
    %cst_60 = arith.constant dense<0.000000e+00> : vector<32x96xf32>
    %275 = tpu.matmul %272, %3, %cst_60 {dimension_numbers = #tpu.dot_dimension_numbers<[1], [0], [0], [1], [0, 0, 1, 1], [], []>} : vector<32x32xbf16>, vector<32x96xbf16>, vector<32x96xf32> -> vector<32x96xf32>
    %276 = vector.broadcast %4 : vector<1x96xf32> to vector<32x96xf32>
    %277 = arith.addf %275, %276 : vector<32x96xf32>
    %278 = vector.extract_strided_slice %274 {offsets = [0, 0], sizes = [32, 32], strides = [1, 1]} : vector<96x32xbf16> to vector<32x32xbf16>
    %279 = vector.extract_strided_slice %1 {offsets = [0, 0], sizes = [32, 96], strides = [1, 1]} : vector<96x96xbf16> to vector<32x96xbf16>
    %cst_61 = arith.constant dense<0.000000e+00> : vector<32x96xf32>
    %280 = tpu.matmul %278, %279, %cst_61 {dimension_numbers = #tpu.dot_dimension_numbers<[1], [0], [0], [1], [0, 0, 1, 1], [], []>} : vector<32x32xbf16>, vector<32x96xbf16>, vector<32x96xf32> -> vector<32x96xf32>
    %281 = arith.addf %2, %280 : vector<32x96xf32>
    %282 = vector.extract_strided_slice %274 {offsets = [32, 0], sizes = [32, 32], strides = [1, 1]} : vector<96x32xbf16> to vector<32x32xbf16>
    %283 = vector.extract_strided_slice %1 {offsets = [32, 0], sizes = [32, 96], strides = [1, 1]} : vector<96x96xbf16> to vector<32x96xbf16>
    %cst_62 = arith.constant dense<0.000000e+00> : vector<32x96xf32>
    %284 = tpu.matmul %282, %283, %cst_62 {dimension_numbers = #tpu.dot_dimension_numbers<[1], [0], [0], [1], [0, 0, 1, 1], [], []>} : vector<32x32xbf16>, vector<32x96xbf16>, vector<32x96xf32> -> vector<32x96xf32>
    %285 = arith.addf %281, %284 : vector<32x96xf32>
    %286 = vector.extract_strided_slice %274 {offsets = [64, 0], sizes = [32, 32], strides = [1, 1]} : vector<96x32xbf16> to vector<32x32xbf16>
    %287 = vector.extract_strided_slice %1 {offsets = [64, 0], sizes = [32, 96], strides = [1, 1]} : vector<96x96xbf16> to vector<32x96xbf16>
    %cst_63 = arith.constant dense<0.000000e+00> : vector<32x96xf32>
    %288 = tpu.matmul %286, %287, %cst_63 {dimension_numbers = #tpu.dot_dimension_numbers<[1], [0], [0], [1], [0, 0, 1, 1], [], []>} : vector<32x32xbf16>, vector<32x96xbf16>, vector<32x96xf32> -> vector<32x96xf32>
    %289 = arith.addf %285, %288 : vector<32x96xf32>
    %290 = vector.extract_strided_slice %289 {offsets = [0, 0], sizes = [32, 64], strides = [1, 1]} : vector<32x96xf32> to vector<32x64xf32>
    %291 = vector.extract_strided_slice %277 {offsets = [0, 0], sizes = [32, 64], strides = [1, 1]} : vector<32x96xf32> to vector<32x64xf32>
    %292 = arith.addf %290, %291 : vector<32x64xf32>
    %293 = arith.negf %292 : vector<32x64xf32>
    %294 = math.exp %293 : vector<32x64xf32>
    %cst_64 = arith.constant 1.000000e+00 : f32
    %295 = vector.broadcast %cst_64 : f32 to vector<32x64xf32>
    %296 = arith.addf %295, %294 : vector<32x64xf32>
    %297 = arith.divf %295, %296 : vector<32x64xf32>
    %298 = vector.extract_strided_slice %297 {offsets = [0, 0], sizes = [32, 32], strides = [1, 1]} : vector<32x64xf32> to vector<32x32xf32>
    %299 = vector.extract_strided_slice %297 {offsets = [0, 32], sizes = [32, 32], strides = [1, 1]} : vector<32x64xf32> to vector<32x32xf32>
    %300 = vector.extract_strided_slice %289 {offsets = [0, 64], sizes = [32, 32], strides = [1, 1]} : vector<32x96xf32> to vector<32x32xf32>
    %301 = vector.extract_strided_slice %277 {offsets = [0, 64], sizes = [32, 32], strides = [1, 1]} : vector<32x96xf32> to vector<32x32xf32>
    %302 = arith.mulf %298, %301 : vector<32x32xf32>
    %303 = arith.addf %300, %302 : vector<32x32xf32>
    %304 = math.tanh %303 : vector<32x32xf32>
    %cst_65 = arith.constant 1.000000e+00 : f32
    %305 = vector.broadcast %cst_65 : f32 to vector<32x32xf32>
    %306 = arith.subf %305, %299 : vector<32x32xf32>
    %307 = arith.mulf %306, %304 : vector<32x32xf32>
    %308 = arith.mulf %299, %271 : vector<32x32xf32>
    %309 = arith.addf %307, %308 : vector<32x32xf32>
    %c0_66 = arith.constant 0 : index
    %c0_67 = arith.constant 0 : index
    %310 = vector.load %arg8[%c0_66, %c0_67] : memref<2x32xf32, #tpu.memory_space<vmem>>, vector<2x32xf32>
    %cst_68 = arith.constant dense<0.000000e+00> : vector<2x32xf32>
    %311 = tpu.matmul %310, %309, %cst_68 {dimension_numbers = #tpu.dot_dimension_numbers<[1], [0], [0], [1], [0, 0, 1, 1], [], []>} : vector<2x32xf32>, vector<32x32xf32>, vector<2x32xf32> -> vector<2x32xf32>
    %c0_69 = arith.constant 0 : index
    %c0_70 = arith.constant 0 : index
    %312 = vector.load %arg6[%c0_69, %c0_70] : memref<1x32xf32, #tpu.memory_space<vmem>>, vector<1x32xf32>
    %313 = vector.broadcast %312 : vector<1x32xf32> to vector<2x32xf32>
    %314 = arith.mulf %311, %313 : vector<2x32xf32>
    %cst_71 = arith.constant dense<0.000000e+00> : vector<2xf32>
    %315 = vector.multi_reduction <add>, %314, %cst_71 [1] : vector<2x32xf32> to vector<2xf32>
    %316 = vector.shape_cast %315 : vector<2xf32> to vector<2x1xf32>
    %c0_72 = arith.constant 0 : index
    %c0_73 = arith.constant 0 : index
    %317 = vector.load %arg7[%c0_72, %c0_73] : memref<1x1xf32, #tpu.memory_space<vmem>>, vector<1x1xf32>
    %318 = vector.broadcast %317 : vector<1x1xf32> to vector<2x1xf32>
    %319 = arith.addf %316, %318 : vector<2x1xf32>
    %320 = arith.negf %319 : vector<2x1xf32>
    %321 = math.exp %320 : vector<2x1xf32>
    %cst_74 = arith.constant 1.000000e+00 : f32
    %322 = vector.broadcast %cst_74 : f32 to vector<2x1xf32>
    %323 = arith.addf %322, %321 : vector<2x1xf32>
    %324 = arith.divf %322, %323 : vector<2x1xf32>
    %c0_75 = arith.constant 0 : index
    %c0_76 = arith.constant 0 : index
    %325 = vector.load %arg9[%c0_75, %c0_76] : memref<2x1xf32, #tpu.memory_space<vmem>>, vector<2x1xf32>
    tpu.vector_store %arg9[%c0_75, %c0_76], %324 {strides = array<i32>} : memref<2x1xf32, #tpu.memory_space<vmem>>, vector<2x1xf32>,
    return
  }
}

</mosaic_0001>

<bundles_post_ra>
// kernel: tpu_custom_call.1
= control target key start
LH: loop header
LB: loop body
LE: loop exit
PB: predicated region body
PF: predicated region fallthrough
CT: control target
= control target key end

     0   :  { %s5829_s0 = inlined_call_operand.hbm [shape: f32[32,32], index: 0, kind: input, shape index: {}]   ;;  %s5830_s1 = inlined_call_operand.vmem [shape: bf16[96,32], index: 1, kind: input, shape index: {}]   ;;  %s5831_s2 = inlined_call_operand.vmem [shape: bf16[96,96], index: 2, kind: input, shape index: {}]   ;;  %s5832_s3 = inlined_call_operand.hbm [shape: f32[32,96], index: 3, kind: input, shape index: {}]   ;;  %s5833_s4 = inlined_call_operand.vmem [shape: bf16[32,96], index: 4, kind: input, shape index: {}]   ;;  %s5834_s5 = inlined_call_operand.vmem [shape: f32[1,96], index: 5, kind: input, shape index: {}]   ;;  %s5835_s6 = inlined_call_operand.vmem [shape: f32[1,32], index: 6, kind: input, shape index: {}]   ;;  %s5836_s7 = inlined_call_operand.<no memory space> [shape: f32[1,1], index: 7, kind: input, shape index: {}]   ;;  %s5837_s8 = inlined_call_operand.vmem [shape: f32[2,32], index: 8, kind: input, shape index: {}]   ;;  %s5838_s9 = inlined_call_operand.vmem [shape: f32[2,1], index: 9, kind: output, shape index: {}]  }
   0x1   :  { %v14_v0 = vstv %s5836_s7 }
   0x2   :  { %15 = vst [vmem:[#allocation2] sm:$0x1] %v14_v0 }
   0x3   :  { %16 = vsyncpa [#allocation4], 0 }
   0x4   :  { %17 = vsyncpa [#allocation6], 0  ;;  %s4855_s11 = smov [#allocation3]  }
   0x5   :  { %s23_s12 = sshll.u32 %s4855_s11, 4  ;;  %s24_s12 = int_to_ptr.vmem [resolvable:$true] %s23_s12 }
   0x6   :  { %s4819_s13 = scalar_lea.vmem %s24_s12, 512  ;;  %p4824_p1 = scmp.lt.s32.totalorder %s24_s12, %s24_s12 }
   0x7   :  { %p4820_p0 = scmp.ne.s32.totalorder %s24_s12, %s4819_s13  ;;  %p4825_p2 = scmp.lt.s32.totalorder %s4819_s13, %s4819_s13 }
   0x9   :  { %p4826_p3 = por %p4825_p2, %p4824_p1 }
   0xb   :  { %p4827_p4 = pnand %p4826_p3, %p4820_p0 }
   0xd   :  { %4830 = shalt.err (!%p4827_p4)
}
   0xe   :  { %s4856_s14 = smov 128   ;;  %s4857_s15 = smov 8  }
   0xf   :  { %29 = dma.hbm_to_vmem [thread:$0]  %s5829_s0, 512, %s24_s12, [#allocation4], %s4856_s14, %s4856_s14, %s4857_s15  }
  0x10   :  { %s4858_s7 = smov [#allocation5]  }
  0x11   :  { %s39_s18 = sshll.u32 %s4858_s7, 4  ;;  %s40_s18 = int_to_ptr.vmem [resolvable:$true] %s39_s18 }
  0x12   :  { %s4839_s19 = scalar_lea.vmem %s40_s18, 512  ;;  %p4844_p6 = scmp.lt.s32.totalorder %s40_s18, %s40_s18 }
  0x13   :  { %p4840_p5 = scmp.ne.s32.totalorder %s40_s18, %s4839_s19  ;;  %p4845_p7 = scmp.lt.s32.totalorder %s4839_s19, %s4839_s19 }
  0x15   :  { %p4846_p8 = por %p4845_p7, %p4844_p6 }
  0x17   :  { %p4847_p9 = pnand %p4846_p8, %p4840_p5 }
  0x19   :  { %4850 = shalt.err (!%p4847_p9)
}
  0x1a   :  { %45 = dma.hbm_to_vmem [thread:$0]  %s5832_s3, 512, %s40_s18, [#allocation6], %s4856_s14, %s4856_s14, %s4857_s15  }
  0x1b   :  { %4851 = dma.done.wait [#allocation4], 512  }
  0x1c   :  { %4852 = vsyncadd [#allocation4], 4294966784 }
  0x1d   :  { %4853 = dma.done.wait [#allocation6], 512  }
  0x1e   :  { %4854 = vsyncadd [#allocation6], 4294966784  ;;  %v4923_v1 = vld [vmem:[#allocation3 + $0x10] sm:$0xff]  ;;  %v4925_v2 = vld [vmem:[#allocation3 + $0x18] sm:$0xff]  ;;  %vm132_vm0 = vcmask 261120   ;;  %s4859_s26 = smov 64  }
  0x1f   :  { %v4927_v3 = vld [vmem:[#allocation3] sm:$0xff]  ;;  %v101_v4 = vpack.c.bf16 %v4925_v2, %v4923_v1  ;;  %v4931_v5 = vld [vmem:[#allocation3 + $0x8] sm:$0xff]  ;;  %v4973_v12 = vld [vmem:[%s5830_s1 + $0x18] sm:$0xff]   ;;  %s4860_s27 = smov 32   ;;  %s4861_s28 = smov 96   ;;  %vm4863_vm1 = vmmov 0  }
  0x20   :  { %v100_v6 = vpack.c.bf16 %v4931_v5, %v4927_v3  ;;  %v4938_v7 = vld [vmem:[%s5830_s1] sm:$0xff]   ;;  %v4946_v8 = vld [vmem:[%s5830_s1 + $0x8] sm:$0xff]   ;;  %v4951_v9 = vld [vmem:[%s5830_s1 + $0x10] sm:$0xff]   ;;  %vm3773_vm2 = vcmask 254976   ;;  %vm3791_vm3 = vcmask 1024  }
  0x21   :  { %4159 = vmatprep.subr.bf16.mxu0 %v101_v4  ;;  %4163 = vmatprep.mubr.msk.bf16.mxu0 %vm132_vm0, %v4938_v7  ;;  %v4956_v10 = vld [vmem:[%s5833_s4 + $0x8] sm:$0xff]   ;;  %v4961_v11 = vld [vmem:[%s5833_s4] sm:$0xff]   ;;  %v5017_v18 = vld [vmem:[%s5831_s2 + $0x18] sm:$0xff]  }
  0x22   :  { %4160 = vmatpush3.bf16.msra.mxu0 %v101_v4  ;;  %4179 = vmatprep.mubr.msk.bf16.mxu1 %vm132_vm0, %v100_v6  ;;  %v4979_v13 = vld [vmem:[%s5830_s1 + $0x20] sm:$0xff]   ;;  %v4989_v14 = vld [vmem:[%s5830_s1 + $0x28] sm:$0xff]   ;;  %v5036_v29 = vld [vmem:[%s5831_s2 + $0x10] sm:$0xff]  }
  0x23   :  { %4161 = vmatprep.subr.bf16.mxu0 %v100_v6  ;;  %4175 = vmatprep.subr.bf16.mxu1 %v4956_v10  ;;  %v4996_v15 = vld [vmem:[%s5831_s2 + $0x8] sm:$0xff]   ;;  %v5009_v17 = vld [vmem:[%s5831_s2] sm:$0xff]   ;;  %v5061_v53 = vld [vmem:[#allocation5 + $0x10] sm:$0xff] }
  0x24   :  { %4176 = vmatpush3.bf16.msra.mxu1 %v4956_v10  ;;  %v5002_v16 = vld [vmem:[%s5831_s2 + $0x28] sm:$0xff]   ;;  %v5023_v19 = vld [vmem:[%s5831_s2 + $0x20] sm:$0xff]  }
  0x25   :  { %4177 = vmatprep.subr.bf16.mxu1 %v4961_v11  ;;  %v5031_v23 = vld [vmem:[%s5834_s5] ss:$0 sm:$0xff]  ;;  %v5063_v55 = vld [vmem:[#allocation5] sm:$0xff]  ;;  %v5069_v61 = vld [vmem:[#allocation5 + $0x8] sm:$0xff] }
  0x26   :  { %4162 = vmatpush3.bf16.msra.mxu0 %v100_v6  ;;  %v5066_v57 = vld [vmem:[#allocation5 + $0x18] sm:$0xff] }
  0x27   :  { %4199 = vmatprep.subr.bf16.mxu0 %v5002_v16 }
  0x28   :  { %4178 = vmatpush3.bf16.msra.mxu1 %v4961_v11 }
  0x29   :  { %4164 = vmatmul.mubr.msk.bf16.vlgmr.msra.gmra.mxu0 %vm132_vm0, %v4946_v8  ;;  %4183 = vmatprep.subr.bf16.mxu1 %v4996_v15 }
  0x2a   :  { %4167 = vmatprep.mubr.msk.bf16.mxu0 %vm132_vm0, %v4951_v9  ;;  %4200 = vmatpush3.bf16.msra.mxu0 %v5002_v16 }
  0x2b   :  { %4180 = vmatmul.mubr.msk.bf16.vlgmr.msra.gmra.mxu1 %vm132_vm0, %v101_v4  ;;  %4201 = vmatprep.subr.bf16.mxu0 %v5023_v19 }
  0x2c   :  { %4184 = vmatpush3.bf16.msra.mxu1 %v4996_v15 }
  0x2d   :  { %4185 = vmatprep.subr.bf16.mxu1 %v5009_v17 }
  0x2e   :  { %4202 = vmatpush3.bf16.msra.mxu0 %v5023_v19 }
  0x2f   :  { %4223 = vmatprep.subr.bf16.mxu0 %v4956_v10 }
  0x30   :  { %4186 = vmatpush3.bf16.msra.mxu1 %v5009_v17 }
  0x31   :  { %4168 = vmatmul.mubr.msk.bf16.gmra.mxu0 %vm132_vm0, %v4973_v12  ;;  %4191 = vmatprep.subr.bf16.mxu1 %v5017_v18 }
  0x32   :  { %4171 = vmatprep.mubr.msk.bf16.mxu0 %vm132_vm0, %v4979_v13 }
  0x39   :  { %4172 = vmatmul.mubr.msk.bf16.gmra.mxu0 %vm132_vm0, %v4989_v14 }
  0xe9   :  { %v4165_v20 = vpop.f32.mrf.mxu0 }
  0xeb   :  { %v185_v21 = vpop.f32.mrf.mxu0  ;;  %v4181_v26 = vpop.f32.mrf.mxu1 }
  0xec   :  { %v305_v30 = vadd.f32 %v4181_v26, %v5031_v23 }
  0xed   :  { %v4166_v22 = vpop.f32.mrf.mxu0  ;;  %v296_v31 = vpop.f32.mrf.mxu1 }
  0xee   :  { %v233_v27 = vpack.c.bf16 %v4166_v22, %v4165_v20  ;;  %v297_v33 = vadd.f32 %v5031_v23, %v296_v31  ;;  %560 = vrot.lane.b32.xlu0 %v305_v30, %s4859_s26 }
  0xef   :  { %v188_v24 = vpop.f32.mrf.mxu0  ;;  %v4182_v34 = vpop.f32.mrf.mxu1 }
  0xf0   :  { %v232_v25 = vpack.c.bf16 %v188_v24, %v185_v21  ;;  %v308_v36 = vadd.f32 %v4182_v34, %v5031_v23  ;;  %556 = vrot.lane.b32.xlu1 %v297_v33, %s4859_s26 }
  0xf1   :  { %v4169_v28 = vpop.f32.mrf.mxu0  ;;  %v299_v37 = vpop.f32.mrf.mxu1 }
  0xf2   :  { %4187 = vmatprep.mubr.msk.bf16.mxu1 %vm132_vm0, %v232_v25  ;;  %v300_v39 = vadd.f32 %v5031_v23, %v299_v37  ;;  %562 = vrot.lane.b32.xlu0 %v308_v36, %s4859_s26 }
  0xf3   :  { %v201_v32 = vpop.f32.mrf.mxu0  ;;  %4188 = vmatmul.mubr.msk.bf16.vlgmr.msra.gmra.mxu1 %vm132_vm0, %v233_v27 }
  0xf4   :  { %4192 = vmatpush3.bf16.msra.mxu1 %v5017_v18  ;;  %558 = vrot.lane.b32.xlu1 %v300_v39, %s4859_s26 }
  0xf5   :  { %v4170_v35 = vpop.f32.mrf.mxu0  ;;  %4193 = vmatprep.subr.bf16.mxu1 %v5036_v29 }
  0xf6   :  { %v235_v41 = vpack.c.bf16 %v4170_v35, %v4169_v28 }
  0xf7   :  { %v204_v38 = vpop.f32.mrf.mxu0 }
  0xf8   :  { %v234_v40 = vpack.c.bf16 %v204_v38, %v201_v32  ;;  %4194 = vmatpush3.bf16.msra.mxu1 %v5036_v29 }
  0xf9   :  { %v4173_v42 = vpop.f32.mrf.mxu0 }
  0xfa   :  { %4195 = vmatprep.mubr.msk.bf16.mxu1 %vm132_vm0, %v234_v40 }
  0xfb   :  { %v217_v43 = vpop.f32.mrf.mxu0  ;;  %4196 = vmatmul.mubr.msk.bf16.vlgmr.msra.gmra.mxu1 %vm132_vm0, %v235_v41 }
  0xfc   :  { %4211 = vmatprep.mubr.msk.bf16.mxu1 %vm132_vm0, %v4938_v7 }
  0xfd   :  { %v4174_v44 = vpop.f32.mrf.mxu0 }
  0xfe   :  { %v237_v47 = vpack.c.bf16 %v4174_v44, %v4173_v42 }
  0xff   :  { %v220_v45 = vpop.f32.mrf.mxu0 }
 0x100   :  { %v236_v46 = vpack.c.bf16 %v220_v45, %v217_v43 }
 0x102   :  { %4203 = vmatprep.mubr.msk.bf16.mxu0 %vm132_vm0, %v236_v46 }
 0x103   :  { %4204 = vmatmul.mubr.msk.bf16.vlgmr.msra.gmra.mxu0 %vm132_vm0, %v237_v47 }
 0x104   :  { %4224 = vmatpush3.bf16.msra.mxu0 %v4956_v10 }
 0x105   :  { %4225 = vmatprep.subr.bf16.mxu0 %v4961_v11 }
 0x108   :  { %4226 = vmatpush3.bf16.msra.mxu0 %v4961_v11 }
 0x109   :  { %4231 = vmatprep.subr.bf16.mxu0 %v4996_v15 }
 0x1b3   :  { %v4189_v48 = vpop.f32.mrf.mxu1 }
 0x1b4   :  { %v380_v56 = vadd.f32 %v4189_v48, %v5061_v53 }
 0x1b5   :  { %v363_v49 = vpop.f32.mrf.mxu1 }
 0x1b6   :  { %v378_v59 = vadd.f32 %v363_v49, %v5063_v55 }
 0x1b7   :  { %v4190_v50 = vpop.f32.mrf.mxu1 }
 0x1b8   :  { %v381_v63 = vadd.f32 %v4190_v50, %v5066_v57 }
 0x1b9   :  { %v366_v51 = vpop.f32.mrf.mxu1 }
 0x1ba   :  { %v379_v21 = vadd.f32 %v366_v51, %v5069_v61 }
 0x1bb   :  { %v4197_v52 = vpop.f32.mrf.mxu1 }
 0x1bc   :  { %v451_v60 = vadd.f32 %v4197_v52, %v380_v56 }
 0x1bd   :  { %v434_v54 = vpop.f32.mrf.mxu1 }
 0x1be   :  { %v449_v0 = vadd.f32 %v434_v54, %v378_v59 }
 0x1bf   :  { %v4198_v58 = vpop.f32.mrf.mxu1 }
 0x1c0   :  { %v452_v22 = vadd.f32 %v4198_v58, %v381_v63 }
 0x1c1   :  { %v437_v6 = vpop.f32.mrf.mxu1 }
 0x1c2   :  { %v450_v27 = vadd.f32 %v437_v6, %v379_v21 }
 0x1c3   :  { %v4205_v62 = vpop.f32.mrf.mxu0 }
 0x1c4   :  { %v522_v4 = vadd.f32 %v4205_v62, %v451_v60 }
 0x1c5   :  { %v505_v20 = vpop.f32.mrf.mxu0 }
 0x1c6   :  { %v526_v24 = vadd.f32 %v522_v4, %v305_v30  ;;  %v520_v25 = vadd.f32 %v505_v20, %v449_v0 }
 0x1c7   :  { %v4206_v26 = vpop.f32.mrf.mxu0 }
 0x1c8   :  { %v3830_v28 = vmul.f32 -1.442695, %v526_v24  ;;  %v524_v31 = vadd.f32 %v520_v25, %v297_v33  ;;  %v523_v32 = vadd.f32 %v4206_v26, %v452_v22 }
 0x1c9   :  { %v508_v34 = vpop.f32.mrf.mxu0 }
 0x1ca   :  { %4577 = vpow2.f32 %v3830_v28  ;;  %v3828_v35 = vmul.f32 -1.442695, %v524_v31  ;;  %v527_v37 = vadd.f32 %v523_v32, %v308_v36  ;;  %v521_v38 = vadd.f32 %v508_v34, %v450_v27  ;;  %v561_v36 = vpop.permute.xlu0 %560 }
 0x1cc   :  { %4579 = vpow2.f32 %v3828_v35  ;;  %v3831_v40 = vmul.f32 -1.442695, %v527_v37  ;;  %v525_v41 = vadd.f32 %v521_v38, %v300_v39  ;;  %v557_v39 = vpop.permute.xlu1 %556 }
 0x1ce   :  { %4581 = vpow2.f32 %v3831_v40  ;;  %v3829_v42 = vmul.f32 -1.442695, %v525_v41  ;;  %v563_v54 = vpop.permute.xlu0 %562 }
 0x1d0   :  { %4583 = vpow2.f32 %v3829_v42  ;;  %v559_v60 = vpop.permute.xlu1 %558 }
 0x1d7   :  { %v4578_v43 = vpop.eup %4577 }
 0x1d8   :  { %v542_v44 = vadd.f32 1.0, %v4578_v43 }
 0x1d9   :  { %v4580_v30 = vpop.eup %4579 }
 0x1da   :  { %4585 = vrcp.f32 %v542_v44  ;;  %v540_v45 = vadd.f32 1.0, %v4580_v30 }
 0x1db   :  { %v4582_v46 = vpop.eup %4581 }
 0x1dc   :  { %4587 = vrcp.f32 %v540_v45  ;;  %v543_v33 = vadd.f32 1.0, %v4582_v46 }
 0x1dd   :  { %v4584_v47 = vpop.eup %4583 }
 0x1de   :  { %4589 = vrcp.f32 %v543_v33  ;;  %v541_v48 = vadd.f32 1.0, %v4584_v47 }
 0x1e0   :  { %4591 = vrcp.f32 %v541_v48 }
 0x1e7   :  { %v4586_v49 = vpop.eup %4585 }
 0x1e8   :  { %v570_v50 = vmul.f32 %v4586_v49, %v561_v36 }
 0x1e9   :  { %v4588_v51 = vpop.eup %4587 }
 0x1ea   :  { %580 = vrot.lane.b32.xlu0 %v570_v50, %s4859_s26  ;;  %v568_v56 = vmul.f32 %v4588_v51, %v557_v39  ;;  %v596_v45 = vsub.f32 1.0, %v4588_v51 }
 0x1eb   :  { %v4590_v52 = vpop.eup %4589 }
 0x1ec   :  { %v571_v58 = vmul.f32 %v4590_v52, %v563_v54  ;;  %v599_v37 = vsub.f32 1.0, %v4590_v52 }
 0x1ed   :  { %v4592_v59 = vpop.eup %4591 }
 0x1ee   :  { %576 = vrot.lane.b32.xlu0 %v568_v56, %s4859_s26  ;;  %582 = vrot.lane.b32.xlu1 %v571_v58, %s4859_s26  ;;  %v569_v62 = vmul.f32 %v4592_v59, %v559_v60  ;;  %v597_v33 = vsub.f32 1.0, %v4592_v59 }
 0x1f2   :  { %628 = vrot.lane.b32.xlu0 %v4923_v1, %s4860_s27  ;;  %578 = vrot.lane.b32.xlu1 %v569_v62, %s4859_s26 }
 0x1f6   :  { %630 = vrot.lane.b32.xlu1 %v4925_v2, %s4860_s27 }
 0x25c   :  { %v581_v63 = vpop.permute.xlu0 %580 }
 0x25d   :  { %v590_v0 = vadd.f32 %v581_v63, %v522_v4 }
 0x25f   :  { %4593 = vtanh.f32 %v590_v0 }
 0x260   :  { %v577_v6 = vpop.permute.xlu0 %576  ;;  %v583_v20 = vpop.permute.xlu1 %582 }
 0x261   :  { %v588_v21 = vadd.f32 %v577_v6, %v520_v25  ;;  %v591_v22 = vadd.f32 %v583_v20, %v523_v32  ;;  %v598_v32 = vsub.f32 1.0, %v4586_v49 }
 0x263   :  { %4595 = vtanh.f32 %v588_v21 }
 0x264   :  { %4597 = vtanh.f32 %v591_v22  ;;  %v579_v24 = vpop.permute.xlu1 %578  ;;  %v629_v4 = vpop.permute.xlu0 %628 }
 0x265   :  { %v589_v26 = vadd.f32 %v579_v24, %v521_v38  ;;  %v638_v40 = vmul.f32 %v4586_v49, %v629_v4 }
 0x267   :  { %4599 = vtanh.f32 %v589_v26 }
 0x268   :  { %v631_v31 = vpop.permute.xlu1 %630 }
 0x269   :  { %v639_v41 = vmul.f32 %v4590_v52, %v631_v31 }
 0x26c   :  { %v4594_v27 = vpop.eup %4593 }
 0x26d   :  { %608 = vrot.lane.b32.xlu0 %v4594_v27, %s4861_s28 }
 0x270   :  { %v4596_v1 = vpop.eup %4595 }
 0x271   :  { %v4598_v28 = vpop.eup %4597  ;;  %604 = vrot.lane.b32.xlu0 %v4596_v1, %s4861_s28 }
 0x272   :  { %610 = vrot.lane.b32.xlu1 %v4598_v28, %s4861_s28 }
 0x274   :  { %v4600_v2 = vpop.eup %4599 }
 0x275   :  { %624 = vrot.lane.b32.xlu0 %v4927_v3, %s4860_s27 }
 0x276   :  { %606 = vrot.lane.b32.xlu1 %v4600_v2, %s4861_s28 }
 0x27a   :  { %626 = vrot.lane.b32.xlu1 %v4931_v5, %s4860_s27 }
 0x2df   :  { %v609_v25 = vpop.permute.xlu0 %608 }
 0x2e0   :  { %v618_v34 = vmul.f32 %v609_v25, %v598_v32 }
 0x2e2   :  { %v5085_v43 = vadd.f32 %v638_v40, %v618_v34 }
 0x2e3   :  { %v605_v35 = vpop.permute.xlu0 %604 }
 0x2e4   :  { %v611_v38 = vpop.permute.xlu1 %610  ;;  %v616_v48 = vmul.f32 %v605_v35, %v596_v45 }
 0x2e5   :  { %v619_v42 = vmul.f32 %v611_v38, %v599_v37 }
 0x2e7   :  { %v5087_v44 = vadd.f32 %v639_v41, %v619_v42  ;;  %v625_v3 = vpop.permute.xlu0 %624 }
 0x2e8   :  { %v607_v30 = vpop.permute.xlu1 %606  ;;  %v636_v46 = vmul.f32 %v4588_v51, %v625_v3 }
 0x2e9   :  { %v645_v5 = vpack.c.bf16 %v5087_v44, %v5085_v43  ;;  %v617_v36 = vmul.f32 %v607_v30, %v597_v33 }
 0x2ea   :  { %v5092_v50 = vadd.f32 %v636_v46, %v616_v48 }
 0x2eb   :  { %650 = vrot.lane.b32.xlu0 %v645_v5, %s4861_s28 }
 0x2ec   :  { %v627_v47 = vpop.permute.xlu1 %626 }
 0x2ed   :  { %v637_v49 = vmul.f32 %v4592_v59, %v627_v47 }
 0x2ef   :  { %v5094_v39 = vadd.f32 %v637_v49, %v617_v36 }
 0x2f1   :  { %v644_v52 = vpack.c.bf16 %v5094_v39, %v5092_v50 }
 0x2f3   :  { %648 = vrot.lane.b32.xlu1 %v644_v52, %s4861_s28 }
 0x35d   :  { %v651_v54 = vpop.permute.xlu0 %650 }
 0x35e   :  { %4207 = vmatprep.subr.bf16.mxu1 %v651_v54 }
 0x35f   :  { %4208 = vmatpush3.bf16.msra.mxu1 %v651_v54 }
 0x365   :  { %v649_v51 = vpop.permute.xlu1 %648 }
 0x366   :  { %4209 = vmatprep.subr.bf16.mxu1 %v649_v51  ;;  %4227 = vmatprep.mubr.msk.bf16.mxu0 %vm132_vm0, %v649_v51 }
 0x367   :  { %4210 = vmatpush3.bf16.msra.mxu1 %v649_v51  ;;  %4228 = vmatmul.mubr.msk.bf16.vlgmr.msra.gmra.mxu0 %vm132_vm0, %v651_v54 }
 0x368   :  { %4247 = vmatprep.subr.bf16.mxu1 %v5002_v16  ;;  %4232 = vmatpush3.bf16.msra.mxu0 %v4996_v15 }
 0x369   :  { %4233 = vmatprep.subr.bf16.mxu0 %v5009_v17 }
 0x36a   :  { %4212 = vmatmul.mubr.msk.bf16.vlgmr.msra.gmra.mxu1 %vm132_vm0, %v4946_v8 }
 0x36b   :  { %4215 = vmatprep.mubr.msk.bf16.mxu1 %vm132_vm0, %v4951_v9  ;;  %4248 = vmatpush3.bf16.msra.mxu1 %v5002_v16 }
 0x36c   :  { %4234 = vmatpush3.bf16.msra.mxu0 %v5009_v17  ;;  %4249 = vmatprep.subr.bf16.mxu1 %v5023_v19 }
 0x36d   :  { %4239 = vmatprep.subr.bf16.mxu0 %v5017_v18 }
 0x36f   :  { %4250 = vmatpush3.bf16.msra.mxu1 %v5023_v19 }
 0x370   :  { %4271 = vmatprep.subr.bf16.mxu1 %v4956_v10 }
 0x372   :  { %4216 = vmatmul.mubr.msk.bf16.gmra.mxu1 %vm132_vm0, %v4973_v12 }
 0x373   :  { %4219 = vmatprep.mubr.msk.bf16.mxu1 %vm132_vm0, %v4979_v13 }
 0x37a   :  { %4220 = vmatmul.mubr.msk.bf16.gmra.mxu1 %vm132_vm0, %v4989_v14 }
 0x427   :  { %v4229_v56 = vpop.f32.mrf.mxu0 }
 0x428   :  { %v790_v58 = vadd.f32 %v4229_v56, %v5031_v23 }
 0x429   :  { %v781_v59 = vpop.f32.mrf.mxu0 }
 0x42a   :  { %1009 = vrot.lane.b32.xlu0 %v790_v58, %s4859_s26  ;;  %v4213_v60 = vpop.f32.mrf.mxu1  ;;  %v782_v63 = vadd.f32 %v5031_v23, %v781_v59 }
 0x42b   :  { %v4230_v62 = vpop.f32.mrf.mxu0 }
 0x42c   :  { %v5124_v0 = vadd.f32 %v4230_v62, %v5031_v23  ;;  %v688_v6 = vpop.f32.mrf.mxu1 }
 0x42d   :  { %v784_v20 = vpop.f32.mrf.mxu0 }
 0x42e   :  { %1011 = vrot.lane.b32.xlu1 %v5124_v0, %s4859_s26  ;;  %1005 = vrot.lane.b32.xlu0 %v782_v63, %s4859_s26  ;;  %v4214_v21 = vpop.f32.mrf.mxu1  ;;  %v5130_v22 = vadd.f32 %v5031_v23, %v784_v20 }
 0x42f   :  { %v736_v27 = vpack.c.bf16 %v4214_v21, %v4213_v60 }
 0x430   :  { %v691_v24 = vpop.f32.mrf.mxu1 }
 0x431   :  { %v735_v26 = vpack.c.bf16 %v691_v24, %v688_v6 }
 0x432   :  { %1007 = vrot.lane.b32.xlu1 %v5130_v22, %s4859_s26  ;;  %v4217_v1 = vpop.f32.mrf.mxu1 }
 0x433   :  { %4235 = vmatprep.mubr.msk.bf16.mxu0 %vm132_vm0, %v735_v26 }
 0x434   :  { %v704_v28 = vpop.f32.mrf.mxu1  ;;  %4236 = vmatmul.mubr.msk.bf16.vlgmr.msra.gmra.mxu0 %vm132_vm0, %v736_v27 }
 0x435   :  { %4240 = vmatpush3.bf16.msra.mxu0 %v5017_v18 }
 0x436   :  { %v4218_v2 = vpop.f32.mrf.mxu1  ;;  %4241 = vmatprep.subr.bf16.mxu0 %v5036_v29 }
 0x437   :  { %v738_v31 = vpack.c.bf16 %v4218_v2, %v4217_v1 }
 0x438   :  { %v707_v4 = vpop.f32.mrf.mxu1 }
 0x439   :  { %v737_v25 = vpack.c.bf16 %v707_v4, %v704_v28  ;;  %4242 = vmatpush3.bf16.msra.mxu0 %v5036_v29 }
 0x43a   :  { %v4221_v32 = vpop.f32.mrf.mxu1 }
 0x43b   :  { %4243 = vmatprep.mubr.msk.bf16.mxu0 %vm132_vm0, %v737_v25 }
 0x43c   :  { %v720_v34 = vpop.f32.mrf.mxu1  ;;  %4244 = vmatmul.mubr.msk.bf16.vlgmr.msra.gmra.mxu0 %vm132_vm0, %v738_v31 }
 0x43d   :  { %4259 = vmatprep.mubr.msk.bf16.mxu0 %vm132_vm0, %v4938_v7 }
 0x43e   :  { %v4222_v35 = vpop.f32.mrf.mxu1 }
 0x43f   :  { %v740_v40 = vpack.c.bf16 %v4222_v35, %v4221_v32 }
 0x440   :  { %v723_v37 = vpop.f32.mrf.mxu1 }
 0x441   :  { %v739_v38 = vpack.c.bf16 %v723_v37, %v720_v34 }
 0x443   :  { %4251 = vmatprep.mubr.msk.bf16.mxu1 %vm132_vm0, %v739_v38 }
 0x444   :  { %4252 = vmatmul.mubr.msk.bf16.vlgmr.msra.gmra.mxu1 %vm132_vm0, %v740_v40 }
 0x445   :  { %4272 = vmatpush3.bf16.msra.mxu1 %v4956_v10 }
 0x446   :  { %4273 = vmatprep.subr.bf16.mxu1 %v4961_v11 }
 0x449   :  { %4274 = vmatpush3.bf16.msra.mxu1 %v4961_v11 }
 0x44a   :  { %4279 = vmatprep.subr.bf16.mxu1 %v4996_v15 }
 0x4f4   :  { %v4237_v41 = vpop.f32.mrf.mxu0 }
 0x4f5   :  { %v853_v46 = vadd.f32 %v4237_v41, %v5061_v53 }
 0x4f6   :  { %v836_v42 = vpop.f32.mrf.mxu0 }
 0x4f7   :  { %v851_v47 = vadd.f32 %v836_v42, %v5063_v55 }
 0x4f8   :  { %v4238_v3 = vpop.f32.mrf.mxu0 }
 0x4f9   :  { %v854_v49 = vadd.f32 %v4238_v3, %v5066_v57 }
 0x4fa   :  { %v839_v30 = vpop.f32.mrf.mxu0 }
 0x4fb   :  { %v852_v59 = vadd.f32 %v839_v30, %v5069_v61 }
 0x4fc   :  { %v4245_v5 = vpop.f32.mrf.mxu0 }
 0x4fd   :  { %v912_v48 = vadd.f32 %v4245_v5, %v853_v46 }
 0x4fe   :  { %v895_v45 = vpop.f32.mrf.mxu0 }
 0x4ff   :  { %v910_v52 = vadd.f32 %v895_v45, %v851_v47 }
 0x500   :  { %v4246_v33 = vpop.f32.mrf.mxu0 }
 0x501   :  { %v913_v60 = vadd.f32 %v4246_v33, %v854_v49 }
 0x502   :  { %v898_v51 = vpop.f32.mrf.mxu0 }
 0x503   :  { %v911_v21 = vadd.f32 %v898_v51, %v852_v59 }
 0x504   :  { %v4253_v36 = vpop.f32.mrf.mxu1 }
 0x505   :  { %v971_v54 = vadd.f32 %v4253_v36, %v912_v48 }
 0x506   :  { %v954_v56 = vpop.f32.mrf.mxu1 }
 0x507   :  { %v975_v62 = vadd.f32 %v971_v54, %v790_v58  ;;  %v969_v6 = vadd.f32 %v954_v56, %v910_v52 }
 0x508   :  { %v4254_v20 = vpop.f32.mrf.mxu1 }
 0x509   :  { %v3848_v24 = vmul.f32 -1.442695, %v975_v62  ;;  %v973_v26 = vadd.f32 %v969_v6, %v782_v63  ;;  %v972_v27 = vadd.f32 %v4254_v20, %v913_v60 }
 0x50a   :  { %v957_v1 = vpop.f32.mrf.mxu1 }
 0x50b   :  { %4601 = vpow2.f32 %v3848_v24  ;;  %v3846_v28 = vmul.f32 -1.442695, %v973_v26  ;;  %v976_v2 = vadd.f32 %v972_v27, %v5124_v0  ;;  %v970_v4 = vadd.f32 %v957_v1, %v911_v21  ;;  %v1010_v0 = vpop.permute.xlu0 %1009 }
 0x50d   :  { %4603 = vpow2.f32 %v3846_v28  ;;  %v3849_v25 = vmul.f32 -1.442695, %v976_v2  ;;  %v974_v31 = vadd.f32 %v970_v4, %v5130_v22  ;;  %v1012_v22 = vpop.permute.xlu1 %1011 }
 0x50f   :  { %4605 = vpow2.f32 %v3849_v25  ;;  %v3847_v32 = vmul.f32 -1.442695, %v974_v31  ;;  %v1006_v45 = vpop.permute.xlu0 %1005 }
 0x511   :  { %4607 = vpow2.f32 %v3847_v32  ;;  %v1008_v48 = vpop.permute.xlu1 %1007 }
 0x518   :  { %v4602_v58 = vpop.eup %4601 }
 0x519   :  { %v991_v34 = vadd.f32 1.0, %v4602_v58 }
 0x51a   :  { %v4604_v35 = vpop.eup %4603 }
 0x51b   :  { %4609 = vrcp.f32 %v991_v34  ;;  %v989_v37 = vadd.f32 1.0, %v4604_v35 }
 0x51c   :  { %v4606_v63 = vpop.eup %4605 }
 0x51d   :  { %4611 = vrcp.f32 %v989_v37  ;;  %v992_v38 = vadd.f32 1.0, %v4606_v63 }
 0x51e   :  { %v4608_v40 = vpop.eup %4607 }
 0x51f   :  { %4613 = vrcp.f32 %v992_v38  ;;  %v990_v41 = vadd.f32 1.0, %v4608_v40 }
 0x521   :  { %4615 = vrcp.f32 %v990_v41 }
 0x528   :  { %v4610_v42 = vpop.eup %4609 }
 0x529   :  { %v1019_v3 = vmul.f32 %v4610_v42, %v1010_v0 }
 0x52a   :  { %v4612_v30 = vpop.eup %4611 }
 0x52b   :  { %1029 = vrot.lane.b32.xlu0 %v1019_v3, %s4859_s26  ;;  %v1017_v46 = vmul.f32 %v4612_v30, %v1006_v45  ;;  %v1045_v31 = vsub.f32 1.0, %v4612_v30  ;;  %v1069_v40 = vmul.f32 %v4612_v30, %v5092_v50 }
 0x52c   :  { %v4614_v5 = vpop.eup %4613 }
 0x52d   :  { %v1020_v33 = vmul.f32 %v4614_v5, %v1012_v22  ;;  %v1048_v28 = vsub.f32 1.0, %v4614_v5  ;;  %v1072_v32 = vmul.f32 %v4614_v5, %v5087_v44 }
 0x52e   :  { %v4616_v47 = vpop.eup %4615 }
 0x52f   :  { %1025 = vrot.lane.b32.xlu0 %v1017_v46, %s4859_s26  ;;  %1031 = vrot.lane.b32.xlu1 %v1020_v33, %s4859_s26  ;;  %v1018_v36 = vmul.f32 %v4616_v47, %v1008_v48  ;;  %v1046_v63 = vsub.f32 1.0, %v4616_v47  ;;  %v1070_v41 = vmul.f32 %v4616_v47, %v5094_v39 }
 0x533   :  { %1027 = vrot.lane.b32.xlu1 %v1018_v36, %s4859_s26 }
 0x59d   :  { %v1030_v49 = vpop.permute.xlu0 %1029 }
 0x59e   :  { %v1039_v52 = vadd.f32 %v1030_v49, %v971_v54 }
 0x5a0   :  { %4617 = vtanh.f32 %v1039_v52 }
 0x5a1   :  { %v1026_v51 = vpop.permute.xlu0 %1025  ;;  %v1032_v56 = vpop.permute.xlu1 %1031 }
 0x5a2   :  { %v1037_v59 = vadd.f32 %v1026_v51, %v969_v6  ;;  %v1040_v60 = vadd.f32 %v1032_v56, %v972_v27  ;;  %v1047_v6 = vsub.f32 1.0, %v4610_v42 }
 0x5a4   :  { %4619 = vtanh.f32 %v1037_v59 }
 0x5a5   :  { %4621 = vtanh.f32 %v1040_v60  ;;  %v1028_v62 = vpop.permute.xlu1 %1027 }
 0x5a6   :  { %v1038_v20 = vadd.f32 %v1028_v62, %v970_v4  ;;  %v1071_v4 = vmul.f32 %v4610_v42, %v5085_v43 }
 0x5a8   :  { %4623 = vtanh.f32 %v1038_v20 }
 0x5ad   :  { %v4618_v21 = vpop.eup %4617 }
 0x5ae   :  { %1057 = vrot.lane.b32.xlu0 %v4618_v21, %s4861_s28 }
 0x5b1   :  { %v4620_v24 = vpop.eup %4619 }
 0x5b2   :  { %v4622_v26 = vpop.eup %4621  ;;  %1053 = vrot.lane.b32.xlu0 %v4620_v24, %s4861_s28 }
 0x5b3   :  { %1059 = vrot.lane.b32.xlu1 %v4622_v26, %s4861_s28 }
 0x5b5   :  { %v4624_v54 = vpop.eup %4623 }
 0x5b7   :  { %1055 = vrot.lane.b32.xlu1 %v4624_v54, %s4861_s28 }
 0x620   :  { %v1058_v1 = vpop.permute.xlu0 %1057 }
 0x621   :  { %v1067_v27 = vmul.f32 %v1058_v1, %v1047_v6 }
 0x623   :  { %v5165_v34 = vadd.f32 %v1071_v4, %v1067_v27 }
 0x624   :  { %v1054_v2 = vpop.permute.xlu0 %1053 }
 0x625   :  { %v1060_v25 = vpop.permute.xlu1 %1059  ;;  %v1065_v35 = vmul.f32 %v1054_v2, %v1045_v31 }
 0x626   :  { %v1068_v58 = vmul.f32 %v1060_v25, %v1048_v28 }
 0x627   :  { %v5173_v43 = vadd.f32 %v1069_v40, %v1065_v35 }
 0x628   :  { %v5167_v37 = vadd.f32 %v1072_v32, %v1068_v58 }
 0x629   :  { %v1056_v38 = vpop.permute.xlu1 %1055 }
 0x62a   :  { %v1066_v0 = vmul.f32 %v1056_v38, %v1046_v63  ;;  %v1078_v3 = vpack.c.bf16 %v5167_v37, %v5165_v34 }
 0x62c   :  { %v5175_v42 = vadd.f32 %v1070_v41, %v1066_v0  ;;  %1083 = vrot.lane.b32.xlu0 %v1078_v3, %s4861_s28 }
 0x62e   :  { %v1077_v44 = vpack.c.bf16 %v5175_v42, %v5173_v43 }
 0x630   :  { %1081 = vrot.lane.b32.xlu1 %v1077_v44, %s4861_s28 }
 0x69e   :  { %v1084_v22 = vpop.permute.xlu0 %1083 }
 0x69f   :  { %4255 = vmatprep.subr.bf16.mxu0 %v1084_v22 }
 0x6a0   :  { %4256 = vmatpush3.bf16.msra.mxu0 %v1084_v22 }
 0x6a2   :  { %v1082_v50 = vpop.permute.xlu1 %1081 }
 0x6a3   :  { %4257 = vmatprep.subr.bf16.mxu0 %v1082_v50  ;;  %4275 = vmatprep.mubr.msk.bf16.mxu1 %vm132_vm0, %v1082_v50 }
 0x6a4   :  { %4258 = vmatpush3.bf16.msra.mxu0 %v1082_v50  ;;  %4276 = vmatmul.mubr.msk.bf16.vlgmr.msra.gmra.mxu1 %vm132_vm0, %v1084_v22 }
 0x6a5   :  { %4295 = vmatprep.subr.bf16.mxu0 %v5002_v16  ;;  %4280 = vmatpush3.bf16.msra.mxu1 %v4996_v15 }
 0x6a6   :  { %4281 = vmatprep.subr.bf16.mxu1 %v5009_v17 }
 0x6a7   :  { %4260 = vmatmul.mubr.msk.bf16.vlgmr.msra.gmra.mxu0 %vm132_vm0, %v4946_v8 }
 0x6a8   :  { %4263 = vmatprep.mubr.msk.bf16.mxu0 %vm132_vm0, %v4951_v9  ;;  %4296 = vmatpush3.bf16.msra.mxu0 %v5002_v16 }
 0x6a9   :  { %4282 = vmatpush3.bf16.msra.mxu1 %v5009_v17  ;;  %4297 = vmatprep.subr.bf16.mxu0 %v5023_v19 }
 0x6aa   :  { %4287 = vmatprep.subr.bf16.mxu1 %v5017_v18 }
 0x6ac   :  { %4298 = vmatpush3.bf16.msra.mxu0 %v5023_v19 }
 0x6ad   :  { %4319 = vmatprep.subr.bf16.mxu0 %v4956_v10 }
 0x6af   :  { %4264 = vmatmul.mubr.msk.bf16.gmra.mxu0 %vm132_vm0, %v4973_v12 }
 0x6b0   :  { %4267 = vmatprep.mubr.msk.bf16.mxu0 %vm132_vm0, %v4979_v13 }
 0x6b7   :  { %4268 = vmatmul.mubr.msk.bf16.gmra.mxu0 %vm132_vm0, %v4989_v14 }
 0x764   :  { %v4277_v8 = vpop.f32.mrf.mxu1 }
 0x765   :  { %v1223_v9 = vadd.f32 %v4277_v8, %v5031_v23 }
 0x766   :  { %v1214_v16 = vpop.f32.mrf.mxu1 }
 0x767   :  { %1442 = vrot.lane.b32.xlu0 %v1223_v9, %s4859_s26  ;;  %v4261_v17 = vpop.f32.mrf.mxu0  ;;  %v1215_v19 = vadd.f32 %v5031_v23, %v1214_v16 }
 0x768   :  { %v4278_v39 = vpop.f32.mrf.mxu1 }
 0x769   :  { %v5206_v30 = vadd.f32 %v4278_v39, %v5031_v23  ;;  %v1121_v12 = vpop.f32.mrf.mxu0 }
 0x76a   :  { %v1217_v5 = vpop.f32.mrf.mxu1 }
 0x76b   :  { %1444 = vrot.lane.b32.xlu1 %v5206_v30, %s4859_s26  ;;  %1438 = vrot.lane.b32.xlu0 %v1215_v19, %s4859_s26  ;;  %v4262_v13 = vpop.f32.mrf.mxu0  ;;  %v5212_v14 = vadd.f32 %v5031_v23, %v1217_v5 }
 0x76c   :  { %v1169_v33 = vpack.c.bf16 %v4262_v13, %v4261_v17 }
 0x76d   :  { %v1124_v45 = vpop.f32.mrf.mxu0 }
 0x76e   :  { %v1168_v46 = vpack.c.bf16 %v1124_v45, %v1121_v12 }
 0x76f   :  { %1440 = vrot.lane.b32.xlu1 %v5212_v14, %s4859_s26  ;;  %v4265_v47 = vpop.f32.mrf.mxu0 }
 0x770   :  { %4283 = vmatprep.mubr.msk.bf16.mxu1 %vm132_vm0, %v1168_v46 }
 0x771   :  { %v1137_v48 = vpop.f32.mrf.mxu0  ;;  %4284 = vmatmul.mubr.msk.bf16.vlgmr.msra.gmra.mxu1 %vm132_vm0, %v1169_v33 }
 0x772   :  { %4288 = vmatpush3.bf16.msra.mxu1 %v5017_v18 }
 0x773   :  { %v4266_v36 = vpop.f32.mrf.mxu0  ;;  %4289 = vmatprep.subr.bf16.mxu1 %v5036_v29 }
 0x774   :  { %v1171_v52 = vpack.c.bf16 %v4266_v36, %v4265_v47 }
 0x775   :  { %v1140_v49 = vpop.f32.mrf.mxu0 }
 0x776   :  { %v1170_v23 = vpack.c.bf16 %v1140_v49, %v1137_v48  ;;  %4290 = vmatpush3.bf16.msra.mxu1 %v5036_v29 }
 0x777   :  { %v4269_v51 = vpop.f32.mrf.mxu0 }
 0x778   :  { %4291 = vmatprep.mubr.msk.bf16.mxu1 %vm132_vm0, %v1170_v23 }
 0x779   :  { %v1153_v56 = vpop.f32.mrf.mxu0  ;;  %4292 = vmatmul.mubr.msk.bf16.vlgmr.msra.gmra.mxu1 %vm132_vm0, %v1171_v52 }
 0x77a   :  { %4307 = vmatprep.mubr.msk.bf16.mxu1 %vm132_vm0, %v4938_v7 }
 0x77b   :  { %v4270_v59 = vpop.f32.mrf.mxu0 }
 0x77c   :  { %v1173_v62 = vpack.c.bf16 %v4270_v59, %v4269_v51 }
 0x77d   :  { %v1156_v60 = vpop.f32.mrf.mxu0 }
 0x77e   :  { %v1172_v18 = vpack.c.bf16 %v1156_v60, %v1153_v56 }
 0x780   :  { %4299 = vmatprep.mubr.msk.bf16.mxu0 %vm132_vm0, %v1172_v18 }
 0x781   :  { %4300 = vmatmul.mubr.msk.bf16.vlgmr.msra.gmra.mxu0 %vm132_vm0, %v1173_v62 }
 0x782   :  { %4320 = vmatpush3.bf16.msra.mxu0 %v4956_v10 }
 0x783   :  { %4321 = vmatprep.subr.bf16.mxu0 %v4961_v11 }
 0x786   :  { %4322 = vmatpush3.bf16.msra.mxu0 %v4961_v11 }
 0x787   :  { %4327 = vmatprep.subr.bf16.mxu0 %v4996_v15 }
 0x831   :  { %v4285_v29 = vpop.f32.mrf.mxu1 }
 0x832   :  { %v1286_v54 = vadd.f32 %v4285_v29, %v5061_v53 }
 0x833   :  { %v1269_v20 = vpop.f32.mrf.mxu1 }
 0x834   :  { %v1284_v6 = vadd.f32 %v1269_v20, %v5063_v55 }
 0x835   :  { %v4286_v21 = vpop.f32.mrf.mxu1 }
 0x836   :  { %v1287_v10 = vadd.f32 %v4286_v21, %v5066_v57 }
 0x837   :  { %v1272_v7 = vpop.f32.mrf.mxu1 }
 0x838   :  { %v1285_v15 = vadd.f32 %v1272_v7, %v5069_v61 }
 0x839   :  { %v4293_v24 = vpop.f32.mrf.mxu1 }
 0x83a   :  { %v1345_v27 = vadd.f32 %v4293_v24, %v1286_v54 }
 0x83b   :  { %v1328_v26 = vpop.f32.mrf.mxu1 }
 0x83c   :  { %v1343_v2 = vadd.f32 %v1328_v26, %v1284_v6 }
 0x83d   :  { %v4294_v1 = vpop.f32.mrf.mxu1 }
 0x83e   :  { %v1346_v31 = vadd.f32 %v4294_v1, %v1287_v10 }
 0x83f   :  { %v1331_v11 = vpop.f32.mrf.mxu1 }
 0x840   :  { %v1344_v63 = vadd.f32 %v1331_v11, %v1285_v15 }
 0x841   :  { %v4301_v28 = vpop.f32.mrf.mxu0 }
 0x842   :  { %v1404_v25 = vadd.f32 %v4301_v28, %v1345_v27 }
 0x843   :  { %v1387_v4 = vpop.f32.mrf.mxu0 }
 0x844   :  { %v1408_v32 = vadd.f32 %v1404_v25, %v1223_v9  ;;  %v1402_v58 = vadd.f32 %v1387_v4, %v1343_v2 }
 0x845   :  { %v4302_v35 = vpop.f32.mrf.mxu0 }
 0x846   :  { %v3866_v38 = vmul.f32 -1.442695, %v1408_v32  ;;  %v1406_v53 = vadd.f32 %v1402_v58, %v1215_v19  ;;  %v1405_v40 = vadd.f32 %v4302_v35, %v1346_v31 }
 0x847   :  { %v1390_v41 = vpop.f32.mrf.mxu0 }
 0x848   :  { %4625 = vpow2.f32 %v3866_v38  ;;  %v3864_v55 = vmul.f32 -1.442695, %v1406_v53  ;;  %v1409_v0 = vadd.f32 %v1405_v40, %v5206_v30  ;;  %v1403_v57 = vadd.f32 %v1390_v41, %v1344_v63  ;;  %v1443_v30 = vpop.permute.xlu0 %1442  ;;  %v5274_v41 = vld [vmem:[%s5831_s2 + $0x8] sm:$0xff]  }
 0x84a   :  { %4627 = vpow2.f32 %v3864_v55  ;;  %v3867_v3 = vmul.f32 -1.442695, %v1409_v0  ;;  %v1407_v44 = vadd.f32 %v1403_v57, %v5212_v14  ;;  %v1445_v14 = vpop.permute.xlu1 %1444  ;;  %v5280_v55 = vld [vmem:[%s5831_s2] sm:$0xff]   ;;  %v5286_v0 = vld [vmem:[%s5830_s1 + $0x8] sm:$0xff]  }
 0x84c   :  { %4629 = vpow2.f32 %v3867_v3  ;;  %v3865_v61 = vmul.f32 -1.442695, %v1407_v44  ;;  %v1439_v46 = vpop.permute.xlu0 %1438  ;;  %v5302_v3 = vld [vmem:[%s5831_s2 + $0x20] sm:$0xff]   ;;  %v5308_v44 = vld [vmem:[%s5831_s2 + $0x18] sm:$0xff]  }
 0x84e   :  { %4631 = vpow2.f32 %v3865_v61  ;;  %v1441_v36 = vpop.permute.xlu1 %1440  ;;  %v5315_v61 = vld [vmem:[%s5833_s4 + $0x8] sm:$0xff]  }
 0x855   :  { %v4626_v22 = vpop.eup %4625 }
 0x856   :  { %v1424_v50 = vadd.f32 1.0, %v4626_v22  ;;  %v5321_v22 = vld [vmem:[%s5830_s1 + $0x18] sm:$0xff]  }
 0x857   :  { %v4628_v8 = vpop.eup %4627 }
 0x858   :  { %4633 = vrcp.f32 %v1424_v50  ;;  %v1422_v9 = vadd.f32 1.0, %v4628_v8  ;;  %v5328_v50 = vld [vmem:[%s5830_s1 + $0x20] sm:$0xff]   ;;  %v5335_v8 = vld [vmem:[%s5830_s1 + $0x28] sm:$0xff]  }
 0x859   :  { %v4630_v16 = vpop.eup %4629 }
 0x85a   :  { %4635 = vrcp.f32 %v1422_v9  ;;  %v1425_v17 = vadd.f32 1.0, %v4630_v16  ;;  %v5342_v16 = vld [vmem:[%s5834_s5] ss:$0 sm:$0xff] }
 0x85b   :  { %v4632_v39 = vpop.eup %4631 }
 0x85c   :  { %4637 = vrcp.f32 %v1425_v17  ;;  %v1423_v19 = vadd.f32 1.0, %v4632_v39 }
 0x85e   :  { %4639 = vrcp.f32 %v1423_v19 }
 0x865   :  { %v4634_v12 = vpop.eup %4633 }
 0x866   :  { %v1452_v5 = vmul.f32 %v4634_v12, %v1443_v30  ;;  %v1480_v26 = vsub.f32 1.0, %v4634_v12  ;;  %v1504_v28 = vmul.f32 %v4634_v12, %v5165_v34 }
 0x867   :  { %v4636_v13 = vpop.eup %4635 }
 0x868   :  { %1462 = vrot.lane.b32.xlu0 %v1452_v5, %s4859_s26  ;;  %v1450_v33 = vmul.f32 %v4636_v13, %v1439_v46  ;;  %v1478_v10 = vsub.f32 1.0, %v4636_v13 }
 0x869   :  { %v4638_v45 = vpop.eup %4637 }
 0x86a   :  { %v1453_v47 = vmul.f32 %v4638_v45, %v1445_v14  ;;  %v1481_v1 = vsub.f32 1.0, %v4638_v45  ;;  %v1505_v2 = vmul.f32 %v4638_v45, %v5167_v37 }
 0x86b   :  { %v4640_v48 = vpop.eup %4639 }
 0x86c   :  { %1458 = vrot.lane.b32.xlu0 %v1450_v33, %s4859_s26  ;;  %1464 = vrot.lane.b32.xlu1 %v1453_v47, %s4859_s26  ;;  %v1451_v49 = vmul.f32 %v4640_v48, %v1441_v36  ;;  %v1479_v31 = vsub.f32 1.0, %v4640_v48  ;;  %v1503_v35 = vmul.f32 %v4640_v48, %v5175_v42  ;;  %v5268_v42 = vld [vmem:[%s5831_s2 + $0x28] sm:$0xff]  }
 0x870   :  { %1460 = vrot.lane.b32.xlu1 %v1451_v49, %s4859_s26 }
 0x8da   :  { %v1463_v23 = vpop.permute.xlu0 %1462 }
 0x8db   :  { %v1472_v52 = vadd.f32 %v1463_v23, %v1404_v25 }
 0x8dd   :  { %4641 = vtanh.f32 %v1472_v52  ;;  %v5370_v52 = vld [vmem:[%s5831_s2 + $0x10] sm:$0xff]  }
 0x8de   :  { %v1459_v51 = vpop.permute.xlu0 %1458  ;;  %v1465_v56 = vpop.permute.xlu1 %1464 }
 0x8df   :  { %v1470_v59 = vadd.f32 %v1459_v51, %v1402_v58  ;;  %v1473_v60 = vadd.f32 %v1465_v56, %v1405_v40  ;;  %v1502_v58 = vmul.f32 %v4636_v13, %v5173_v43 }
 0x8e1   :  { %4643 = vtanh.f32 %v1470_v59 }
 0x8e2   :  { %4645 = vtanh.f32 %v1473_v60  ;;  %v1461_v18 = vpop.permute.xlu1 %1460 }
 0x8e3   :  { %v1471_v62 = vadd.f32 %v1461_v18, %v1403_v57  ;;  %v5293_v57 = vld [vmem:[%s5830_s1 + $0x10] sm:$0xff]  }
 0x8e5   :  { %4647 = vtanh.f32 %v1471_v62  ;;  %v5379_v62 = vld [vmem:[%s5830_s1] sm:$0xff]  }
 0x8ea   :  { %v4642_v29 = vpop.eup %4641 }
 0x8eb   :  { %1490 = vrot.lane.b32.xlu0 %v4642_v29, %s4861_s28 }
 0x8ee   :  { %v4644_v20 = vpop.eup %4643 }
 0x8ef   :  { %v4646_v21 = vpop.eup %4645  ;;  %1486 = vrot.lane.b32.xlu0 %v4644_v20, %s4861_s28 }
 0x8f0   :  { %1492 = vrot.lane.b32.xlu1 %v4646_v21, %s4861_s28 }
 0x8f2   :  { %v4648_v7 = vpop.eup %4647 }
 0x8f4   :  { %1488 = vrot.lane.b32.xlu1 %v4648_v7, %s4861_s28 }
 0x95d   :  { %v1491_v24 = vpop.permute.xlu0 %1490 }
 0x95e   :  { %v1500_v54 = vmul.f32 %v1491_v24, %v1480_v26  ;;  %v5389_v24 = vld [vmem:[%s5833_s4] sm:$0xff]  }
 0x960   :  { %v5247_v11 = vadd.f32 %v1504_v28, %v1500_v54 }
 0x961   :  { %v1487_v6 = vpop.permute.xlu0 %1486 }
 0x962   :  { %v1493_v27 = vpop.permute.xlu1 %1492  ;;  %v1498_v4 = vmul.f32 %v1487_v6, %v1478_v10  ;;  %v5394_v10 = vld [vmem:[#allocation5 + $0x10] sm:$0xff] }
 0x963   :  { %v1501_v25 = vmul.f32 %v1493_v27, %v1481_v1 }
 0x964   :  { %v5255_v34 = vadd.f32 %v1502_v58, %v1498_v4  ;;  %v5397_v4 = vld [vmem:[#allocation5] sm:$0xff] }
 0x965   :  { %v5249_v15 = vadd.f32 %v1505_v2, %v1501_v25 }
 0x966   :  { %v1489_v32 = vpop.permute.xlu1 %1488 }
 0x967   :  { %v1499_v63 = vmul.f32 %v1489_v32, %v1479_v31  ;;  %v1511_v38 = vpack.c.bf16 %v5249_v15, %v5247_v11 }
 0x969   :  { %v5257_v53 = vadd.f32 %v1503_v35, %v1499_v63  ;;  %1516 = vrot.lane.b32.xlu0 %v1511_v38, %s4861_s28  ;;  %v5400_v35 = vld [vmem:[#allocation5 + $0x18] sm:$0xff] }
 0x96b   :  { %v1510_v37 = vpack.c.bf16 %v5257_v53, %v5255_v34 }
 0x96d   :  { %1514 = vrot.lane.b32.xlu1 %v1510_v37, %s4861_s28 }
 0x9db   :  { %v1517_v40 = vpop.permute.xlu0 %1516 }
 0x9dc   :  { %4303 = vmatprep.subr.bf16.mxu1 %v1517_v40 }
 0x9dd   :  { %4304 = vmatpush3.bf16.msra.mxu1 %v1517_v40 }
 0x9df   :  { %v1515_v43 = vpop.permute.xlu1 %1514 }
 0x9e0   :  { %4305 = vmatprep.subr.bf16.mxu1 %v1515_v43  ;;  %4323 = vmatprep.mubr.msk.bf16.mxu0 %vm132_vm0, %v1515_v43 }
 0x9e1   :  { %4306 = vmatpush3.bf16.msra.mxu1 %v1515_v43  ;;  %4324 = vmatmul.mubr.msk.bf16.vlgmr.msra.gmra.mxu0 %vm132_vm0, %v1517_v40 }
 0x9e2   :  { %4343 = vmatprep.subr.bf16.mxu1 %v5268_v42  ;;  %4328 = vmatpush3.bf16.msra.mxu0 %v5274_v41 }
 0x9e3   :  { %4329 = vmatprep.subr.bf16.mxu0 %v5280_v55 }
 0x9e4   :  { %4308 = vmatmul.mubr.msk.bf16.vlgmr.msra.gmra.mxu1 %vm132_vm0, %v5286_v0 }
 0x9e5   :  { %4311 = vmatprep.mubr.msk.bf16.mxu1 %vm132_vm0, %v5293_v57  ;;  %4344 = vmatpush3.bf16.msra.mxu1 %v5268_v42 }
 0x9e6   :  { %4330 = vmatpush3.bf16.msra.mxu0 %v5280_v55  ;;  %4345 = vmatprep.subr.bf16.mxu1 %v5302_v3 }
 0x9e7   :  { %4335 = vmatprep.subr.bf16.mxu0 %v5308_v44 }
 0x9e9   :  { %4346 = vmatpush3.bf16.msra.mxu1 %v5302_v3 }
 0x9ea   :  { %4367 = vmatprep.subr.bf16.mxu1 %v5315_v61 }
 0x9ec   :  { %4312 = vmatmul.mubr.msk.bf16.gmra.mxu1 %vm132_vm0, %v5321_v22 }
 0x9ed   :  { %4315 = vmatprep.mubr.msk.bf16.mxu1 %vm132_vm0, %v5328_v50 }
 0x9f4   :  { %4316 = vmatmul.mubr.msk.bf16.gmra.mxu1 %vm132_vm0, %v5335_v8 }
 0xaa1   :  { %v4325_v9 = vpop.f32.mrf.mxu0 }
 0xaa2   :  { %v5345_v17 = vadd.f32 %v5342_v16, %v4325_v9  ;;  %v5403_v9 = vld [vmem:[#allocation5 + $0x8] sm:$0xff] }
 0xaa3   :  { %v1647_v39 = vpop.f32.mrf.mxu0 }
 0xaa4   :  { %1875 = vrot.lane.b32.xlu0 %v5345_v17, %s4859_s26  ;;  %v4309_v19 = vpop.f32.mrf.mxu1  ;;  %v5350_v12 = vadd.f32 %v5342_v16, %v1647_v39 }
 0xaa5   :  { %v4326_v30 = vpop.f32.mrf.mxu0 }
 0xaa6   :  { %v5353_v5 = vadd.f32 %v5342_v16, %v4326_v30  ;;  %v1554_v13 = vpop.f32.mrf.mxu1 }
 0xaa7   :  { %v1650_v14 = vpop.f32.mrf.mxu0 }
 0xaa8   :  { %1877 = vrot.lane.b32.xlu1 %v5353_v5, %s4859_s26  ;;  %1871 = vrot.lane.b32.xlu0 %v5350_v12, %s4859_s26  ;;  %v4310_v45 = vpop.f32.mrf.mxu1  ;;  %v5360_v46 = vadd.f32 %v5342_v16, %v1650_v14 }
 0xaa9   :  { %v1602_v48 = vpack.c.bf16 %v4310_v45, %v4309_v19 }
 0xaaa   :  { %v1557_v33 = vpop.f32.mrf.mxu1 }
 0xaab   :  { %v1601_v47 = vpack.c.bf16 %v1557_v33, %v1554_v13 }
 0xaac   :  { %1873 = vrot.lane.b32.xlu1 %v5360_v46, %s4859_s26  ;;  %v4313_v36 = vpop.f32.mrf.mxu1 }
 0xaad   :  { %4331 = vmatprep.mubr.msk.bf16.mxu0 %vm132_vm0, %v1601_v47 }
 0xaae   :  { %v1570_v49 = vpop.f32.mrf.mxu1  ;;  %4332 = vmatmul.mubr.msk.bf16.vlgmr.msra.gmra.mxu0 %vm132_vm0, %v1602_v48 }
 0xaaf   :  { %4336 = vmatpush3.bf16.msra.mxu0 %v5308_v44 }
 0xab0   :  { %v4314_v23 = vpop.f32.mrf.mxu1  ;;  %4337 = vmatprep.subr.bf16.mxu0 %v5370_v52 }
 0xab1   :  { %v1604_v59 = vpack.c.bf16 %v4314_v23, %v4313_v36 }
 0xab2   :  { %v1573_v51 = vpop.f32.mrf.mxu1 }
 0xab3   :  { %v1603_v56 = vpack.c.bf16 %v1573_v51, %v1570_v49  ;;  %4338 = vmatpush3.bf16.msra.mxu0 %v5370_v52 }
 0xab4   :  { %v4317_v60 = vpop.f32.mrf.mxu1 }
 0xab5   :  { %4339 = vmatprep.mubr.msk.bf16.mxu0 %vm132_vm0, %v1603_v56 }
 0xab6   :  { %v1586_v18 = vpop.f32.mrf.mxu1  ;;  %4340 = vmatmul.mubr.msk.bf16.vlgmr.msra.gmra.mxu0 %vm132_vm0, %v1604_v59 }
 0xab7   :  { %4355 = vmatprep.mubr.msk.bf16.mxu0 %vm132_vm0, %v5379_v62 }
 0xab8   :  { %v4318_v29 = vpop.f32.mrf.mxu1 }
 0xab9   :  { %v1606_v7 = vpack.c.bf16 %v4318_v29, %v4317_v60 }
 0xaba   :  { %v1589_v20 = vpop.f32.mrf.mxu1 }
 0xabb   :  { %v1605_v21 = vpack.c.bf16 %v1589_v20, %v1586_v18 }
 0xabd   :  { %4347 = vmatprep.mubr.msk.bf16.mxu1 %vm132_vm0, %v1605_v21 }
 0xabe   :  { %4348 = vmatmul.mubr.msk.bf16.vlgmr.msra.gmra.mxu1 %vm132_vm0, %v1606_v7 }
 0xabf   :  { %4368 = vmatpush3.bf16.msra.mxu1 %v5315_v61 }
 0xac0   :  { %4369 = vmatprep.subr.bf16.mxu1 %v5389_v24 }
 0xac3   :  { %4370 = vmatpush3.bf16.msra.mxu1 %v5389_v24 }
 0xac4   :  { %4375 = vmatprep.subr.bf16.mxu1 %v5274_v41 }
 0xb6e   :  { %v4333_v26 = vpop.f32.mrf.mxu0 }
 0xb6f   :  { %v1719_v2 = vadd.f32 %v5394_v10, %v4333_v26 }
 0xb70   :  { %v1702_v54 = vpop.f32.mrf.mxu0 }
 0xb71   :  { %v1717_v31 = vadd.f32 %v5397_v4, %v1702_v54 }
 0xb72   :  { %v4334_v1 = vpop.f32.mrf.mxu0 }
 0xb73   :  { %v1720_v63 = vadd.f32 %v5400_v35, %v4334_v1 }
 0xb74   :  { %v1705_v6 = vpop.f32.mrf.mxu0 }
 0xb75   :  { %v1718_v39 = vadd.f32 %v5403_v9, %v1705_v6 }
 0xb76   :  { %v4341_v27 = vpop.f32.mrf.mxu0 }
 0xb77   :  { %v1778_v32 = vadd.f32 %v4341_v27, %v1719_v2 }
 0xb78   :  { %v1761_v28 = vpop.f32.mrf.mxu0 }
 0xb79   :  { %v1776_v38 = vadd.f32 %v1761_v28, %v1717_v31 }
 0xb7a   :  { %v4342_v25 = vpop.f32.mrf.mxu0 }
 0xb7b   :  { %v1779_v19 = vadd.f32 %v4342_v25, %v1720_v63 }
 0xb7c   :  { %v1764_v40 = vpop.f32.mrf.mxu0 }
 0xb7d   :  { %v1777_v45 = vadd.f32 %v1764_v40, %v1718_v39 }
 0xb7e   :  { %v4349_v58 = vpop.f32.mrf.mxu1 }
 0xb7f   :  { %v1837_v37 = vadd.f32 %v4349_v58, %v1778_v32 }
 0xb80   :  { %v1820_v43 = vpop.f32.mrf.mxu1 }
 0xb81   :  { %v1841_v30 = vadd.f32 %v1837_v37, %v5345_v17  ;;  %v1835_v13 = vadd.f32 %v1820_v43, %v1776_v38 }
 0xb82   :  { %v4350_v14 = vpop.f32.mrf.mxu1 }
 0xb83   :  { %v3884_v33 = vmul.f32 -1.442695, %v1841_v30  ;;  %v1839_v47 = vadd.f32 %v1835_v13, %v5350_v12  ;;  %v1838_v48 = vadd.f32 %v4350_v14, %v1779_v19 }
 0xb84   :  { %v1823_v36 = vpop.f32.mrf.mxu1 }
 0xb85   :  { %4649 = vpow2.f32 %v3884_v33  ;;  %v3882_v49 = vmul.f32 -1.442695, %v1839_v47  ;;  %v1842_v23 = vadd.f32 %v1838_v48, %v5353_v5  ;;  %v1836_v51 = vadd.f32 %v1823_v36, %v1777_v45  ;;  %v1876_v5 = vpop.permute.xlu0 %1875 }
 0xb87   :  { %4651 = vpow2.f32 %v3882_v49  ;;  %v3885_v56 = vmul.f32 -1.442695, %v1842_v23  ;;  %v1840_v59 = vadd.f32 %v1836_v51, %v5360_v46  ;;  %v1878_v46 = vpop.permute.xlu1 %1877 }
 0xb89   :  { %4653 = vpow2.f32 %v3885_v56  ;;  %v3883_v60 = vmul.f32 -1.442695, %v1840_v59  ;;  %v1872_v28 = vpop.permute.xlu0 %1871 }
 0xb8b   :  { %4655 = vpow2.f32 %v3883_v60  ;;  %v1874_v32 = vpop.permute.xlu1 %1873 }
 0xb92   :  { %v4650_v17 = vpop.eup %4649 }
 0xb93   :  { %v1857_v18 = vadd.f32 1.0, %v4650_v17 }
 0xb94   :  { %v4652_v29 = vpop.eup %4651 }
 0xb95   :  { %4657 = vrcp.f32 %v1857_v18  ;;  %v1855_v20 = vadd.f32 1.0, %v4652_v29 }
 0xb96   :  { %v4654_v12 = vpop.eup %4653 }
 0xb97   :  { %4659 = vrcp.f32 %v1855_v20  ;;  %v1858_v21 = vadd.f32 1.0, %v4654_v12 }
 0xb98   :  { %v4656_v7 = vpop.eup %4655 }
 0xb99   :  { %4661 = vrcp.f32 %v1858_v21  ;;  %v1856_v26 = vadd.f32 1.0, %v4656_v7 }
 0xb9b   :  { %4663 = vrcp.f32 %v1856_v26 }
 0xba2   :  { %v4658_v54 = vpop.eup %4657 }
 0xba3   :  { %v1885_v1 = vmul.f32 %v4658_v54, %v1876_v5 }
 0xba4   :  { %v4660_v6 = vpop.eup %4659 }
 0xba5   :  { %1895 = vrot.lane.b32.xlu0 %v1885_v1, %s4859_s26  ;;  %v1883_v2 = vmul.f32 %v4660_v6, %v1872_v28  ;;  %v1911_v59 = vsub.f32 1.0, %v4660_v6  ;;  %v1935_v7 = vmul.f32 %v4660_v6, %v5255_v34 }
 0xba6   :  { %v4662_v27 = vpop.eup %4661 }
 0xba7   :  { %v1886_v25 = vmul.f32 %v4662_v27, %v1878_v46  ;;  %v1914_v49 = vsub.f32 1.0, %v4662_v27  ;;  %v1938_v60 = vmul.f32 %v4662_v27, %v5249_v15 }
 0xba8   :  { %v4664_v31 = vpop.eup %4663 }
 0xba9   :  { %1891 = vrot.lane.b32.xlu0 %v1883_v2, %s4859_s26  ;;  %1897 = vrot.lane.b32.xlu1 %v1886_v25, %s4859_s26  ;;  %v1884_v58 = vmul.f32 %v4664_v31, %v1874_v32  ;;  %v1912_v12 = vsub.f32 1.0, %v4664_v31  ;;  %v1936_v26 = vmul.f32 %v4664_v31, %v5257_v53 }
 0xbad   :  { %1893 = vrot.lane.b32.xlu1 %v1884_v58, %s4859_s26 }
 0xc17   :  { %v1896_v63 = vpop.permute.xlu0 %1895 }
 0xc18   :  { %v1905_v38 = vadd.f32 %v1896_v63, %v1837_v37 }
 0xc1a   :  { %4665 = vtanh.f32 %v1905_v38 }
 0xc1b   :  { %v1892_v40 = vpop.permute.xlu0 %1891  ;;  %v1898_v43 = vpop.permute.xlu1 %1897 }
 0xc1c   :  { %v1903_v39 = vadd.f32 %v1892_v40, %v1835_v13  ;;  %v1906_v19 = vadd.f32 %v1898_v43, %v1838_v48  ;;  %v1913_v13 = vsub.f32 1.0, %v4658_v54 }
 0xc1e   :  { %4667 = vtanh.f32 %v1903_v39 }
 0xc1f   :  { %4669 = vtanh.f32 %v1906_v19  ;;  %v1894_v30 = vpop.permute.xlu1 %1893 }
 0xc20   :  { %v1904_v14 = vadd.f32 %v1894_v30, %v1836_v51  ;;  %v1937_v51 = vmul.f32 %v4658_v54, %v5247_v11 }
 0xc22   :  { %4671 = vtanh.f32 %v1904_v14 }
 0xc27   :  { %v4666_v45 = vpop.eup %4665 }
 0xc28   :  { %1923 = vrot.lane.b32.xlu0 %v4666_v45, %s4861_s28 }
 0xc2b   :  { %v4668_v33 = vpop.eup %4667 }
 0xc2c   :  { %v4670_v47 = vpop.eup %4669  ;;  %1919 = vrot.lane.b32.xlu0 %v4668_v33, %s4861_s28 }
 0xc2d   :  { %1925 = vrot.lane.b32.xlu1 %v4670_v47, %s4861_s28 }
 0xc2f   :  { %v4672_v37 = vpop.eup %4671 }
 0xc31   :  { %1921 = vrot.lane.b32.xlu1 %v4672_v37, %s4861_s28 }
 0xc9a   :  { %v1924_v36 = vpop.permute.xlu0 %1923 }
 0xc9b   :  { %v1933_v48 = vmul.f32 %v1924_v36, %v1913_v13 }
 0xc9d   :  { %v5420_v18 = vadd.f32 %v1937_v51, %v1933_v48 }
 0xc9e   :  { %v1920_v23 = vpop.permute.xlu0 %1919 }
 0xc9f   :  { %v1926_v56 = vpop.permute.xlu1 %1925  ;;  %v1931_v29 = vmul.f32 %v1920_v23, %v1911_v59 }
 0xca0   :  { %v1934_v17 = vmul.f32 %v1926_v56, %v1914_v49 }
 0xca1   :  { %v5428_v11 = vadd.f32 %v1935_v7, %v1931_v29 }
 0xca2   :  { %v5422_v20 = vadd.f32 %v1938_v60, %v1934_v17 }
 0xca3   :  { %v1922_v21 = vpop.permute.xlu1 %1921 }
 0xca4   :  { %v1932_v5 = vmul.f32 %v1922_v21, %v1912_v12  ;;  %v1944_v1 = vpack.c.bf16 %v5422_v20, %v5420_v18 }
 0xca6   :  { %v5430_v54 = vadd.f32 %v1936_v26, %v1932_v5  ;;  %1949 = vrot.lane.b32.xlu0 %v1944_v1, %s4861_s28 }
 0xca8   :  { %v1943_v15 = vpack.c.bf16 %v5430_v54, %v5428_v11 }
 0xcaa   :  { %1947 = vrot.lane.b32.xlu1 %v1943_v15, %s4861_s28 }
 0xd18   :  { %v1950_v46 = vpop.permute.xlu0 %1949 }
 0xd19   :  { %4351 = vmatprep.subr.bf16.mxu0 %v1950_v46 }
 0xd1a   :  { %4352 = vmatpush3.bf16.msra.mxu0 %v1950_v46 }
 0xd1c   :  { %v1948_v34 = vpop.permute.xlu1 %1947 }
 0xd1d   :  { %4353 = vmatprep.subr.bf16.mxu0 %v1948_v34  ;;  %4371 = vmatprep.mubr.msk.bf16.mxu1 %vm132_vm0, %v1948_v34 }
 0xd1e   :  { %4354 = vmatpush3.bf16.msra.mxu0 %v1948_v34  ;;  %4372 = vmatmul.mubr.msk.bf16.vlgmr.msra.gmra.mxu1 %vm132_vm0, %v1950_v46 }
 0xd1f   :  { %4391 = vmatprep.subr.bf16.mxu0 %v5268_v42  ;;  %4376 = vmatpush3.bf16.msra.mxu1 %v5274_v41 }
 0xd20   :  { %4377 = vmatprep.subr.bf16.mxu1 %v5280_v55 }
 0xd21   :  { %4356 = vmatmul.mubr.msk.bf16.vlgmr.msra.gmra.mxu0 %vm132_vm0, %v5286_v0 }
 0xd22   :  { %4359 = vmatprep.mubr.msk.bf16.mxu0 %vm132_vm0, %v5293_v57  ;;  %4392 = vmatpush3.bf16.msra.mxu0 %v5268_v42 }
 0xd23   :  { %4378 = vmatpush3.bf16.msra.mxu1 %v5280_v55  ;;  %4393 = vmatprep.subr.bf16.mxu0 %v5302_v3 }
 0xd24   :  { %4383 = vmatprep.subr.bf16.mxu1 %v5308_v44 }
 0xd26   :  { %4394 = vmatpush3.bf16.msra.mxu0 %v5302_v3 }
 0xd27   :  { %4415 = vmatprep.subr.bf16.mxu0 %v5315_v61 }
 0xd29   :  { %4360 = vmatmul.mubr.msk.bf16.gmra.mxu0 %vm132_vm0, %v5321_v22 }
 0xd2a   :  { %4363 = vmatprep.mubr.msk.bf16.mxu0 %vm132_vm0, %v5328_v50 }
 0xd31   :  { %4364 = vmatmul.mubr.msk.bf16.gmra.mxu0 %vm132_vm0, %v5335_v8 }
 0xdde   :  { %v4373_v53 = vpop.f32.mrf.mxu1 }
 0xddf   :  { %v2089_v6 = vadd.f32 %v5342_v16, %v4373_v53 }
 0xde0   :  { %v2080_v27 = vpop.f32.mrf.mxu1 }
 0xde1   :  { %2308 = vrot.lane.b32.xlu0 %v2089_v6, %s4859_s26  ;;  %v4357_v28 = vpop.f32.mrf.mxu0  ;;  %v2081_v25 = vadd.f32 %v5342_v16, %v2080_v27 }
 0xde2   :  { %v4374_v2 = vpop.f32.mrf.mxu1 }
 0xde3   :  { %v5461_v31 = vadd.f32 %v5342_v16, %v4374_v2  ;;  %v1987_v32 = vpop.f32.mrf.mxu0 }
 0xde4   :  { %v2083_v58 = vpop.f32.mrf.mxu1 }
 0xde5   :  { %2310 = vrot.lane.b32.xlu1 %v5461_v31, %s4859_s26  ;;  %2304 = vrot.lane.b32.xlu0 %v2081_v25, %s4859_s26  ;;  %v4358_v63 = vpop.f32.mrf.mxu0  ;;  %v5467_v38 = vadd.f32 %v5342_v16, %v2083_v58 }
 0xde6   :  { %v2035_v39 = vpack.c.bf16 %v4358_v63, %v4357_v28 }
 0xde7   :  { %v1990_v40 = vpop.f32.mrf.mxu0 }
 0xde8   :  { %v2034_v43 = vpack.c.bf16 %v1990_v40, %v1987_v32 }
 0xde9   :  { %2306 = vrot.lane.b32.xlu1 %v5467_v38, %s4859_s26  ;;  %v4361_v19 = vpop.f32.mrf.mxu0 }
 0xdea   :  { %4379 = vmatprep.mubr.msk.bf16.mxu1 %vm132_vm0, %v2034_v43 }
 0xdeb   :  { %v2003_v30 = vpop.f32.mrf.mxu0  ;;  %4380 = vmatmul.mubr.msk.bf16.vlgmr.msra.gmra.mxu1 %vm132_vm0, %v2035_v39 }
 0xdec   :  { %4384 = vmatpush3.bf16.msra.mxu1 %v5308_v44 }
 0xded   :  { %v4362_v14 = vpop.f32.mrf.mxu0  ;;  %4385 = vmatprep.subr.bf16.mxu1 %v5370_v52 }
 0xdee   :  { %v2037_v47 = vpack.c.bf16 %v4362_v14, %v4361_v19 }
 0xdef   :  { %v2006_v45 = vpop.f32.mrf.mxu0 }
 0xdf0   :  { %v2036_v33 = vpack.c.bf16 %v2006_v45, %v2003_v30  ;;  %4386 = vmatpush3.bf16.msra.mxu1 %v5370_v52 }
 0xdf1   :  { %v4365_v37 = vpop.f32.mrf.mxu0 }
 0xdf2   :  { %4387 = vmatprep.mubr.msk.bf16.mxu1 %vm132_vm0, %v2036_v33 }
 0xdf3   :  { %v2019_v36 = vpop.f32.mrf.mxu0  ;;  %4388 = vmatmul.mubr.msk.bf16.vlgmr.msra.gmra.mxu1 %vm132_vm0, %v2037_v47 }
 0xdf4   :  { %4403 = vmatprep.mubr.msk.bf16.mxu1 %vm132_vm0, %v5379_v62 }
 0xdf5   :  { %v4366_v13 = vpop.f32.mrf.mxu0 }
 0xdf6   :  { %v2039_v23 = vpack.c.bf16 %v4366_v13, %v4365_v37 }
 0xdf7   :  { %v2022_v48 = vpop.f32.mrf.mxu0 }
 0xdf8   :  { %v2038_v49 = vpack.c.bf16 %v2022_v48, %v2019_v36 }
 0xdfa   :  { %4395 = vmatprep.mubr.msk.bf16.mxu0 %vm132_vm0, %v2038_v49 }
 0xdfb   :  { %4396 = vmatmul.mubr.msk.bf16.vlgmr.msra.gmra.mxu0 %vm132_vm0, %v2039_v23 }
 0xdfc   :  { %4416 = vmatpush3.bf16.msra.mxu0 %v5315_v61 }
 0xdfd   :  { %4417 = vmatprep.subr.bf16.mxu0 %v5389_v24 }
 0xe00   :  { %4418 = vmatpush3.bf16.msra.mxu0 %v5389_v24 }
 0xe01   :  { %4423 = vmatprep.subr.bf16.mxu0 %v5274_v41 }
 0xeab   :  { %v4381_v56 = vpop.f32.mrf.mxu1 }
 0xeac   :  { %v2152_v12 = vadd.f32 %v5394_v10, %v4381_v56 }
 0xead   :  { %v2135_v51 = vpop.f32.mrf.mxu1 }
 0xeae   :  { %v2150_v7 = vadd.f32 %v5397_v4, %v2135_v51 }
 0xeaf   :  { %v4382_v59 = vpop.f32.mrf.mxu1 }
 0xeb0   :  { %v2153_v1 = vadd.f32 %v5400_v35, %v4382_v59 }
 0xeb1   :  { %v2138_v60 = vpop.f32.mrf.mxu1 }
 0xeb2   :  { %v2151_v27 = vadd.f32 %v5403_v9, %v2138_v60 }
 0xeb3   :  { %v4389_v17 = vpop.f32.mrf.mxu1 }
 0xeb4   :  { %v2211_v26 = vadd.f32 %v4389_v17, %v2152_v12 }
 0xeb5   :  { %v2194_v29 = vpop.f32.mrf.mxu1 }
 0xeb6   :  { %v2209_v15 = vadd.f32 %v2194_v29, %v2150_v7 }
 0xeb7   :  { %v4390_v21 = vpop.f32.mrf.mxu1 }
 0xeb8   :  { %v2212_v28 = vadd.f32 %v4390_v21, %v2153_v1 }
 0xeb9   :  { %v2197_v34 = vpop.f32.mrf.mxu1 }
 0xeba   :  { %v2210_v63 = vadd.f32 %v2197_v34, %v2151_v27 }
 0xebb   :  { %v4397_v5 = vpop.f32.mrf.mxu0 }
 0xebc   :  { %v2270_v46 = vadd.f32 %v4397_v5, %v2211_v26 }
 0xebd   :  { %v2253_v53 = vpop.f32.mrf.mxu0 }
 0xebe   :  { %v2274_v2 = vadd.f32 %v2270_v46, %v2089_v6  ;;  %v2268_v32 = vadd.f32 %v2253_v53, %v2209_v15 }
 0xebf   :  { %v4398_v58 = vpop.f32.mrf.mxu0 }
 0xec0   :  { %v3902_v40 = vmul.f32 -1.442695, %v2274_v2  ;;  %v2272_v43 = vadd.f32 %v2268_v32, %v2081_v25  ;;  %v2271_v39 = vadd.f32 %v4398_v58, %v2212_v28 }
 0xec1   :  { %v2256_v19 = vpop.f32.mrf.mxu0 }
 0xec2   :  { %4673 = vpow2.f32 %v3902_v40  ;;  %v3900_v30 = vmul.f32 -1.442695, %v2272_v43  ;;  %v2275_v14 = vadd.f32 %v2271_v39, %v5461_v31  ;;  %v2269_v45 = vadd.f32 %v2256_v19, %v2210_v63  ;;  %v2309_v31 = vpop.permute.xlu0 %2308 }
 0xec4   :  { %4675 = vpow2.f32 %v3900_v30  ;;  %v3903_v33 = vmul.f32 -1.442695, %v2275_v14  ;;  %v2273_v47 = vadd.f32 %v2269_v45, %v5467_v38  ;;  %v2311_v38 = vpop.permute.xlu1 %2310 }
 0xec6   :  { %4677 = vpow2.f32 %v3903_v33  ;;  %v3901_v37 = vmul.f32 -1.442695, %v2273_v47  ;;  %v2305_v29 = vpop.permute.xlu0 %2304 }
 0xec8   :  { %4679 = vpow2.f32 %v3901_v37  ;;  %v2307_v26 = vpop.permute.xlu1 %2306 }
 0xecf   :  { %v4674_v6 = vpop.eup %4673 }
 0xed0   :  { %v2290_v36 = vadd.f32 1.0, %v4674_v6 }
 0xed1   :  { %v4676_v13 = vpop.eup %4675 }
 0xed2   :  { %4681 = vrcp.f32 %v2290_v36  ;;  %v2288_v48 = vadd.f32 1.0, %v4676_v13 }
 0xed3   :  { %v4678_v25 = vpop.eup %4677 }
 0xed4   :  { %4683 = vrcp.f32 %v2288_v48  ;;  %v2291_v49 = vadd.f32 1.0, %v4678_v25 }
 0xed5   :  { %v4680_v23 = vpop.eup %4679 }
 0xed6   :  { %4685 = vrcp.f32 %v2291_v49  ;;  %v2289_v56 = vadd.f32 1.0, %v4680_v23 }
 0xed8   :  { %4687 = vrcp.f32 %v2289_v56 }
 0xedf   :  { %v4682_v51 = vpop.eup %4681 }
 0xee0   :  { %v2318_v59 = vmul.f32 %v4682_v51, %v2309_v31 }
 0xee1   :  { %v4684_v60 = vpop.eup %4683 }
 0xee2   :  { %2328 = vrot.lane.b32.xlu0 %v2318_v59, %s4859_s26  ;;  %v2316_v12 = vmul.f32 %v4684_v60, %v2305_v29  ;;  %v2344_v47 = vsub.f32 1.0, %v4684_v60  ;;  %v2368_v23 = vmul.f32 %v4684_v60, %v5428_v11 }
 0xee3   :  { %v4686_v17 = vpop.eup %4685 }
 0xee4   :  { %v2319_v21 = vmul.f32 %v4686_v17, %v2311_v38  ;;  %v2347_v30 = vsub.f32 1.0, %v4686_v17  ;;  %v2371_v37 = vmul.f32 %v4686_v17, %v5422_v20 }
 0xee5   :  { %v4688_v7 = vpop.eup %4687 }
 0xee6   :  { %2324 = vrot.lane.b32.xlu0 %v2316_v12, %s4859_s26  ;;  %2330 = vrot.lane.b32.xlu1 %v2319_v21, %s4859_s26  ;;  %v2317_v5 = vmul.f32 %v4688_v7, %v2307_v26  ;;  %v2345_v25 = vsub.f32 1.0, %v4688_v7  ;;  %v2369_v56 = vmul.f32 %v4688_v7, %v5430_v54 }
 0xeea   :  { %2326 = vrot.lane.b32.xlu1 %v2317_v5, %s4859_s26 }
 0xf54   :  { %v2329_v1 = vpop.permute.xlu0 %2328 }
 0xf55   :  { %v2338_v15 = vadd.f32 %v2329_v1, %v2270_v46 }
 0xf57   :  { %4689 = vtanh.f32 %v2338_v15 }
 0xf58   :  { %v2325_v34 = vpop.permute.xlu0 %2324  ;;  %v2331_v53 = vpop.permute.xlu1 %2330 }
 0xf59   :  { %v2336_v27 = vadd.f32 %v2325_v34, %v2268_v32  ;;  %v2339_v28 = vadd.f32 %v2331_v53, %v2271_v39  ;;  %v2346_v32 = vsub.f32 1.0, %v4682_v51 }
 0xf5b   :  { %4691 = vtanh.f32 %v2336_v27 }
 0xf5c   :  { %4693 = vtanh.f32 %v2339_v28  ;;  %v2327_v2 = vpop.permute.xlu1 %2326 }
 0xf5d   :  { %v2337_v58 = vadd.f32 %v2327_v2, %v2269_v45  ;;  %v2370_v45 = vmul.f32 %v4682_v51, %v5420_v18 }
 0xf5f   :  { %4695 = vtanh.f32 %v2337_v58 }
 0xf64   :  { %v4690_v63 = vpop.eup %4689 }
 0xf65   :  { %2356 = vrot.lane.b32.xlu0 %v4690_v63, %s4861_s28 }
 0xf68   :  { %v4692_v40 = vpop.eup %4691 }
 0xf69   :  { %v4694_v43 = vpop.eup %4693  ;;  %2352 = vrot.lane.b32.xlu0 %v4692_v40, %s4861_s28 }
 0xf6a   :  { %2358 = vrot.lane.b32.xlu1 %v4694_v43, %s4861_s28 }
 0xf6c   :  { %v4696_v46 = vpop.eup %4695 }
 0xf6e   :  { %2354 = vrot.lane.b32.xlu1 %v4696_v46, %s4861_s28 }
 0xfd7   :  { %v2357_v19 = vpop.permute.xlu0 %2356 }
 0xfd8   :  { %v2366_v39 = vmul.f32 %v2357_v19, %v2346_v32 }
 0xfda   :  { %v5502_v36 = vadd.f32 %v2370_v45, %v2366_v39 }
 0xfdb   :  { %v2353_v14 = vpop.permute.xlu0 %2352 }
 0xfdc   :  { %v2359_v33 = vpop.permute.xlu1 %2358  ;;  %v2364_v13 = vmul.f32 %v2353_v14, %v2344_v47 }
 0xfdd   :  { %v2367_v6 = vmul.f32 %v2359_v33, %v2347_v30 }
 0xfde   :  { %v5510_v18 = vadd.f32 %v2368_v23, %v2364_v13 }
 0xfdf   :  { %v5504_v48 = vadd.f32 %v2371_v37, %v2367_v6 }
 0xfe0   :  { %v2355_v49 = vpop.permute.xlu1 %2354 }
 0xfe1   :  { %v2365_v31 = vmul.f32 %v2355_v49, %v2345_v25  ;;  %v2377_v59 = vpack.c.bf16 %v5504_v48, %v5502_v36 }
 0xfe3   :  { %v5512_v51 = vadd.f32 %v2369_v56, %v2365_v31  ;;  %2382 = vrot.lane.b32.xlu0 %v2377_v59, %s4861_s28 }
 0xfe5   :  { %v2376_v20 = vpack.c.bf16 %v5512_v51, %v5510_v18 }
 0xfe7   :  { %2380 = vrot.lane.b32.xlu1 %v2376_v20, %s4861_s28 }
0x1055   :  { %v2383_v38 = vpop.permute.xlu0 %2382 }
0x1056   :  { %4399 = vmatprep.subr.bf16.mxu1 %v2383_v38 }
0x1057   :  { %4400 = vmatpush3.bf16.msra.mxu1 %v2383_v38 }
0x1059   :  { %v2381_v11 = vpop.permute.xlu1 %2380 }
0x105a   :  { %4401 = vmatprep.subr.bf16.mxu1 %v2381_v11  ;;  %4419 = vmatprep.mubr.msk.bf16.mxu0 %vm132_vm0, %v2381_v11 }
0x105b   :  { %4402 = vmatpush3.bf16.msra.mxu1 %v2381_v11  ;;  %4420 = vmatmul.mubr.msk.bf16.vlgmr.msra.gmra.mxu0 %vm132_vm0, %v2383_v38 }
0x105c   :  { %4439 = vmatprep.subr.bf16.mxu1 %v5268_v42  ;;  %4424 = vmatpush3.bf16.msra.mxu0 %v5274_v41 }
0x105d   :  { %4425 = vmatprep.subr.bf16.mxu0 %v5280_v55 }
0x105e   :  { %4404 = vmatmul.mubr.msk.bf16.vlgmr.msra.gmra.mxu1 %vm132_vm0, %v5286_v0 }
0x105f   :  { %4407 = vmatprep.mubr.msk.bf16.mxu1 %vm132_vm0, %v5293_v57  ;;  %4440 = vmatpush3.bf16.msra.mxu1 %v5268_v42 }
0x1060   :  { %4426 = vmatpush3.bf16.msra.mxu0 %v5280_v55  ;;  %4441 = vmatprep.subr.bf16.mxu1 %v5302_v3 }
0x1061   :  { %4431 = vmatprep.subr.bf16.mxu0 %v5308_v44 }
0x1063   :  { %4442 = vmatpush3.bf16.msra.mxu1 %v5302_v3 }
0x1064   :  { %4463 = vmatprep.subr.bf16.mxu1 %v5315_v61 }
0x1066   :  { %4408 = vmatmul.mubr.msk.bf16.gmra.mxu1 %vm132_vm0, %v5321_v22 }
0x1067   :  { %4411 = vmatprep.mubr.msk.bf16.mxu1 %vm132_vm0, %v5328_v50 }
0x106e   :  { %4412 = vmatmul.mubr.msk.bf16.gmra.mxu1 %vm132_vm0, %v5335_v8 }
0x111b   :  { %v4421_v42 = vpop.f32.mrf.mxu0 }
0x111c   :  { %v2522_v55 = vadd.f32 %v5342_v16, %v4421_v42 }
0x111d   :  { %v2513_v0 = vpop.f32.mrf.mxu0 }
0x111e   :  { %2741 = vrot.lane.b32.xlu0 %v2522_v55, %s4859_s26  ;;  %v4405_v57 = vpop.f32.mrf.mxu1  ;;  %v2514_v3 = vadd.f32 %v5342_v16, %v2513_v0 }
0x111f   :  { %v4422_v54 = vpop.f32.mrf.mxu0 }
0x1120   :  { %v5543_v60 = vadd.f32 %v5342_v16, %v4422_v54  ;;  %v2420_v22 = vpop.f32.mrf.mxu1 }
0x1121   :  { %v2516_v17 = vpop.f32.mrf.mxu0 }
0x1122   :  { %2743 = vrot.lane.b32.xlu1 %v5543_v60, %s4859_s26  ;;  %2737 = vrot.lane.b32.xlu0 %v2514_v3, %s4859_s26  ;;  %v4406_v50 = vpop.f32.mrf.mxu1  ;;  %v5549_v8 = vadd.f32 %v5342_v16, %v2516_v17 }
0x1123   :  { %v2468_v21 = vpack.c.bf16 %v4406_v50, %v4405_v57 }
0x1124   :  { %v2423_v29 = vpop.f32.mrf.mxu1 }
0x1125   :  { %v2467_v12 = vpack.c.bf16 %v2423_v29, %v2420_v22 }
0x1126   :  { %2739 = vrot.lane.b32.xlu1 %v5549_v8, %s4859_s26  ;;  %v4409_v7 = vpop.f32.mrf.mxu1 }
0x1127   :  { %4427 = vmatprep.mubr.msk.bf16.mxu0 %vm132_vm0, %v2467_v12 }
0x1128   :  { %v2436_v26 = vpop.f32.mrf.mxu1  ;;  %4428 = vmatmul.mubr.msk.bf16.vlgmr.msra.gmra.mxu0 %vm132_vm0, %v2468_v21 }
0x1129   :  { %4432 = vmatpush3.bf16.msra.mxu0 %v5308_v44 }
0x112a   :  { %v4410_v5 = vpop.f32.mrf.mxu1  ;;  %4433 = vmatprep.subr.bf16.mxu0 %v5370_v52 }
0x112b   :  { %v2470_v15 = vpack.c.bf16 %v4410_v5, %v4409_v7 }
0x112c   :  { %v2439_v1 = vpop.f32.mrf.mxu1 }
0x112d   :  { %v2469_v16 = vpack.c.bf16 %v2439_v1, %v2436_v26  ;;  %4434 = vmatpush3.bf16.msra.mxu0 %v5370_v52 }
0x112e   :  { %v4413_v34 = vpop.f32.mrf.mxu1 }
0x112f   :  { %4435 = vmatprep.mubr.msk.bf16.mxu0 %vm132_vm0, %v2469_v16 }
0x1130   :  { %v2452_v53 = vpop.f32.mrf.mxu1  ;;  %4436 = vmatmul.mubr.msk.bf16.vlgmr.msra.gmra.mxu0 %vm132_vm0, %v2470_v15 }
0x1131   :  { %4451 = vmatprep.mubr.msk.bf16.mxu0 %vm132_vm0, %v5379_v62 }
0x1132   :  { %v4414_v27 = vpop.f32.mrf.mxu1 }
0x1133   :  { %v2472_v2 = vpack.c.bf16 %v4414_v27, %v4413_v34 }
0x1134   :  { %v2455_v28 = vpop.f32.mrf.mxu1 }
0x1135   :  { %v2471_v44 = vpack.c.bf16 %v2455_v28, %v2452_v53 }
0x1137   :  { %4443 = vmatprep.mubr.msk.bf16.mxu1 %vm132_vm0, %v2471_v44 }
0x1138   :  { %4444 = vmatmul.mubr.msk.bf16.vlgmr.msra.gmra.mxu1 %vm132_vm0, %v2472_v2 }
0x1139   :  { %4464 = vmatpush3.bf16.msra.mxu1 %v5315_v61 }
0x113a   :  { %4465 = vmatprep.subr.bf16.mxu1 %v5389_v24 }
0x113d   :  { %4466 = vmatpush3.bf16.msra.mxu1 %v5389_v24 }
0x113e   :  { %4471 = vmatprep.subr.bf16.mxu1 %v5274_v41 }
0x11e8   :  { %v4429_v52 = vpop.f32.mrf.mxu0 }
0x11e9   :  { %v2585_v46 = vadd.f32 %v5394_v10, %v4429_v52 }
0x11ea   :  { %v2568_v58 = vpop.f32.mrf.mxu0 }
0x11eb   :  { %v2583_v32 = vadd.f32 %v5397_v4, %v2568_v58 }
0x11ec   :  { %v4430_v63 = vpop.f32.mrf.mxu0 }
0x11ed   :  { %v2586_v61 = vadd.f32 %v5400_v35, %v4430_v63 }
0x11ee   :  { %v2571_v62 = vpop.f32.mrf.mxu0 }
0x11ef   :  { %v2584_v41 = vadd.f32 %v5403_v9, %v2571_v62 }
0x11f0   :  { %v4437_v40 = vpop.f32.mrf.mxu0 }
0x11f1   :  { %v2644_v39 = vadd.f32 %v4437_v40, %v2585_v46 }
0x11f2   :  { %v2627_v43 = vpop.f32.mrf.mxu0 }
0x11f3   :  { %v2642_v14 = vadd.f32 %v2627_v43, %v2583_v32 }
0x11f4   :  { %v4438_v19 = vpop.f32.mrf.mxu0 }
0x11f5   :  { %v2645_v47 = vadd.f32 %v4438_v19, %v2586_v61 }
0x11f6   :  { %v2630_v24 = vpop.f32.mrf.mxu0 }
0x11f7   :  { %v2643_v25 = vadd.f32 %v2630_v24, %v2584_v41 }
0x11f8   :  { %v4445_v30 = vpop.f32.mrf.mxu1 }
0x11f9   :  { %v2703_v33 = vadd.f32 %v4445_v30, %v2644_v39 }
0x11fa   :  { %v2686_v45 = vpop.f32.mrf.mxu1 }
0x11fb   :  { %v2707_v37 = vadd.f32 %v2703_v33, %v2522_v55  ;;  %v2701_v6 = vadd.f32 %v2686_v45, %v2642_v14 }
0x11fc   :  { %v4446_v13 = vpop.f32.mrf.mxu1 }
0x11fd   :  { %v3920_v49 = vmul.f32 -1.442695, %v2707_v37  ;;  %v2705_v10 = vadd.f32 %v2701_v6, %v2514_v3  ;;  %v2704_v23 = vadd.f32 %v4446_v13, %v2645_v47 }
0x11fe   :  { %v2689_v56 = vpop.f32.mrf.mxu1 }
0x11ff   :  { %4697 = vpow2.f32 %v3920_v49  ;;  %v3918_v4 = vmul.f32 -1.442695, %v2705_v10  ;;  %v2708_v31 = vadd.f32 %v2704_v23, %v5543_v60  ;;  %v2702_v35 = vadd.f32 %v2689_v56, %v2643_v25  ;;  %v2742_v60 = vpop.permute.xlu0 %2741  ;;  %v5611_v56 = vld [vmem:[%s5831_s2 + $0x8] sm:$0xff]  }
0x1201   :  { %4699 = vpow2.f32 %v3918_v4  ;;  %v3921_v59 = vmul.f32 -1.442695, %v2708_v31  ;;  %v2706_v20 = vadd.f32 %v2702_v35, %v5549_v8  ;;  %v2744_v8 = vpop.permute.xlu1 %2743  ;;  %v5617_v4 = vld [vmem:[%s5831_s2] sm:$0xff]   ;;  %v5623_v31 = vld [vmem:[%s5830_s1 + $0x8] sm:$0xff]  }
0x1203   :  { %4701 = vpow2.f32 %v3921_v59  ;;  %v3919_v9 = vmul.f32 -1.442695, %v2706_v20  ;;  %v2738_v12 = vpop.permute.xlu0 %2737  ;;  %v5639_v59 = vld [vmem:[%s5831_s2 + $0x20] sm:$0xff]   ;;  %v5645_v20 = vld [vmem:[%s5831_s2 + $0x18] sm:$0xff]  }
0x1205   :  { %4703 = vpow2.f32 %v3919_v9  ;;  %v2740_v5 = vpop.permute.xlu1 %2739  ;;  %v4799_v9 = vld [vmem:[%s5833_s4 + $0x8] sm:$0xff]  }
0x120c   :  { %v4698_v38 = vpop.eup %4697 }
0x120d   :  { %v2723_v11 = vadd.f32 1.0, %v4698_v38  ;;  %v5655_v38 = vld [vmem:[%s5830_s1 + $0x18] sm:$0xff]  }
0x120e   :  { %v4700_v42 = vpop.eup %4699 }
0x120f   :  { %4705 = vrcp.f32 %v2723_v11  ;;  %v2721_v55 = vadd.f32 1.0, %v4700_v42  ;;  %v5662_v11 = vld [vmem:[%s5830_s1 + $0x20] sm:$0xff]   ;;  %v5669_v42 = vld [vmem:[%s5830_s1 + $0x28] sm:$0xff]  }
0x1210   :  { %v4702_v0 = vpop.eup %4701 }
0x1211   :  { %4707 = vrcp.f32 %v2721_v55  ;;  %v2724_v57 = vadd.f32 1.0, %v4702_v0  ;;  %v5676_v0 = vld [vmem:[%s5834_s5] ss:$0 sm:$0xff] }
0x1212   :  { %v4704_v54 = vpop.eup %4703 }
0x1213   :  { %4709 = vrcp.f32 %v2724_v57  ;;  %v2722_v3 = vadd.f32 1.0, %v4704_v54 }
0x1215   :  { %4711 = vrcp.f32 %v2722_v3 }
0x121c   :  { %v4706_v22 = vpop.eup %4705 }
0x121d   :  { %v2751_v17 = vmul.f32 %v4706_v22, %v2742_v60  ;;  %v2779_v43 = vsub.f32 1.0, %v4706_v22  ;;  %v2803_v30 = vmul.f32 %v4706_v22, %v5502_v36 }
0x121e   :  { %v4708_v50 = vpop.eup %4707 }
0x121f   :  { %2761 = vrot.lane.b32.xlu0 %v2751_v17, %s4859_s26  ;;  %v2749_v21 = vmul.f32 %v4708_v50, %v2738_v12  ;;  %v2777_v61 = vsub.f32 1.0, %v4708_v50 }
0x1220   :  { %v4710_v29 = vpop.eup %4709 }
0x1221   :  { %v2752_v7 = vmul.f32 %v4710_v29, %v2744_v8  ;;  %v2780_v19 = vsub.f32 1.0, %v4710_v29  ;;  %v2804_v14 = vmul.f32 %v4710_v29, %v5504_v48 }
0x1222   :  { %v4712_v26 = vpop.eup %4711 }
0x1223   :  { %2757 = vrot.lane.b32.xlu0 %v2749_v21, %s4859_s26  ;;  %2763 = vrot.lane.b32.xlu1 %v2752_v7, %s4859_s26  ;;  %v2750_v1 = vmul.f32 %v4712_v26, %v2740_v5  ;;  %v2778_v47 = vsub.f32 1.0, %v4712_v26  ;;  %v2802_v13 = vmul.f32 %v4712_v26, %v5512_v51  ;;  %v5605_v51 = vld [vmem:[%s5831_s2 + $0x28] sm:$0xff]  }
0x1227   :  { %2759 = vrot.lane.b32.xlu1 %v2750_v1, %s4859_s26 }
0x1291   :  { %v2762_v16 = vpop.permute.xlu0 %2761 }
0x1292   :  { %v2771_v15 = vadd.f32 %v2762_v16, %v2703_v33 }
0x1294   :  { %4713 = vtanh.f32 %v2771_v15  ;;  %v5704_v15 = vld [vmem:[%s5831_s2 + $0x10] sm:$0xff]  }
0x1295   :  { %v2758_v34 = vpop.permute.xlu0 %2757  ;;  %v2764_v53 = vpop.permute.xlu1 %2763 }
0x1296   :  { %v2769_v27 = vadd.f32 %v2758_v34, %v2701_v6  ;;  %v2772_v28 = vadd.f32 %v2764_v53, %v2704_v23  ;;  %v2801_v6 = vmul.f32 %v4708_v50, %v5510_v18 }
0x1298   :  { %4715 = vtanh.f32 %v2769_v27 }
0x1299   :  { %4717 = vtanh.f32 %v2772_v28  ;;  %v2760_v44 = vpop.permute.xlu1 %2759 }
0x129a   :  { %v2770_v2 = vadd.f32 %v2760_v44, %v2702_v35  ;;  %v5630_v35 = vld [vmem:[%s5830_s1 + $0x10] sm:$0xff]  }
0x129c   :  { %4719 = vtanh.f32 %v2770_v2  ;;  %v4805_v2 = vld [vmem:[%s5830_s1] sm:$0xff]  }
0x12a1   :  { %v4714_v52 = vpop.eup %4713 }
0x12a2   :  { %2789 = vrot.lane.b32.xlu0 %v4714_v52, %s4861_s28 }
0x12a5   :  { %v4716_v58 = vpop.eup %4715 }
0x12a6   :  { %v4718_v63 = vpop.eup %4717  ;;  %2785 = vrot.lane.b32.xlu0 %v4716_v58, %s4861_s28 }
0x12a7   :  { %2791 = vrot.lane.b32.xlu1 %v4718_v63, %s4861_s28 }
0x12a9   :  { %v4720_v62 = vpop.eup %4719 }
0x12ab   :  { %2787 = vrot.lane.b32.xlu1 %v4720_v62, %s4861_s28 }
0x1314   :  { %v2790_v40 = vpop.permute.xlu0 %2789 }
0x1315   :  { %v2799_v46 = vmul.f32 %v2790_v40, %v2779_v43  ;;  %v4806_v40 = vld [vmem:[%s5833_s4] sm:$0xff]  }
0x1317   :  { %v5584_v24 = vadd.f32 %v2803_v30, %v2799_v46 }
0x1318   :  { %v2786_v32 = vpop.permute.xlu0 %2785 }
0x1319   :  { %v2792_v39 = vpop.permute.xlu1 %2791  ;;  %v2797_v45 = vmul.f32 %v2786_v32, %v2777_v61  ;;  %v5720_v61 = vld [vmem:[#allocation5 + $0x10] sm:$0xff] }
0x131a   :  { %v2800_v33 = vmul.f32 %v2792_v39, %v2780_v19 }
0x131b   :  { %v5592_v36 = vadd.f32 %v2801_v6, %v2797_v45  ;;  %v5723_v45 = vld [vmem:[#allocation5] sm:$0xff] }
0x131c   :  { %v5586_v41 = vadd.f32 %v2804_v14, %v2800_v33 }
0x131d   :  { %v2788_v37 = vpop.permute.xlu1 %2787 }
0x131e   :  { %v2798_v25 = vmul.f32 %v2788_v37, %v2778_v47  ;;  %v2810_v49 = vpack.c.bf16 %v5586_v41, %v5584_v24 }
0x1320   :  { %v5594_v10 = vadd.f32 %v2802_v13, %v2798_v25  ;;  %2815 = vrot.lane.b32.xlu0 %v2810_v49, %s4861_s28  ;;  %v5726_v13 = vld [vmem:[#allocation5 + $0x18] sm:$0xff] }
0x1322   :  { %v2809_v48 = vpack.c.bf16 %v5594_v10, %v5592_v36 }
0x1324   :  { %2813 = vrot.lane.b32.xlu1 %v2809_v48, %s4861_s28 }
0x1392   :  { %v2816_v23 = vpop.permute.xlu0 %2815 }
0x1393   :  { %4447 = vmatprep.subr.bf16.mxu0 %v2816_v23 }
0x1394   :  { %4448 = vmatpush3.bf16.msra.mxu0 %v2816_v23 }
0x1396   :  { %v2814_v18 = vpop.permute.xlu1 %2813 }
0x1397   :  { %4449 = vmatprep.subr.bf16.mxu0 %v2814_v18  ;;  %4467 = vmatprep.mubr.msk.bf16.mxu1 %vm132_vm0, %v2814_v18 }
0x1398   :  { %4450 = vmatpush3.bf16.msra.mxu0 %v2814_v18  ;;  %4468 = vmatmul.mubr.msk.bf16.vlgmr.msra.gmra.mxu1 %vm132_vm0, %v2816_v23 }
0x1399   :  { %4487 = vmatprep.subr.bf16.mxu0 %v5605_v51  ;;  %4472 = vmatpush3.bf16.msra.mxu1 %v5611_v56 }
0x139a   :  { %4473 = vmatprep.subr.bf16.mxu1 %v5617_v4 }
0x139b   :  { %4452 = vmatmul.mubr.msk.bf16.vlgmr.msra.gmra.mxu0 %vm132_vm0, %v5623_v31 }
0x139c   :  { %4455 = vmatprep.mubr.msk.bf16.mxu0 %vm132_vm0, %v5630_v35  ;;  %4488 = vmatpush3.bf16.msra.mxu0 %v5605_v51 }
0x139d   :  { %4474 = vmatpush3.bf16.msra.mxu1 %v5617_v4  ;;  %4489 = vmatprep.subr.bf16.mxu0 %v5639_v59 }
0x139e   :  { %4479 = vmatprep.subr.bf16.mxu1 %v5645_v20 }
0x13a0   :  { %4490 = vmatpush3.bf16.msra.mxu0 %v5639_v59 }
0x13a1   :  { %4511 = vmatprep.subr.bf16.mxu0 %v4799_v9 }
0x13a3   :  { %4456 = vmatmul.mubr.msk.bf16.gmra.mxu0 %vm132_vm0, %v5655_v38 }
0x13a4   :  { %4459 = vmatprep.mubr.msk.bf16.mxu0 %vm132_vm0, %v5662_v11 }
0x13ab   :  { %4460 = vmatmul.mubr.msk.bf16.gmra.mxu0 %vm132_vm0, %v5669_v42 }
0x1458   :  { %v4469_v55 = vpop.f32.mrf.mxu1 }
0x1459   :  { %v5679_v57 = vadd.f32 %v5676_v0, %v4469_v55 }
0x145a   :  { %v2946_v54 = vpop.f32.mrf.mxu1 }
0x145b   :  { %3174 = vrot.lane.b32.xlu0 %v5679_v57, %s4859_s26  ;;  %v4453_v3 = vpop.f32.mrf.mxu0  ;;  %v5684_v22 = vadd.f32 %v5676_v0, %v2946_v54 }
0x145c   :  { %v4470_v60 = vpop.f32.mrf.mxu1 }
0x145d   :  { %v5687_v17 = vadd.f32 %v5676_v0, %v4470_v60  ;;  %v2853_v50 = vpop.f32.mrf.mxu0 }
0x145e   :  { %v2949_v8 = vpop.f32.mrf.mxu1 }
0x145f   :  { %3176 = vrot.lane.b32.xlu1 %v5687_v17, %s4859_s26  ;;  %3170 = vrot.lane.b32.xlu0 %v5684_v22, %s4859_s26  ;;  %v4454_v29 = vpop.f32.mrf.mxu0  ;;  %v5694_v12 = vadd.f32 %v5676_v0, %v2949_v8 }
0x1460   :  { %v2901_v26 = vpack.c.bf16 %v4454_v29, %v4453_v3 }
0x1461   :  { %v2856_v21 = vpop.f32.mrf.mxu0 }
0x1462   :  { %v2900_v7 = vpack.c.bf16 %v2856_v21, %v2853_v50 }
0x1463   :  { %3172 = vrot.lane.b32.xlu1 %v5694_v12, %s4859_s26  ;;  %v4457_v5 = vpop.f32.mrf.mxu0 }
0x1464   :  { %4475 = vmatprep.mubr.msk.bf16.mxu1 %vm132_vm0, %v2900_v7 }
0x1465   :  { %v2869_v1 = vpop.f32.mrf.mxu0  ;;  %4476 = vmatmul.mubr.msk.bf16.vlgmr.msra.gmra.mxu1 %vm132_vm0, %v2901_v26 }
0x1466   :  { %4480 = vmatpush3.bf16.msra.mxu1 %v5645_v20 }
0x1467   :  { %v4458_v16 = vpop.f32.mrf.mxu0  ;;  %4481 = vmatprep.subr.bf16.mxu1 %v5704_v15 }
0x1468   :  { %v2903_v27 = vpack.c.bf16 %v4458_v16, %v4457_v5 }
0x1469   :  { %v2872_v34 = vpop.f32.mrf.mxu0 }
0x146a   :  { %v2902_v53 = vpack.c.bf16 %v2872_v34, %v2869_v1  ;;  %4482 = vmatpush3.bf16.msra.mxu1 %v5704_v15 }
0x146b   :  { %v4461_v28 = vpop.f32.mrf.mxu0 }
0x146c   :  { %4483 = vmatprep.mubr.msk.bf16.mxu1 %vm132_vm0, %v2902_v53 }
0x146d   :  { %v2885_v44 = vpop.f32.mrf.mxu0  ;;  %4484 = vmatmul.mubr.msk.bf16.vlgmr.msra.gmra.mxu1 %vm132_vm0, %v2903_v27 }
0x146e   :  { %4499 = vmatprep.mubr.msk.bf16.mxu1 %vm132_vm0, %v4805_v2 }
0x146f   :  { %v4462_v52 = vpop.f32.mrf.mxu0 }
0x1470   :  { %v2905_v62 = vpack.c.bf16 %v4462_v52, %v4461_v28 }
0x1471   :  { %v2888_v58 = vpop.f32.mrf.mxu0 }
0x1472   :  { %v2904_v63 = vpack.c.bf16 %v2888_v58, %v2885_v44 }
0x1474   :  { %4491 = vmatprep.mubr.msk.bf16.mxu0 %vm132_vm0, %v2904_v63 }
0x1475   :  { %4492 = vmatmul.mubr.msk.bf16.vlgmr.msra.gmra.mxu0 %vm132_vm0, %v2905_v62 }
0x1476   :  { %4512 = vmatpush3.bf16.msra.mxu0 %v4799_v9  ;;  %v5729_v9 = vld [vmem:[#allocation5 + $0x8] sm:$0xff] }
0x1477   :  { %4513 = vmatprep.subr.bf16.mxu0 %v4806_v40 }
0x147a   :  { %4514 = vmatpush3.bf16.msra.mxu0 %v4806_v40 }
0x147b   :  { %4519 = vmatprep.subr.bf16.mxu0 %v5611_v56 }
0x1525   :  { %v4477_v43 = vpop.f32.mrf.mxu1 }
0x1526   :  { %v3018_v14 = vadd.f32 %v5720_v61, %v4477_v43 }
0x1527   :  { %v3001_v46 = vpop.f32.mrf.mxu1 }
0x1528   :  { %v3016_v47 = vadd.f32 %v5723_v45, %v3001_v46 }
0x1529   :  { %v4478_v19 = vpop.f32.mrf.mxu1 }
0x152a   :  { %v3019_v25 = vadd.f32 %v5726_v13, %v4478_v19 }
0x152b   :  { %v3004_v32 = vpop.f32.mrf.mxu1 }
0x152c   :  { %v3017_v55 = vadd.f32 %v5729_v9, %v3004_v32 }
0x152d   :  { %v4485_v39 = vpop.f32.mrf.mxu1 }
0x152e   :  { %v3077_v37 = vadd.f32 %v4485_v39, %v3018_v14 }
0x152f   :  { %v3060_v30 = vpop.f32.mrf.mxu1 }
0x1530   :  { %v3075_v49 = vadd.f32 %v3060_v30, %v3016_v47 }
0x1531   :  { %v4486_v33 = vpop.f32.mrf.mxu1 }
0x1532   :  { %v3078_v54 = vadd.f32 %v4486_v33, %v3019_v25 }
0x1533   :  { %v3063_v23 = vpop.f32.mrf.mxu1 }
0x1534   :  { %v3076_v8 = vadd.f32 %v3063_v23, %v3017_v55 }
0x1535   :  { %v4493_v6 = vpop.f32.mrf.mxu0 }
0x1536   :  { %v3136_v48 = vadd.f32 %v4493_v6, %v3077_v37 }
0x1537   :  { %v3119_v18 = vpop.f32.mrf.mxu0 }
0x1538   :  { %v3140_v3 = vadd.f32 %v3136_v48, %v5679_v57  ;;  %v3134_v60 = vadd.f32 %v3119_v18, %v3075_v49 }
0x1539   :  { %v4494_v50 = vpop.f32.mrf.mxu0 }
0x153a   :  { %v3938_v29 = vmul.f32 -1.442695, %v3140_v3  ;;  %v3138_v21 = vadd.f32 %v3134_v60, %v5684_v22  ;;  %v3137_v7 = vadd.f32 %v4494_v50, %v3078_v54 }
0x153b   :  { %v3122_v26 = vpop.f32.mrf.mxu0 }
0x153c   :  { %4721 = vpow2.f32 %v3938_v29  ;;  %v3936_v5 = vmul.f32 -1.442695, %v3138_v21  ;;  %v3141_v1 = vadd.f32 %v3137_v7, %v5687_v17  ;;  %v3135_v16 = vadd.f32 %v3122_v26, %v3076_v8  ;;  %v3175_v17 = vpop.permute.xlu0 %3174 }
0x153e   :  { %4723 = vpow2.f32 %v3936_v5  ;;  %v3939_v34 = vmul.f32 -1.442695, %v3141_v1  ;;  %v3139_v53 = vadd.f32 %v3135_v16, %v5694_v12  ;;  %v3177_v12 = vpop.permute.xlu1 %3176 }
0x1540   :  { %4725 = vpow2.f32 %v3939_v34  ;;  %v3937_v27 = vmul.f32 -1.442695, %v3139_v53  ;;  %v3171_v19 = vpop.permute.xlu0 %3170 }
0x1542   :  { %4727 = vpow2.f32 %v3937_v27  ;;  %v3173_v14 = vpop.permute.xlu1 %3172 }
0x1549   :  { %v4722_v57 = vpop.eup %4721 }
0x154a   :  { %v3156_v28 = vadd.f32 1.0, %v4722_v57 }
0x154b   :  { %v4724_v44 = vpop.eup %4723 }
0x154c   :  { %4729 = vrcp.f32 %v3156_v28  ;;  %v3154_v2 = vadd.f32 1.0, %v4724_v44 }
0x154d   :  { %v4726_v22 = vpop.eup %4725 }
0x154e   :  { %4731 = vrcp.f32 %v3154_v2  ;;  %v3157_v52 = vadd.f32 1.0, %v4726_v22 }
0x154f   :  { %v4728_v58 = vpop.eup %4727 }
0x1550   :  { %4733 = vrcp.f32 %v3157_v52  ;;  %v3155_v63 = vadd.f32 1.0, %v4728_v58 }
0x1552   :  { %4735 = vrcp.f32 %v3155_v63 }
0x1559   :  { %v4730_v62 = vpop.eup %4729 }
0x155a   :  { %v3184_v40 = vmul.f32 %v4730_v62, %v3175_v17  ;;  %v3236_v5 = vmul.f32 %v4730_v62, %v5584_v24 }
0x155b   :  { %v4732_v43 = vpop.eup %4731 }
0x155c   :  { %3194 = vrot.lane.b32.xlu0 %v3184_v40, %s4859_s26  ;;  %v3182_v32 = vmul.f32 %v4732_v43, %v3171_v19  ;;  %v3210_v1 = vsub.f32 1.0, %v4732_v43  ;;  %v3234_v2 = vmul.f32 %v4732_v43, %v5592_v36 }
0x155d   :  { %v4734_v46 = vpop.eup %4733 }
0x155e   :  { %v3185_v39 = vmul.f32 %v4734_v46, %v3177_v12  ;;  %v3213_v21 = vsub.f32 1.0, %v4734_v46 }
0x155f   :  { %v4736_v30 = vpop.eup %4735 }
0x1560   :  { %3190 = vrot.lane.b32.xlu0 %v3182_v32, %s4859_s26  ;;  %3196 = vrot.lane.b32.xlu1 %v3185_v39, %s4859_s26  ;;  %v3183_v33 = vmul.f32 %v4736_v30, %v3173_v14  ;;  %v3211_v28 = vsub.f32 1.0, %v4736_v30  ;;  %v3235_v52 = vmul.f32 %v4736_v30, %v5594_v10 }
0x1564   :  { %3192 = vrot.lane.b32.xlu1 %v3183_v33, %s4859_s26 }
0x15ce   :  { %v3195_v47 = vpop.permute.xlu0 %3194 }
0x15cf   :  { %v3204_v37 = vadd.f32 %v3195_v47, %v3136_v48 }
0x15d1   :  { %4737 = vtanh.f32 %v3204_v37 }
0x15d2   :  { %v3191_v6 = vpop.permute.xlu0 %3190  ;;  %v3197_v25 = vpop.permute.xlu1 %3196 }
0x15d3   :  { %v3202_v49 = vadd.f32 %v3191_v6, %v3134_v60  ;;  %v3205_v23 = vadd.f32 %v3197_v25, %v3137_v7  ;;  %v3212_v60 = vsub.f32 1.0, %v4730_v62 }
0x15d5   :  { %4739 = vtanh.f32 %v3202_v49 }
0x15d6   :  { %4741 = vtanh.f32 %v3205_v23  ;;  %v3193_v18 = vpop.permute.xlu1 %3192 }
0x15d7   :  { %v3203_v55 = vadd.f32 %v3193_v18, %v3135_v16  ;;  %v3237_v16 = vmul.f32 %v4734_v46, %v5586_v41 }
0x15d9   :  { %4743 = vtanh.f32 %v3203_v55 }
0x15de   :  { %v4738_v54 = vpop.eup %4737 }
0x15df   :  { %3222 = vrot.lane.b32.xlu0 %v4738_v54, %s4861_s28 }
0x15e2   :  { %v4740_v3 = vpop.eup %4739 }
0x15e3   :  { %v4742_v50 = vpop.eup %4741  ;;  %3218 = vrot.lane.b32.xlu0 %v4740_v3, %s4861_s28 }
0x15e4   :  { %3224 = vrot.lane.b32.xlu1 %v4742_v50, %s4861_s28 }
0x15e6   :  { %v4744_v48 = vpop.eup %4743 }
0x15e8   :  { %3220 = vrot.lane.b32.xlu1 %v4744_v48, %s4861_s28 }
0x1651   :  { %v3223_v8 = vpop.permute.xlu0 %3222 }
0x1652   :  { %v3232_v29 = vmul.f32 %v3223_v8, %v3212_v60 }
0x1654   :  { %v5746_v53 = vadd.f32 %v3236_v5, %v3232_v29 }
0x1655   :  { %v3219_v7 = vpop.permute.xlu0 %3218 }
0x1656   :  { %v3225_v26 = vpop.permute.xlu1 %3224  ;;  %v3230_v27 = vmul.f32 %v3219_v7, %v3210_v1 }
0x1657   :  { %v3233_v34 = vmul.f32 %v3225_v26, %v3213_v21 }
0x1658   :  { %v5754_v24 = vadd.f32 %v3234_v2, %v3230_v27 }
0x1659   :  { %v5748_v57 = vadd.f32 %v3237_v16, %v3233_v34 }
0x165a   :  { %v3221_v44 = vpop.permute.xlu1 %3220 }
0x165b   :  { %v3243_v22 = vpack.c.bf16 %v5748_v57, %v5746_v53  ;;  %v3231_v58 = vmul.f32 %v3221_v44, %v3211_v28 }
0x165d   :  { %v5756_v63 = vadd.f32 %v3235_v52, %v3231_v58  ;;  %3248 = vrot.lane.b32.xlu0 %v3243_v22, %s4861_s28 }
0x165f   :  { %v3242_v41 = vpack.c.bf16 %v5756_v63, %v5754_v24 }
0x1661   :  { %3246 = vrot.lane.b32.xlu1 %v3242_v41, %s4861_s28 }
0x16cf   :  { %v3249_v17 = vpop.permute.xlu0 %3248 }
0x16d0   :  { %4495 = vmatprep.subr.bf16.mxu1 %v3249_v17 }
0x16d1   :  { %4496 = vmatpush3.bf16.msra.mxu1 %v3249_v17 }
0x16d3   :  { %v3247_v36 = vpop.permute.xlu1 %3246 }
0x16d4   :  { %4497 = vmatprep.subr.bf16.mxu1 %v3247_v36  ;;  %4515 = vmatprep.mubr.msk.bf16.mxu0 %vm132_vm0, %v3247_v36 }
0x16d5   :  { %4498 = vmatpush3.bf16.msra.mxu1 %v3247_v36  ;;  %4516 = vmatmul.mubr.msk.bf16.vlgmr.msra.gmra.mxu0 %vm132_vm0, %v3249_v17 }
0x16d6   :  { %4535 = vmatprep.subr.bf16.mxu1 %v5605_v51  ;;  %4520 = vmatpush3.bf16.msra.mxu0 %v5611_v56 }
0x16d7   :  { %4521 = vmatprep.subr.bf16.mxu0 %v5617_v4 }
0x16d8   :  { %4500 = vmatmul.mubr.msk.bf16.vlgmr.msra.gmra.mxu1 %vm132_vm0, %v5623_v31 }
0x16d9   :  { %4503 = vmatprep.mubr.msk.bf16.mxu1 %vm132_vm0, %v5630_v35  ;;  %4536 = vmatpush3.bf16.msra.mxu1 %v5605_v51 }
0x16da   :  { %4522 = vmatpush3.bf16.msra.mxu0 %v5617_v4  ;;  %4537 = vmatprep.subr.bf16.mxu1 %v5639_v59 }
0x16db   :  { %4527 = vmatprep.subr.bf16.mxu0 %v5645_v20 }
0x16dd   :  { %4538 = vmatpush3.bf16.msra.mxu1 %v5639_v59 }
0x16e0   :  { %4504 = vmatmul.mubr.msk.bf16.gmra.mxu1 %vm132_vm0, %v5655_v38 }
0x16e1   :  { %4507 = vmatprep.mubr.msk.bf16.mxu1 %vm132_vm0, %v5662_v11 }
0x16e8   :  { %4508 = vmatmul.mubr.msk.bf16.gmra.mxu1 %vm132_vm0, %v5669_v42 }
0x1795   :  { %v4517_v10 = vpop.f32.mrf.mxu0 }
0x1796   :  { %v3388_v51 = vadd.f32 %v5676_v0, %v4517_v10 }
0x1797   :  { %v3379_v56 = vpop.f32.mrf.mxu0 }
0x1798   :  { %3607 = vrot.lane.b32.xlu1 %v3388_v51, %s4859_s26  ;;  %v4501_v4 = vpop.f32.mrf.mxu1  ;;  %v3380_v35 = vadd.f32 %v5676_v0, %v3379_v56 }
0x1799   :  { %v4518_v31 = vpop.f32.mrf.mxu0 }
0x179a   :  { %v3391_v59 = vadd.f32 %v5676_v0, %v4518_v31  ;;  %v3286_v62 = vpop.f32.mrf.mxu1 }
0x179b   :  { %v3382_v38 = vpop.f32.mrf.mxu0 }
0x179c   :  { %3609 = vrot.lane.b32.xlu0 %v3391_v59, %s4859_s26  ;;  %3603 = vrot.lane.b32.xlu1 %v3380_v35, %s4859_s26  ;;  %v4502_v11 = vpop.f32.mrf.mxu1  ;;  %v3383_v42 = vadd.f32 %v5676_v0, %v3382_v38 }
0x179d   :  { %v3334_v12 = vpack.c.bf16 %v4502_v11, %v4501_v4 }
0x179e   :  { %v3289_v40 = vpop.f32.mrf.mxu1 }
0x179f   :  { %v3333_v43 = vpack.c.bf16 %v3289_v40, %v3286_v62 }
0x17a0   :  { %3605 = vrot.lane.b32.xlu0 %v3383_v42, %s4859_s26  ;;  %v4505_v46 = vpop.f32.mrf.mxu1 }
0x17a1   :  { %4523 = vmatprep.mubr.msk.bf16.mxu0 %vm132_vm0, %v3333_v43 }
0x17a2   :  { %v3302_v19 = vpop.f32.mrf.mxu1  ;;  %4524 = vmatmul.mubr.msk.bf16.vlgmr.msra.gmra.mxu0 %vm132_vm0, %v3334_v12 }
0x17a3   :  { %4528 = vmatpush3.bf16.msra.mxu0 %v5645_v20 }
0x17a4   :  { %v4506_v32 = vpop.f32.mrf.mxu1  ;;  %4529 = vmatprep.subr.bf16.mxu0 %v5704_v15 }
0x17a5   :  { %v3336_v0 = vpack.c.bf16 %v4506_v32, %v4505_v46 }
0x17a6   :  { %v3305_v39 = vpop.f32.mrf.mxu1 }
0x17a7   :  { %v3335_v30 = vpack.c.bf16 %v3305_v39, %v3302_v19  ;;  %4530 = vmatpush3.bf16.msra.mxu0 %v5704_v15 }
0x17a8   :  { %v4509_v14 = vpop.f32.mrf.mxu1 }
0x17a9   :  { %4531 = vmatprep.mubr.msk.bf16.mxu0 %vm132_vm0, %v3335_v30 }
0x17aa   :  { %v3318_v33 = vpop.f32.mrf.mxu1  ;;  %4532 = vmatmul.mubr.msk.bf16.vlgmr.msra.gmra.mxu0 %vm132_vm0, %v3336_v0 }
0x17ac   :  { %v4510_v47 = vpop.f32.mrf.mxu1 }
0x17ad   :  { %v3338_v25 = vpack.c.bf16 %v4510_v47, %v4509_v14 }
0x17ae   :  { %v3321_v37 = vpop.f32.mrf.mxu1 }
0x17af   :  { %v3337_v6 = vpack.c.bf16 %v3321_v37, %v3318_v33 }
0x17b1   :  { %4539 = vmatprep.mubr.msk.bf16.mxu1 %vm132_vm0, %v3337_v6 }
0x17b2   :  { %4540 = vmatmul.mubr.msk.bf16.vlgmr.msra.gmra.mxu1 %vm132_vm0, %v3338_v25 }
0x1862   :  { %v4525_v20 = vpop.f32.mrf.mxu0 }
0x1863   :  { %v3451_v54 = vadd.f32 %v5720_v61, %v4525_v20 }
0x1864   :  { %v3434_v49 = vpop.f32.mrf.mxu0 }
0x1865   :  { %v3449_v50 = vadd.f32 %v5723_v45, %v3434_v49 }
0x1866   :  { %v4526_v23 = vpop.f32.mrf.mxu0 }
0x1867   :  { %v3452_v60 = vadd.f32 %v5726_v13, %v4526_v23 }
0x1868   :  { %v3437_v18 = vpop.f32.mrf.mxu0 }
0x1869   :  { %v3450_v5 = vadd.f32 %v5729_v9, %v3437_v18 }
0x186a   :  { %v4533_v15 = vpop.f32.mrf.mxu0 }
0x186b   :  { %v3510_v48 = vadd.f32 %v4533_v15, %v3451_v54  ;;  %v4862_v15 = vmov 0.0  }
0x186c   :  { %v3493_v55 = vpop.f32.mrf.mxu0  ;;  %4543 = vmatprep.subr.mxu0 %v4862_v15  ;;  %4551 = vmatprep.mubr.msk.f32.mxu0 %vm4863_vm1, %v4862_v15 }
0x186d   :  { %v3508_v29 = vadd.f32 %v3493_v55, %v3449_v50 }
0x186e   :  { %v4534_v3 = vpop.f32.mrf.mxu0 }
0x186f   :  { %v3511_v1 = vadd.f32 %v4534_v3, %v3452_v60 }
0x1870   :  { %v3496_v7 = vpop.f32.mrf.mxu0 }
0x1871   :  { %v3509_v28 = vadd.f32 %v3496_v7, %v3450_v5 }
0x1872   :  { %v4541_v8 = vpop.f32.mrf.mxu1 }
0x1873   :  { %v3569_v21 = vadd.f32 %v4541_v8, %v3510_v48 }
0x1874   :  { %v3552_v26 = vpop.f32.mrf.mxu1 }
0x1875   :  { %v3573_v16 = vadd.f32 %v3569_v21, %v3388_v51  ;;  %v3567_v34 = vadd.f32 %v3552_v26, %v3508_v29 }
0x1876   :  { %v4542_v27 = vpop.f32.mrf.mxu1 }
0x1877   :  { %v3956_v44 = vmul.f32 -1.442695, %v3573_v16  ;;  %v3571_v61 = vadd.f32 %v3567_v34, %v3380_v35  ;;  %v3570_v2 = vadd.f32 %v4542_v27, %v3511_v1 }
0x1878   :  { %v3555_v22 = vpop.f32.mrf.mxu1 }
0x1879   :  { %4745 = vpow2.f32 %v3956_v44  ;;  %v3954_v45 = vmul.f32 -1.442695, %v3571_v61  ;;  %v3574_v52 = vadd.f32 %v3570_v2, %v3391_v59  ;;  %v3568_v58 = vadd.f32 %v3555_v22, %v3509_v28  ;;  %v3608_v59 = vpop.permute.xlu1 %3607  ;;  %v3675_v22 = vld [vmem:[%s5837_s8] sm:$0x3] }
0x187b   :  { %4747 = vpow2.f32 %v3954_v45  ;;  %v3957_v13 = vmul.f32 -1.442695, %v3574_v52  ;;  %v3572_v41 = vadd.f32 %v3568_v58, %v3383_v42  ;;  %v3610_v42 = vpop.permute.xlu0 %3609 }
0x187d   :  { %4749 = vpow2.f32 %v3957_v13  ;;  %v3955_v17 = vmul.f32 -1.442695, %v3572_v41  ;;  %v3604_v43 = vpop.permute.xlu1 %3603 }
0x187f   :  { %4751 = vpow2.f32 %v3955_v17  ;;  %v3606_v32 = vpop.permute.xlu0 %3605  ;;  %v3960_v17 = vld [vmem:[#allocation2] ss:$0 sm:$0xff] }
0x1886   :  { %v4746_v9 = vpop.eup %4745 }
0x1887   :  { %v3589_v36 = vadd.f32 1.0, %v4746_v9 }
0x1888   :  { %v4748_v10 = vpop.eup %4747 }
0x1889   :  { %4753 = vrcp.f32 %v3589_v36  ;;  %v3587_v51 = vadd.f32 1.0, %v4748_v10 }
0x188a   :  { %v4750_v56 = vpop.eup %4749 }
0x188b   :  { %4755 = vrcp.f32 %v3587_v51  ;;  %v3590_v4 = vadd.f32 1.0, %v4750_v56 }
0x188c   :  { %v4752_v31 = vpop.eup %4751 }
0x188d   :  { %4757 = vrcp.f32 %v3590_v4  ;;  %v3588_v35 = vadd.f32 1.0, %v4752_v31 }
0x188f   :  { %4759 = vrcp.f32 %v3588_v35 }
0x1896   :  { %v4754_v62 = vpop.eup %4753 }
0x1897   :  { %v3617_v38 = vmul.f32 %v4754_v62, %v3608_v59  ;;  %v3645_v55 = vsub.f32 1.0, %v4754_v62  ;;  %v3669_v3 = vmul.f32 %v4754_v62, %v5746_v53 }
0x1898   :  { %v4756_v11 = vpop.eup %4755 }
0x1899   :  { %3627 = vrot.lane.b32.xlu1 %v3617_v38, %s4859_s26  ;;  %v3615_v12 = vmul.f32 %v4756_v11, %v3604_v43  ;;  %v3643_v8 = vsub.f32 1.0, %v4756_v11 }
0x189a   :  { %v4758_v40 = vpop.eup %4757 }
0x189b   :  { %v3618_v46 = vmul.f32 %v4758_v40, %v3610_v42  ;;  %v3646_v29 = vsub.f32 1.0, %v4758_v40  ;;  %v3670_v5 = vmul.f32 %v4758_v40, %v5748_v57 }
0x189c   :  { %v4760_v19 = vpop.eup %4759 }
0x189d   :  { %3623 = vrot.lane.b32.xlu1 %v3615_v12, %s4859_s26  ;;  %3629 = vrot.lane.b32.xlu0 %v3618_v46, %s4859_s26  ;;  %v3616_v39 = vmul.f32 %v4760_v19, %v3606_v32  ;;  %v3644_v27 = vsub.f32 1.0, %v4760_v19  ;;  %v3668_v28 = vmul.f32 %v4760_v19, %v5756_v63  ;;  %v3959_v63 = vld [vmem:[%s5835_s6] ss:$0 sm:$0xff] }
0x18a1   :  { %3625 = vrot.lane.b32.xlu0 %v3616_v39, %s4859_s26 }
0x190b   :  { %v3628_v30 = vpop.permute.xlu1 %3627 }
0x190c   :  { %v3637_v0 = vadd.f32 %v3628_v30, %v3569_v21  ;;  %v3667_v21 = vmul.f32 %v4756_v11, %v5754_v24 }
0x190e   :  { %4761 = vtanh.f32 %v3637_v0 }
0x190f   :  { %v3624_v14 = vpop.permute.xlu1 %3623  ;;  %v3630_v33 = vpop.permute.xlu0 %3629 }
0x1910   :  { %v3635_v47 = vadd.f32 %v3624_v14, %v3567_v34  ;;  %v3638_v37 = vadd.f32 %v3630_v33, %v3570_v2 }
0x1912   :  { %4763 = vtanh.f32 %v3635_v47 }
0x1913   :  { %4765 = vtanh.f32 %v3638_v37  ;;  %v3626_v6 = vpop.permute.xlu0 %3625 }
0x1914   :  { %v3636_v25 = vadd.f32 %v3626_v6, %v3568_v58 }
0x1916   :  { %4767 = vtanh.f32 %v3636_v25 }
0x191b   :  { %v4762_v20 = vpop.eup %4761 }
0x191c   :  { %3655 = vrot.lane.b32.xlu1 %v4762_v20, %s4861_s28 }
0x191f   :  { %v4764_v49 = vpop.eup %4763 }
0x1920   :  { %v4766_v23 = vpop.eup %4765  ;;  %3651 = vrot.lane.b32.xlu1 %v4764_v49, %s4861_s28 }
0x1921   :  { %3657 = vrot.lane.b32.xlu0 %v4766_v23, %s4861_s28 }
0x1923   :  { %v4768_v18 = vpop.eup %4767 }
0x1925   :  { %3653 = vrot.lane.b32.xlu0 %v4768_v18, %s4861_s28 }
0x198e   :  { %v3656_v54 = vpop.permute.xlu1 %3655 }
0x198f   :  { %v3665_v50 = vmul.f32 %v3656_v54, %v3645_v55 }
0x1991   :  { %v3673_v48 = vadd.f32 %v3669_v3, %v3665_v50 }
0x1992   :  { %v3652_v60 = vpop.permute.xlu1 %3651 }
0x1993   :  { %v3663_v7 = vmul.f32 %v3652_v60, %v3643_v8  ;;  %v3658_v26 = vpop.permute.xlu0 %3657  ;;  %3684 = vrot.lane.b32.xlu1 %v3673_v48, %s4861_s28 }
0x1994   :  { %v3666_v1 = vmul.f32 %v3658_v26, %v3646_v29 }
0x1995   :  { %v3671_v16 = vadd.f32 %v3667_v21, %v3663_v7 }
0x1996   :  { %v3674_v34 = vadd.f32 %v3670_v5, %v3666_v1 }
0x1997   :  { %v3654_v53 = vpop.permute.xlu0 %3653  ;;  %3680 = vrot.lane.b32.xlu1 %v3671_v16, %s4861_s28 }
0x1998   :  { %v3664_v44 = vmul.f32 %v3654_v53, %v3644_v27  ;;  %3686 = vrot.lane.b32.xlu0 %v3674_v34, %s4861_s28 }
0x199a   :  { %v3672_v61 = vadd.f32 %v3668_v28, %v3664_v44 }
0x199c   :  { %3682 = vrot.lane.b32.xlu0 %v3672_v61, %s4861_s28 }
0x1a05   :  { %v3685_v24 = vpop.permute.xlu1 %3684 }
0x1a09   :  { %v3681_v45 = vpop.permute.xlu1 %3680 }
0x1a0a   :  { %v3687_v2 = vpop.permute.xlu0 %3686 }
0x1a0b   :  { %4544 = vmatpush3.msra.mxu0 %v3687_v2 }
0x1a0c   :  { %4545 = vmatprep.subr.mxu0 %v4862_v15 }
0x1a0d   :  { %4546 = vmatpush3.msra.mxu0 %v3685_v24 }
0x1a0e   :  { %4547 = vmatprep.subr.mxu0 %v4862_v15  ;;  %v3683_v57 = vpop.permute.xlu0 %3682 }
0x1a0f   :  { %4548 = vmatpush3.msra.mxu0 %v3683_v57 }
0x1a10   :  { %4549 = vmatprep.subr.mxu0 %v4862_v15 }
0x1a11   :  { %4550 = vmatpush3.msra.mxu0 %v3681_v45 }
0x1a12   :  { %4552 = vmatmul.mubr.msk.f32.vlgmr.msra.gmra.mxu0 %vm132_vm0, %v3675_v22 }
0x1ad2   :  { %v3761_v52 = vpop.f32.mrf.mxu0 }
0x1ad3   :  { %v3772_v58 = vmul.f32 %v3959_v63, %v3761_v52 }
0x1ad4   :  { %v4553_v13 = vpop.f32.mrf.mxu0 }
0x1ad5   :  { %v3774_v41 = vsel %vm3773_vm2, %v3772_v58, 0.0 }
0x1ad6   :  { %3775 = vadd.xlane.f32.xlu0 %v3774_v41 }
0x1b5f   :  { %v3776_v9 = vpop.xlane.xlu0 %3775 }
0x1b60   :  { %v3784_v36 = vadd.f32 %v3960_v17, %v3776_v9 }
0x1b62   :  { %v3961_v10 = vmul.f32 -1.442695, %v3784_v36 }
0x1b64   :  { %4769 = vpow2.f32 %v3961_v10 }
0x1b71   :  { %v4770_v51 = vpop.eup %4769 }
0x1b72   :  { %v3788_v56 = vadd.f32 1.0, %v4770_v51 }
0x1b74   :  { %4771 = vrcp.f32 %v3788_v56 }
0x1b81   :  { %v4772_v4 = vpop.eup %4771 }
0x1b82   :  { %3792 = vst.msk [vmem:[%s5838_s9] sm:$0x3] %vm3791_vm3, %v4772_v4 }
0x1b83   :  { %3797 = vsyncpa [#allocation4], 1 }
0x1b84   :  { %3798 = vsyncpa [#allocation6], 1 }

</bundles_post_ra>
